<compile_context>
chip_gen: v6e
topology: v6e:2x2x1
jax: 0.10.0
libtpu: 0.0.40
codegen_flags: <defaults>
</compile_context>

<pallas_src>
import functools

import jax
import jax.numpy as jnp
from jax.experimental import pallas as pl
from jax.experimental.pallas import tpu as pltpu


_LANES = 128
_IN_FEATURES = 3
_CHUNK = _IN_FEATURES * _LANES            # 384 flat f32 == 128 batch rows
_DEFAULT_MAX_BLOCK_ROWS = 131072          # batch rows per grid step (upper bound)
_DEFAULT_MIN_PALLAS_ROWS = 65536          # below this, plain XLA is the right path


def _linear_fold_kernel(x_ref, m_ref, b_ref, o_ref):
    """One tile of y = x @ W.T + b, everything folded into a single MXU dot.

    x_ref: (TR, 384) VMEM  -- 384 flat f32 per row = 128 batch rows x 3 features
    m_ref: (384, 128) VMEM -- constant fold matrix (weights + de-interleave);
                              same block every step => fetched once, resident
    b_ref: (1,)      SMEM  -- bias scalar
    o_ref: (TR, 128) VMEM  -- lane-dense output tile, flat batch order
    """
    acc = jnp.dot(x_ref[...], m_ref[...],
                  preferred_element_type=jnp.float32,
                  precision=jax.lax.Precision.HIGHEST)
    o_ref[...] = (acc + b_ref[0]).astype(o_ref.dtype)


def _xla_forward(x, weight, bias):
    """Plain XLA path (small / 128-misaligned batches): already at roofline."""
    return jnp.dot(x, weight.T, precision=jax.lax.Precision.HIGHEST) + bias[None, :]


def _round_up(n, m):
    return ((n + m - 1) // m) * m


@functools.partial(jax.jit, static_argnames=("max_block_rows", "min_pallas_rows"))
def multivariate_linear_regression(x, weight, bias, *,
                                   max_block_rows=_DEFAULT_MAX_BLOCK_ROWS,
                                   min_pallas_rows=_DEFAULT_MIN_PALLAS_ROWS):
    """x: (B, 3) f32, weight: (1, 3) f32, bias: (1,) f32 -> (B, 1) f32."""
    B, in_features = x.shape
    out_features, in2 = weight.shape
    assert in_features == _IN_FEATURES and in2 == _IN_FEATURES and out_features == 1

    # Small or 128-misaligned batches: the zero-copy (R, 384) view needs
    # B % 128 == 0, and copying x to align would cost more than the op.
    if B < min_pallas_rows or B % _LANES != 0:
        return _xla_forward(x, weight, bias)

    assert max_block_rows % 1024 == 0 and max_block_rows >= 1024
    # >= 4 grid steps (v7x: shard across both TensorCores and still pipeline),
    # tiles stay multiples of 1024 rows => whole (8, 128) vregs per block.
    block_rows = max(1024, min(max_block_rows, _round_up(pl.cdiv(B, 4), 1024)))
    tr = block_rows // _LANES               # sublane rows per tile (multiple of 8)
    r = B // _LANES                         # total output sublane rows
    num_tiles = pl.cdiv(r, tr)              # last block may be partial (no pad)

    # Free row-major bitcast: (B, 3) -> (B/128, 384).  No transpose, no pad.
    xs = x.reshape(r, _CHUNK)

    # Fold matrix: M[q, l] = w[q % 3] if q // 3 == l else 0,  q in [0, 384).
    # Then  out[row, l] = sum_q xs[row, q] * M[q, l] = sum_f w[f] * x[128*row + l, f].
    w = weight.reshape(_IN_FEATURES).astype(x.dtype)
    q = jnp.arange(_CHUNK)
    fold = jnp.where((q // _IN_FEATURES)[:, None] == jnp.arange(_LANES)[None, :],
                     w[q % _IN_FEATURES][:, None],
                     jnp.zeros((), x.dtype))                      # (384, 128)
    b_flat = bias.reshape(1).astype(jnp.float32)                  # SMEM scalar

    out2d = pl.pallas_call(
        _linear_fold_kernel,
        out_shape=jax.ShapeDtypeStruct((r, _LANES), x.dtype),
        grid_spec=pltpu.PrefetchScalarGridSpec(
            num_scalar_prefetch=0,
            grid=(num_tiles,),
            in_specs=[
                # x tile: (TR, 384) lane-dense slab straight from HBM.
                pl.BlockSpec((tr, _CHUNK), lambda i: (i, 0)),
                # Fold matrix: same block every step -> resident in VMEM.
                pl.BlockSpec((_CHUNK, _LANES), lambda i: (0, 0)),
                # Bias scalar in SMEM (no VMEM vregs, no per-step DMA).
                pl.BlockSpec(memory_space=pltpu.MemorySpace.SMEM),
            ],
            out_specs=pl.BlockSpec((tr, _LANES), lambda i: (i, 0)),
        ),
        compiler_params=pltpu.CompilerParams(
            # Independent batch tiles: lets Mosaic shard grid steps across
            # both TensorCores on v7x (neutral on single-TC v5e/v6e).
            dimension_semantics=("parallel",),
        ),
    )(xs, fold, b_flat)

    # (B/128, 128) is exactly the flat (B,) result in batch order.
    return out2d.reshape(B, out_features)


if __name__ == "__main__":
    key = jax.random.PRNGKey(0)
    kx, kw, kb, kx2 = jax.random.split(key, 4)

    in_f, out_f = 3, 1
    bound = 1.0 / (in_f ** 0.5)
    weight = jax.random.uniform(kw, (out_f, in_f), jnp.float32, -bound, bound)
    bias = jax.random.uniform(kb, (out_f,), jnp.float32, -bound, bound)

    # (a) Pallas path: B is a multiple of 128 and above the XLA-fallback
    #     threshold.  Block sizing yields a 4-step grid whose last block is
    #     partial, exercising the no-pad ragged-boundary handling.
    B = 128 * 1000
    x = jax.random.normal(kx, (B, in_f), dtype=jnp.float32)
    out = jax.block_until_ready(multivariate_linear_regression(x, weight, bias))
    ref = _xla_forward(x, weight, bias)
    assert out.shape == (B, out_f)
    assert jnp.allclose(out, ref, atol=1e-4, rtol=1e-4)

    # (b) Tiny batch (B=8): dispatches to the plain-XLA fallback path.
    x_small = jax.random.normal(kx2, (8, in_f), dtype=jnp.float32)
    out_small = jax.block_until_ready(
        multivariate_linear_regression(x_small, weight, bias))
    assert out_small.shape == (8, out_f)
    assert jnp.allclose(out_small, _xla_forward(x_small, weight, bias),
                        atol=1e-4, rtol=1e-4)

    print("KERNEL_OK")
</pallas_src>

<mosaic_0001>
module attributes {stable_mosaic.version = 11 : i64} {
  func.func @_linear_fold_kernel(%arg0: i32, %arg1: memref<256x384xf32, #tpu.memory_space<vmem>>, %arg2: memref<384x128xf32, #tpu.memory_space<vmem>>, %arg3: memref<1xf32, #tpu.memory_space<smem>>, %arg4: memref<256x128xf32, #tpu.memory_space<vmem>>) attributes {dimension_semantics = [#tpu.dimension_semantics<parallel>], iteration_bounds = array<i64: 4>, scalar_prefetch = 0 : i64, scratch_operands = 0 : i64, tpu.core_type = #tpu.core_type<tc>, window_params = [{transform_indices = @transform_0, window_bounds = array<i64: 256, 384>}, {pipeline_mode = #tpu.pipeline_mode<synchronous>, transform_indices = @transform_1, window_bounds = array<i64: 384, 128>}, {transform_indices = @transform_2, window_bounds = array<i64: 1>}, {transform_indices = @transform_3, window_bounds = array<i64: 256, 128>}]} {
    %c0 = arith.constant 0 : index
    %c0_0 = arith.constant 0 : index
    %0 = vector.load %arg1[%c0, %c0_0] : memref<256x384xf32, #tpu.memory_space<vmem>>, vector<256x384xf32>
    %c0_1 = arith.constant 0 : index
    %c0_2 = arith.constant 0 : index
    %1 = vector.load %arg2[%c0_1, %c0_2] : memref<384x128xf32, #tpu.memory_space<vmem>>, vector<384x128xf32>
    %cst = arith.constant dense<0.000000e+00> : vector<256x128xf32>
    %2 = tpu.matmul %0, %1, %cst {dimension_numbers = #tpu.dot_dimension_numbers<[1], [0], [0], [1], [0, 0, 1, 1], [], []>, precision = #tpu.contract_precision<fp32>} : vector<256x384xf32>, vector<384x128xf32>, vector<256x128xf32> -> vector<256x128xf32>
    %c0_3 = arith.constant 0 : index
    %3 = memref.load %arg3[%c0_3] : memref<1xf32, #tpu.memory_space<smem>>
    %4 = vector.broadcast %3 : f32 to vector<256x128xf32>
    %5 = arith.addf %2, %4 : vector<256x128xf32>
    %c0_4 = arith.constant 0 : index
    %c0_5 = arith.constant 0 : index
    %6 = vector.load %arg4[%c0_4, %c0_5] : memref<256x128xf32, #tpu.memory_space<vmem>>, vector<256x128xf32>
    tpu.vector_store %arg4[%c0_4, %c0_5], %5 {strides = array<i32>} : memref<256x128xf32, #tpu.memory_space<vmem>>, vector<256x128xf32>,
    return
  }
  func.func @transform_0(%arg0: i32) -> (i32, i32) {
    %c0_i32 = arith.constant 0 : i32
    %c0_i32_0 = arith.constant 0 : i32
    return %arg0, %c0_i32 : i32, i32
  }
  func.func @transform_1(%arg0: i32) -> (i32, i32) {
    %c0_i32 = arith.constant 0 : i32
    %c0_i32_0 = arith.constant 0 : i32
    %c0_i32_1 = arith.constant 0 : i32
    return %c0_i32, %c0_i32_0 : i32, i32
  }
  func.func @transform_2(%arg0: i32) -> i32 {
    %c0_i32 = arith.constant 0 : i32
    %c0_i32_0 = arith.constant 0 : i32
    return %c0_i32 : i32
  }
  func.func @transform_3(%arg0: i32) -> (i32, i32) {
    %c0_i32 = arith.constant 0 : i32
    %c0_i32_0 = arith.constant 0 : i32
    return %arg0, %c0_i32 : i32, i32
  }
}

</mosaic_0001>

<bundles_post_ra>
// kernel: multivariate_linear_regression.1
= control target key start
LH: loop header
LB: loop body
LE: loop exit
PB: predicated region body
PF: predicated region fallthrough
CT: control target
= control target key end

     0   :  { %s9400_s0 = inlined_call_operand.vmem [shape: f32[1000,384], index: 0, kind: input, shape index: {}]   ;;  %s9401_s1 = inlined_call_operand.vmem [shape: f32[384,128], index: 1, kind: input, shape index: {}]   ;;  %s9402_s2 = inlined_call_operand.<no memory space> [shape: f32[1], index: 2, kind: input, shape index: {}]   ;;  %s9403_s3 = inlined_call_operand.hbm [shape: f32[1000,128], index: 3, kind: output, shape index: {}]  }
   0x1   :  { %8 = sst [smem:[#allocation2]] %s9402_s2 }
   0x2   :  { %9 = vsyncpa [#allocation4], 0 }
   0x3   :  { %11 = vsyncpa [#allocation4 + $0x1], 0  ;;  %s5953_s14 = smov 0   ;;  %s5955_s15 = smov 0  }
   0x4   :  { %s5957_s16 = smov 0   ;;  %s5959_s17 = smov 0  }
   0x5 LB: > { %s5974_s2 = sadd.s32 4294967295, %s5924_s17   ;;  %s5037_s18 = sadd.s32 4294967294, %s5924_s17   ;;  %s5924_s17 = sphi %s5959_s17, %s10765_s17   ;;  %s5920_s16 = sphi %s5957_s16, %s10764_s16   ;;  %s5916_s15 = sphi %s5955_s15, %s10763_s15   ;;  %s5912_s14 = sphi %s5953_s14, %s10762_s14  }
   0x6   : > { %s5978_s19 = sadd.s32 1, %s5924_s17   ;;  %s92_s20 = sadd.s32 1, %s5920_s16 }
   0x7   : > { %s89_s21 = ssub.s32 %s5924_s17, %s5978_s19  ;;  %p102_p0 = scmp.ne.s32.totalorder %s5920_s16, %s5916_s15 }
   0x8   : > { %p90_p1 = scmp.eq.s32.totalorder %s89_s21, 0  ;;  %p103_p2 = scmp.eq.s32.totalorder %s5974_s2, 3 }
   0x9   : > { %p108_p3 = scmp.ne.s32.totalorder %s5916_s15, %s5912_s14  ;;  %p109_p4 = scmp.eq.s32.totalorder %s5037_s18, 3 }
   0xa   : > { %s5989_s22 = scalar_select %p90_p1, %s5920_s16, %s92_s20  }
   0xb   : > { %p5991_p5 = por %p103_p2, %p102_p0  ;;  %p5995_p6 = por %p109_p4, %p108_p3 }
   0xc   : > { %p5040_p7 = scmp.ge.s32.totalorder %s5924_s17, 1  ;;  %p153_p8 = scmp.lt.s32.totalorder %s5924_s17, 5 }
   0xe   : > { %p154_p9 = pnand %p5040_p7, %p153_p8 }
  0x10   : > { %157 = sbr.rel (%p154_p9) target bundleno = 893 (0x37d), region = 32 }
  0x15   : > { %v316_v0 = vld [vmem:[%s9401_s1 + $0x78] sm:$0xff]  ;;  %v315_v1 = vld [vmem:[%s9401_s1 + $0x70] sm:$0xff]  ;;  %v314_v2 = vld [vmem:[%s9401_s1 + $0x68] sm:$0xff]  ;;  %v9434_v3 = vmov 0.0   ;;  %s6217_s25 = sshll.u32 %s5974_s2, 5 }
  0x16   : > { %351 = vmatprep.subr.mxu0 %v9434_v3  ;;  %v6011_v4 = vand.u32 4294901760, %v316_v0  ;;  %v6013_v5 = vand.u32 4294901760, %v315_v1  ;;  %v6015_v6 = vand.u32 4294901760, %v314_v2  ;;  %v313_v7 = vld [vmem:[%s9401_s1 + $0x60] sm:$0xff]  ;;  %928 = vmatprep.subr.mxu1 %v9434_v3  ;;  %v312_v8 = vld [vmem:[%s9401_s1 + $0x58] sm:$0xff]  ;;  %v311_v9 = vld [vmem:[%s9401_s1 + $0x50] sm:$0xff] }
  0x17   : > { %v6027_v10 = vand.u32 4294901760, %v313_v7  ;;  %v6029_v11 = vand.u32 4294901760, %v312_v8  ;;  %v6031_v12 = vand.u32 4294901760, %v311_v9  ;;  %v310_v13 = vld [vmem:[%s9401_s1 + $0x48] sm:$0xff]  ;;  %v309_v14 = vld [vmem:[%s9401_s1 + $0x40] sm:$0xff]  ;;  %v308_v19 = vld [vmem:[%s9401_s1 + $0x38] sm:$0xff] }
  0x18   : > { %353 = vmatpush1.msra.mxu0 %v6011_v4  ;;  %v6041_v15 = vsub.f32 %v316_v0, %v6011_v4  ;;  %v6044_v16 = vsub.f32 %v315_v1, %v6013_v5  ;;  %v6046_v17 = vand.u32 4294901760, %v310_v13  ;;  %v6049_v18 = vsub.f32 %v314_v2, %v6015_v6  ;;  %v307_v26 = vld [vmem:[%s9401_s1 + $0x30] sm:$0xff]  ;;  %v306_v36 = vld [vmem:[%s9401_s1 + $0x28] sm:$0xff]  ;;  %v305_v41 = vld [vmem:[%s9401_s1 + $0x20] sm:$0xff]  ;;  %p189_p10 = scmp.lt.s32.totalorder %s6217_s25, 124  ;;  %s4964_s18 = ssub.s32 (%p5991_p5), 125, %s6217_s25 }
  0x19   : > { %354 = vmatprep.subr.mxu0 %v9434_v3  ;;  %v6056_v20 = vsub.f32 %v313_v7, %v6027_v10  ;;  %v6059_v21 = vsub.f32 %v312_v8, %v6029_v11  ;;  %v6065_v25 = vand.u32 4294901760, %v309_v14  ;;  %v6072_v28 = vand.u32 4294901760, %v308_v19  ;;  %v304_v49 = vld [vmem:[%s9401_s1 + $0x18] sm:$0xff]  ;;  %v303_v53 = vld [vmem:[%s9401_s1 + $0x10] sm:$0xff]  ;;  %v302_v59 = vld [vmem:[%s9401_s1 + $0x8] sm:$0xff]  ;;  %p4965_p11 = scmp.lt.s32.totalorder (%p5991_p5), %s4964_s18, 32 }
  0x1a   : > { %356 = vmatpush1.msra.mxu0 %v6013_v5  ;;  %v9422_v22 = vand.u32 4294901760, %v6041_v15  ;;  %v9420_v23 = vand.u32 4294901760, %v6044_v16  ;;  %v9418_v24 = vand.u32 4294901760, %v6049_v18  ;;  %v6076_v30 = vsub.f32 %v311_v9, %v6031_v12  ;;  %v301_v1 = vld [vmem:[%s9401_s1] sm:$0xff]  ;;  %s6279_s7 = scalar_select %p189_p10, %s6217_s25, 124 }
  0x1b   : > { %9899 = vst [vmem:[#allocation6_spill] sm:$0xff] %v6056_v20  ;;  %357 = vmatprep.subr.mxu0 %v9434_v3  ;;  %v9417_v27 = vand.u32 4294901760, %v6056_v20  ;;  %v9416_v29 = vand.u32 4294901760, %v6059_v21  ;;  %v6089_v34 = vsub.f32 %v310_v13, %v6046_v17  ;;  %v6092_v35 = vand.u32 4294901760, %v307_v26 }
  0x1c   : > { %359 = vmatpush1.msra.mxu0 %v6015_v6  ;;  %v932_v31 = vsub.f32 %v6041_v15, %v9422_v22  ;;  %v939_v32 = vsub.f32 %v6044_v16, %v9420_v23  ;;  %v946_v33 = vsub.f32 %v6049_v18, %v9418_v24  ;;  %v9414_v40 = vand.u32 4294901760, %v6076_v30  ;;  %s5822_s12 = smul.u32 24, %s6279_s7  ;;  %v321_v22 = vld [vmem:[%s9401_s1 + $0xa0] sm:$0xff] }
  0x1d   : > { %360 = vmatprep.subr.mxu0 %v9434_v3  ;;  %v953_v39 = vsub.f32 %v6056_v20, %v9417_v27  ;;  %v960_v42 = vsub.f32 %v6059_v21, %v9416_v29  ;;  %v6110_v43 = vsub.f32 %v309_v14, %v6065_v25  ;;  %v6113_v45 = vand.u32 4294901760, %v306_v36  ;;  %v332_v14 = vld [vmem:[%s9401_s1 + $0xf8] sm:$0xff] }
  0x1e   : > { %362 = vmatpush1.msra.mxu0 %v6027_v10  ;;  %v933_v37 = vand.u32 4294901760, %v932_v31  ;;  %v940_v38 = vand.u32 4294901760, %v939_v32  ;;  %v947_v44 = vand.u32 4294901760, %v946_v33  ;;  %v9413_v46 = vand.u32 4294901760, %v6089_v34  ;;  %s6342_s26 = scalar_lea.vmem %s9400_s0, %s5822_s12  ;;  %s349_s12 = sld [smem:[#allocation2]] }
  0x1f   : > { %363 = vmatprep.subr.mxu0 %v9434_v3  ;;  %v6117_v47 = vsub.f32 %v308_v19, %v6072_v28  ;;  %v6121_v48 = vand.u32 4294901760, %v305_v41  ;;  %v954_v50 = vand.u32 4294901760, %v953_v39  ;;  %v967_v51 = vsub.f32 %v6076_v30, %v9414_v40 }
  0x20   : > { %365 = vmatpush1.msra.mxu0 %v6029_v11  ;;  %934 = vmatpush1.msra.mxu1 %v933_v37  ;;  %v9411_v52 = vand.u32 4294901760, %v6110_v43  ;;  %v6135_v54 = vsub.f32 %v307_v26, %v6092_v35  ;;  %v961_v55 = vand.u32 4294901760, %v960_v42  ;;  %v974_v56 = vsub.f32 %v6089_v34, %v9413_v46 }
  0x21   : > { %9900 = vst [vmem:[#allocation7_spill] sm:$0xff] %v6117_v47  ;;  %366 = vmatprep.subr.mxu0 %v9434_v3  ;;  %935 = vmatprep.subr.mxu1 %v9434_v3  ;;  %9901 = vst [vmem:[#allocation8_spill] sm:$0xff] %v6121_v48  ;;  %v6143_v57 = vand.u32 4294901760, %v304_v49  ;;  %v9410_v58 = vand.u32 4294901760, %v6117_v47  ;;  %v6150_v60 = vsub.f32 %v306_v36, %v6113_v45  ;;  %v6154_v61 = vand.u32 4294901760, %v303_v53  ;;  %v331_v36 = vld [vmem:[%s9401_s1 + $0xf0] sm:$0xff] }
  0x22   : > { %368 = vmatpush1.msra.mxu0 %v6031_v12  ;;  %941 = vmatpush1.msra.mxu1 %v940_v38  ;;  %v968_v62 = vand.u32 4294901760, %v967_v51  ;;  %v981_v63 = vsub.f32 %v6110_v43, %v9411_v52  ;;  %v9408_v0 = vand.u32 4294901760, %v6135_v54  ;;  %v6165_v2 = vsub.f32 %v305_v41, %v6121_v48 }
  0x23   : > { %369 = vmatprep.subr.mxu0 %v9434_v3  ;;  %942 = vmatprep.subr.mxu1 %v9434_v3  ;;  %9902 = vst [vmem:[#allocation9_spill] sm:$0xff] %v6143_v57  ;;  %9903 = vst [vmem:[#allocation10_spill] sm:$0xff] %v6154_v61  ;;  %v6169_v7 = vand.u32 4294901760, %v302_v59  ;;  %v975_v8 = vand.u32 4294901760, %v974_v56  ;;  %v988_v9 = vsub.f32 %v6117_v47, %v9410_v58  ;;  %v9407_v13 = vand.u32 4294901760, %v6150_v60  ;;  %v329_v56 = vld [vmem:[%s9401_s1 + $0xe0] sm:$0xff] }
  0x24   : > { %371 = vmatpush1.msra.mxu0 %v6046_v17  ;;  %948 = vmatpush1.msra.mxu1 %v947_v44  ;;  %v6180_v19 = vsub.f32 %v304_v49, %v6143_v57  ;;  %v6184_v26 = vand.u32 4294901760, %v301_v1  ;;  %v982_v31 = vand.u32 4294901760, %v981_v63  ;;  %v995_v32 = vsub.f32 %v6135_v54, %v9408_v0  ;;  %v330_v44 = vld [vmem:[%s9401_s1 + $0xe8] sm:$0xff]  ;;  %v325_v58 = vld [vmem:[%s9401_s1 + $0xc0] sm:$0xff] }
  0x25   : > { %372 = vmatprep.subr.mxu0 %v9434_v3  ;;  %949 = vmatprep.subr.mxu1 %v9434_v3  ;;  %9904 = vst [vmem:[#allocation11_spill] sm:$0xff] %v6169_v7  ;;  %v9405_v33 = vand.u32 4294901760, %v6165_v2  ;;  %v6195_v37 = vsub.f32 %v303_v53, %v6154_v61  ;;  %v6199_v38 = vand.u32 4294901760, %v332_v14  ;;  %v989_v39 = vand.u32 4294901760, %v988_v9 }
  0x26   : > { %374 = vmatpush1.msra.mxu0 %v6065_v25  ;;  %955 = vmatpush1.msra.mxu1 %v954_v50  ;;  %9905 = vst [vmem:[#allocation12_spill] sm:$0xff] %v6180_v19  ;;  %9906 = vst [vmem:[#allocation13_spill] sm:$0xff] %v6184_v26  ;;  %v1002_v41 = vsub.f32 %v6150_v60, %v9407_v13  ;;  %v9404_v42 = vand.u32 4294901760, %v6180_v19  ;;  %v6210_v49 = vsub.f32 %v302_v59, %v6169_v7 }
  0x27   : > { %375 = vmatprep.subr.mxu0 %v9434_v3  ;;  %956 = vmatprep.subr.mxu1 %v9434_v3  ;;  %9907 = vst [vmem:[#allocation14_spill] sm:$0xff] %v6195_v37  ;;  %9908 = vst [vmem:[#allocation15_spill] sm:$0xff] %v6199_v38  ;;  %v6214_v50 = vand.u32 4294901760, %v331_v36  ;;  %v996_v51 = vand.u32 4294901760, %v995_v32  ;;  %v1009_v53 = vsub.f32 %v6165_v2, %v9405_v33  ;;  %v6248_v32 = vand.u32 4294901760, %v329_v56 }
  0x28   : > { %377 = vmatpush1.msra.mxu0 %v6072_v28  ;;  %962 = vmatpush1.msra.mxu1 %v961_v55  ;;  %9909 = vst [vmem:[#allocation16_spill] sm:$0xff] %v6210_v49  ;;  %v9406_v55 = vand.u32 4294901760, %v6195_v37  ;;  %v6228_v59 = vsub.f32 %v301_v1, %v6184_v26  ;;  %v1003_v63 = vand.u32 4294901760, %v1002_v41  ;;  %v9409_v9 = vand.u32 4294901760, %v6210_v49  ;;  %v328_v1 = vld [vmem:[%s9401_s1 + $0xd8] sm:$0xff] }
  0x29   : > { %378 = vmatprep.subr.mxu0 %v9434_v3  ;;  %963 = vmatprep.subr.mxu1 %v9434_v3  ;;  %9910 = vst [vmem:[#allocation17_spill] sm:$0xff] %v6214_v50  ;;  %9914 = vst [vmem:[#allocation21_spill] sm:$0xff] %v6248_v32  ;;  %v6259_v33 = vsub.f32 %v331_v36, %v6214_v50  ;;  %v326_v36 = vld [vmem:[%s9401_s1 + $0xc8] sm:$0xff]  ;;  %v6294_v52 = vsub.f32 %v329_v56, %v6248_v32  ;;  %v324_v56 = vld [vmem:[%s9401_s1 + $0xb8] sm:$0xff] }
  0x2a   : > { %380 = vmatpush1.msra.mxu0 %v6092_v35  ;;  %969 = vmatpush1.msra.mxu1 %v968_v62  ;;  %9911 = vst [vmem:[#allocation18_spill] sm:$0xff] %v6228_v59  ;;  %v6232_v62 = vand.u32 4294901760, %v330_v44  ;;  %v1023_v41 = vsub.f32 %v6195_v37, %v9406_v55  ;;  %v1030_v55 = vsub.f32 %v6210_v49, %v9409_v9  ;;  %v6329_v24 = vand.u32 4294901760, %v324_v56 }
  0x2b   : > { %381 = vmatprep.subr.mxu0 %v9434_v3  ;;  %970 = vmatprep.subr.mxu1 %v9434_v3  ;;  %9915 = vst [vmem:[#allocation22_spill] sm:$0xff] %v6259_v33  ;;  %9919 = vst [vmem:[#allocation26_spill] sm:$0xff] %v6294_v52  ;;  %v9423_v29 = vand.u32 4294901760, %v6294_v52 }
  0x2c   : > { %383 = vmatpush1.msra.mxu0 %v6113_v45  ;;  %976 = vmatpush1.msra.mxu1 %v975_v8  ;;  %9912 = vst [vmem:[#allocation19_spill] sm:$0xff] %v6232_v62  ;;  %v1016_v8 = vsub.f32 %v6180_v19, %v9404_v42  ;;  %v327_v42 = vld [vmem:[%s9401_s1 + $0xd0] sm:$0xff]  ;;  %v6274_v0 = vsub.f32 %v330_v44, %v6232_v62  ;;  %v9419_v44 = vand.u32 4294901760, %v6259_v33  ;;  %9924 = vst [vmem:[#allocation31_spill] sm:$0xff] %v6329_v24 }
  0x2d   : > { %384 = vmatprep.subr.mxu0 %v9434_v3  ;;  %977 = vmatprep.subr.mxu1 %v9434_v3 }
  0x2e   : > { %386 = vmatpush1.msra.mxu0 %v6121_v48  ;;  %983 = vmatpush1.msra.mxu1 %v982_v31  ;;  %v6243_v31 = vsub.f32 %v332_v14, %v6199_v38  ;;  %v9412_v14 = vand.u32 4294901760, %v6228_v59  ;;  %9917 = vst [vmem:[#allocation24_spill] sm:$0xff] %v6274_v0  ;;  %v9421_v46 = vand.u32 4294901760, %v6274_v0 }
  0x2f   : > { %387 = vmatprep.subr.mxu0 %v9434_v3  ;;  %984 = vmatprep.subr.mxu1 %v9434_v3 }
  0x30   : > { %389 = vmatpush1.msra.mxu0 %v6143_v57  ;;  %990 = vmatpush1.msra.mxu1 %v989_v39  ;;  %9913 = vst [vmem:[#allocation20_spill] sm:$0xff] %v6243_v31  ;;  %v1010_v39 = vand.u32 4294901760, %v1009_v53  ;;  %v1017_v53 = vand.u32 4294901760, %v1016_v8  ;;  %v9415_v13 = vand.u32 4294901760, %v6243_v31  ;;  %v1024_v8 = vand.u32 4294901760, %v1023_v41  ;;  %v217_v57 = vld [vmem:[%s6342_s26 + $0x60] sm:$0xff] }
  0x31   : > { %390 = vmatprep.subr.mxu0 %v9434_v3  ;;  %991 = vmatprep.subr.mxu1 %v9434_v3  ;;  %v1037_v9 = vsub.f32 %v6228_v59, %v9412_v14  ;;  %v1031_v41 = vand.u32 4294901760, %v1030_v55  ;;  %v317_v59 = vld [vmem:[%s9401_s1 + $0x80] sm:$0xff] }
  0x32   : > { %392 = vmatpush1.msra.mxu0 %v6154_v61  ;;  %997 = vmatpush1.msra.mxu1 %v996_v51  ;;  %v6263_v51 = vand.u32 4294901760, %v328_v1  ;;  %v1044_v14 = vsub.f32 %v6243_v31, %v9415_v13  ;;  %v1051_v13 = vsub.f32 %v6259_v33, %v9419_v44 }
  0x33   : > { %393 = vmatprep.subr.mxu0 %v9434_v3  ;;  %998 = vmatprep.subr.mxu1 %v9434_v3  ;;  %v1038_v55 = vand.u32 4294901760, %v1037_v9 }
  0x34   : > { %9916 = vst [vmem:[#allocation23_spill] sm:$0xff] %v6263_v51  ;;  %395 = vmatpush1.msra.mxu0 %v6169_v7  ;;  %1004 = vmatpush1.msra.mxu1 %v1003_v63  ;;  %v6283_v63 = vand.u32 4294901760, %v327_v42  ;;  %v6309_v40 = vsub.f32 %v328_v1, %v6263_v51  ;;  %v323_v1 = vld [vmem:[%s9401_s1 + $0xb0] sm:$0xff]  ;;  %v1045_v9 = vand.u32 4294901760, %v1044_v14  ;;  %v322_v14 = vld [vmem:[%s9401_s1 + $0xa8] sm:$0xff] }
  0x35   : > { %396 = vmatprep.subr.mxu0 %v9434_v3  ;;  %1005 = vmatprep.subr.mxu1 %v9434_v3 }
  0x36   : > { %9918 = vst [vmem:[#allocation25_spill] sm:$0xff] %v6283_v63  ;;  %398 = vmatpush1.msra.mxu0 %v6184_v26  ;;  %1011 = vmatpush1.msra.mxu1 %v1010_v39  ;;  %v6298_v39 = vand.u32 4294901760, %v326_v36  ;;  %9921 = vst [vmem:[#allocation28_spill] sm:$0xff] %v6309_v40  ;;  %v6325_v27 = vsub.f32 %v327_v42, %v6283_v63  ;;  %v6346_v42 = vand.u32 4294901760, %v323_v1 }
  0x37   : > { %399 = vmatprep.subr.mxu0 %v9434_v3  ;;  %1012 = vmatprep.subr.mxu1 %v9434_v3 }
  0x38   : > { %9920 = vst [vmem:[#allocation27_spill] sm:$0xff] %v6298_v39  ;;  %401 = vmatpush2.msra.mxu0 %v6199_v38  ;;  %1018 = vmatpush1.msra.mxu1 %v1017_v53  ;;  %v6314_v53 = vand.u32 4294901760, %v325_v58  ;;  %9923 = vst [vmem:[#allocation30_spill] sm:$0xff] %v6325_v27  ;;  %v6337_v23 = vsub.f32 %v326_v36, %v6298_v39  ;;  %v1052_v36 = vand.u32 4294901760, %v1051_v13  ;;  %v208_v38 = vld [vmem:[%s6342_s26 + $0x18] sm:$0xff] }
  0x39   : > { %402 = vmatprep.subr.mxu0 %v9434_v3  ;;  %1019 = vmatprep.subr.mxu1 %v9434_v3  ;;  %9926 = vst [vmem:[#allocation33_spill] sm:$0xff] %v6346_v42  ;;  %v6365_v13 = vsub.f32 %v324_v56, %v6329_v24  ;;  %v6378_v56 = vand.u32 4294901760, %v321_v22 }
  0x3a   : > { %9922 = vst [vmem:[#allocation29_spill] sm:$0xff] %v6314_v53  ;;  %404 = vmatpush2.msra.mxu0 %v6214_v50  ;;  %1025 = vmatpush1.msra.mxu1 %v1024_v8  ;;  %v1058_v8 = vsub.f32 %v6274_v0, %v9421_v46  ;;  %9925 = vst [vmem:[#allocation32_spill] sm:$0xff] %v6337_v23  ;;  %v6360_v44 = vsub.f32 %v325_v58, %v6314_v53  ;;  %v9929_v46 = vand.u32 4294901760, %v6309_v40  ;;  %v318_v50 = vld [vmem:[%s9401_s1 + $0x88] sm:$0xff] }
  0x3b   : > { %405 = vmatprep.subr.mxu0 %v9434_v3  ;;  %1026 = vmatprep.subr.mxu1 %v9434_v3  ;;  %9928 = vst [vmem:[#allocation35_spill] sm:$0xff] %v6365_v13  ;;  %9931 = vst [vmem:[#allocation37_spill] sm:$0xff] %v6378_v56  ;;  %v6381_v0 = vsub.f32 %v323_v1, %v6346_v42  ;;  %v9935_v1 = vmov 0.0  }
  0x3c   : > { %407 = vmatpush2.msra.mxu0 %v6232_v62  ;;  %1032 = vmatpush1.msra.mxu1 %v1031_v41  ;;  %v1065_v41 = vsub.f32 %v6294_v52, %v9423_v29  ;;  %9927 = vst [vmem:[#allocation34_spill] sm:$0xff] %v6360_v44  ;;  %v1059_v29 = vand.u32 4294901760, %v1058_v8  ;;  %v6372_v52 = vand.u32 4294901760, %v322_v14  ;;  %v205_v62 = vld [vmem:[%s6342_s26] sm:$0xff] }
  0x3d   : > { %408 = vmatprep.subr.mxu0 %v9434_v3  ;;  %1033 = vmatprep.subr.mxu1 %v9434_v3  ;;  %9932 = vst [vmem:[#allocation38_spill] sm:$0xff] %v6381_v0 }
  0x3e   : > { %410 = vmatpush2.msra.mxu0 %v6248_v32  ;;  %1039 = vmatpush1.msra.mxu1 %v1038_v55  ;;  %v206_v55 = vld [vmem:[%s6342_s26 + $0x8] sm:$0xff]  ;;  %v1072_v32 = vsub.f32 %v6309_v40, %v9929_v46  ;;  %9930 = vst [vmem:[#allocation36_spill] sm:$0xff] %v6372_v52  ;;  %v1066_v8 = vand.u32 4294901760, %v1065_v41  ;;  %v9933_v46 = vand.u32 4294901760, %v6325_v27  ;;  %v319_v41 = vld [vmem:[%s9401_s1 + $0x90] sm:$0xff] }
  0x3f   : > { %411 = vmatprep.subr.mxu0 %v9434_v3  ;;  %1040 = vmatprep.subr.mxu1 %v9434_v3  ;;  %v6392_v40 = vand.u32 4294901760, %v206_v55  ;;  %v6428_v26 = vand.u32 4294901760, %v319_v41 }
  0x40   : > { %413 = vmatpush2.msra.mxu0 %v6263_v51  ;;  %1046 = vmatpush2.msra.mxu1 %v1045_v9  ;;  %v209_v9 = vld [vmem:[%s6342_s26 + $0x20] sm:$0xff]  ;;  %v1079_v51 = vsub.f32 %v6325_v27, %v9933_v46  ;;  %v6400_v46 = vand.u32 4294901760, %v205_v62  ;;  %v1073_v58 = vand.u32 4294901760, %v1072_v32 }
  0x41   : > { %414 = vmatprep.subr.mxu0 %v9434_v3  ;;  %1047 = vmatprep.subr.mxu1 %v9434_v3  ;;  %v320_v3 = vld [vmem:[%s9401_s1 + $0x98] sm:$0xff]  ;;  %9934 = vst [vmem:[#allocation39_spill] sm:$0xff] %v6392_v40  ;;  %v6412_v33 = vand.u32 4294901760, %v209_v9  ;;  %9943 = vst [vmem:[#allocation45_spill] sm:$0xff] %v6428_v26  ;;  %v6434_v32 = vsub.f32 %v206_v55, %v6392_v40 }
  0x42   : > { %416 = vmatpush2.msra.mxu0 %v6283_v63  ;;  %1053 = vmatpush2.msra.mxu1 %v1052_v36  ;;  %9936 = vst [vmem:[#allocation40_spill] sm:$0xff] %v6400_v46  ;;  %v9937_v63 = vand.u32 4294901760, %v6337_v23  ;;  %v6410_v36 = vsub.f32 %v322_v14, %v6372_v52  ;;  %v1080_v14 = vand.u32 4294901760, %v1079_v51 }
  0x43   : > { %417 = vmatprep.subr.mxu0 %v9935_v1  ;;  %1054 = vmatprep.subr.mxu1 %v9935_v1  ;;  %9939 = vst [vmem:[#allocation42_spill] sm:$0xff] %v6412_v33  ;;  %9944 = vst [vmem:[#allocation46_spill] sm:$0xff] %v6434_v32  ;;  %v6452_v49 = vsub.f32 %v209_v9, %v6412_v33 }
  0x44   : > { %419 = vmatpush2.msra.mxu0 %v6298_v39  ;;  %1060 = vmatpush2.msra.mxu1 %v1059_v29  ;;  %v1086_v27 = vsub.f32 %v6337_v23, %v9937_v63  ;;  %9938 = vst [vmem:[#allocation41_spill] sm:$0xff] %v6410_v36  ;;  %v6417_v29 = vand.u32 4294901760, %v320_v3  ;;  %v6421_v63 = vsub.f32 %v321_v22, %v6378_v56  ;;  %v212_v39 = vld [vmem:[%s6342_s26 + $0x38] sm:$0xff]  ;;  %v9942_v23 = vand.u32 4294901760, %v6360_v44 }
  0x45   : > { %420 = vmatprep.subr.mxu0 %v9935_v1  ;;  %1061 = vmatprep.subr.mxu1 %v9935_v1  ;;  %v9945_v22 = vand.u32 4294901760, %v6365_v13  ;;  %9949 = vst [vmem:[#allocation50_spill] sm:$0xff] %v6452_v49  ;;  %v6454_v61 = vand.u32 4294901760, %v212_v39 }
  0x46   : > { %9940 = vst [vmem:[#allocation43_spill] sm:$0xff] %v6417_v29  ;;  %9941 = vst [vmem:[#allocation44_spill] sm:$0xff] %v6421_v63  ;;  %422 = vmatpush2.msra.mxu0 %v6314_v53  ;;  %1067 = vmatpush2.msra.mxu1 %v1066_v8  ;;  %v1093_v31 = vsub.f32 %v6360_v44, %v9942_v23  ;;  %v6441_v8 = vand.u32 4294901760, %v318_v50  ;;  %v6444_v23 = vsub.f32 %v205_v62, %v6400_v46  ;;  %v211_v44 = vld [vmem:[%s6342_s26 + $0x30] sm:$0xff] }
  0x47   : > { %423 = vmatprep.subr.mxu0 %v9935_v1  ;;  %1068 = vmatprep.subr.mxu1 %v9935_v1  ;;  %v1100_v51 = vsub.f32 %v6365_v13, %v9945_v22  ;;  %v6446_v53 = vand.u32 4294901760, %v208_v38  ;;  %v1087_v55 = vand.u32 4294901760, %v1086_v27  ;;  %9950 = vst [vmem:[#allocation51_spill] sm:$0xff] %v6454_v61  ;;  %v9951_v62 = vand.u32 4294901760, %v6381_v0 }
  0x48   : > { %9946 = vst [vmem:[#allocation47_spill] sm:$0xff] %v6441_v8  ;;  %9947 = vst [vmem:[#allocation48_spill] sm:$0xff] %v6444_v23  ;;  %425 = vmatpush2.msra.mxu0 %v6329_v24  ;;  %1074 = vmatpush2.msra.mxu1 %v1073_v58  ;;  %v6461_v13 = vand.u32 4294901760, %v317_v59  ;;  %v6465_v58 = vsub.f32 %v320_v3, %v6417_v29  ;;  %v1094_v9 = vand.u32 4294901760, %v1093_v31  ;;  %v6472_v37 = vand.u32 4294901760, %v211_v44  ;;  %v214_v3 = vld [vmem:[%s6342_s26 + $0x48] sm:$0xff] }
  0x49   : > { %9948 = vst [vmem:[#allocation49_spill] sm:$0xff] %v6446_v53  ;;  %426 = vmatprep.subr.mxu0 %v9935_v1  ;;  %1075 = vmatprep.subr.mxu1 %v9935_v1  ;;  %v1107_v22 = vsub.f32 %v6381_v0, %v9951_v62  ;;  %v6470_v24 = vsub.f32 %v319_v41, %v6428_v26  ;;  %v215_v62 = vld [vmem:[%s6342_s26 + $0x50] sm:$0xff]  ;;  %v1101_v27 = vand.u32 4294901760, %v1100_v51  ;;  %v9957_v31 = vand.u32 4294901760, %v6410_v36 }
  0x4a   : > { %9952 = vst [vmem:[#allocation52_spill] sm:$0xff] %v6461_v13  ;;  %9953 = vst [vmem:[#allocation53_spill] sm:$0xff] %v6465_v58  ;;  %428 = vmatpush2.msra.mxu0 %v6346_v42  ;;  %1081 = vmatpush2.msra.mxu1 %v1080_v14  ;;  %v6479_v42 = vsub.f32 %v208_v38, %v6446_v53  ;;  %v6487_v7 = vsub.f32 %v318_v50, %v6441_v8  ;;  %v6499_v14 = vand.u32 4294901760, %v215_v62 }
  0x4b   : > { %9954 = vst [vmem:[#allocation54_spill] sm:$0xff] %v6470_v24  ;;  %9955 = vst [vmem:[#allocation55_spill] sm:$0xff] %v6472_v37  ;;  %429 = vmatprep.subr.mxu0 %v9935_v1  ;;  %1082 = vmatprep.subr.mxu1 %v9935_v1  ;;  %v1114_v41 = vsub.f32 %v6410_v36, %v9957_v31  ;;  %v6490_v51 = vsub.f32 %v212_v39, %v6454_v61  ;;  %v1108_v38 = vand.u32 4294901760, %v1107_v22 }
  0x4c   : > { %9956 = vst [vmem:[#allocation56_spill] sm:$0xff] %v6479_v42  ;;  %431 = vmatpush2.msra.mxu0 %v6372_v52  ;;  %1088 = vmatpush2.msra.mxu1 %v1087_v55  ;;  %v9959_v55 = vand.u32 4294901760, %v6421_v63  ;;  %9960 = vst [vmem:[#allocation58_spill] sm:$0xff] %v6499_v14  ;;  %v9961_v50 = vand.u32 4294901760, %v6434_v32  ;;  %v6507_v22 = vsub.f32 %v317_v59, %v6461_v13 }
  0x4d   : > { %9958 = vst [vmem:[#allocation57_spill] sm:$0xff] %v6490_v51  ;;  %432 = vmatprep.subr.mxu0 %v9935_v1  ;;  %1089 = vmatprep.subr.mxu1 %v9935_v1  ;;  %v6510_v0 = vsub.f32 %v211_v44, %v6472_v37  ;;  %v1115_v59 = vand.u32 4294901760, %v1114_v41  ;;  %v9965_v44 = vand.u32 4294901760, %v6452_v49  ;;  %v6534_v41 = vsub.f32 %v215_v62, %v6499_v14 }
  0x4e   : > { %v1121_v52 = vsub.f32 %v6421_v63, %v9959_v55  ;;  %434 = vmatpush2.msra.mxu0 %v6378_v56  ;;  %1095 = vmatpush2.msra.mxu1 %v1094_v9  ;;  %v450_v39 = vsub.f32 %v6434_v32, %v9961_v50  ;;  %9962 = vst [vmem:[#allocation59_spill] sm:$0xff] %v6507_v22  ;;  %v218_v55 = vld [vmem:[%s6342_s26 + $0x68] sm:$0xff]  ;;  %v9963_v9 = vand.u32 4294901760, %v6444_v23  ;;  %v6519_v32 = vand.u32 4294901760, %v214_v3 }
  0x4f   : > { %435 = vmatprep.subr.mxu0 %v9935_v1  ;;  %1096 = vmatprep.subr.mxu1 %v9935_v1  ;;  %v465_v36 = vsub.f32 %v6452_v49, %v9965_v44  ;;  %v9966_v50 = vand.u32 4294901760, %v6465_v58  ;;  %9967 = vst [vmem:[#allocation61_spill] sm:$0xff] %v6534_v41  ;;  %v9969_v63 = vand.u32 4294901760, %v6470_v24  ;;  %v9972_v49 = vand.u32 4294901760, %v6487_v7 }
  0x50   : > { %v456_v31 = vsub.f32 %v6444_v23, %v9963_v9  ;;  %9964 = vst [vmem:[#allocation60_spill] sm:$0xff] %v6519_v32  ;;  %437 = vmatpush2.msra.mxu0 %v6417_v29  ;;  %1102 = vmatpush2.msra.mxu1 %v1101_v27  ;;  %v1122_v9 = vand.u32 4294901760, %v1121_v52  ;;  %v6536_v23 = vand.u32 4294901760, %v218_v55  ;;  %v451_v44 = vand.u32 4294901760, %v450_v39  ;;  %v221_v29 = vld [vmem:[%s6342_s26 + $0x80] sm:$0xff] }
  0x51   : > { %438 = vmatprep.subr.mxu0 %v9935_v1  ;;  %1103 = vmatprep.subr.mxu1 %v9935_v1  ;;  %v1128_v27 = vsub.f32 %v6465_v58, %v9966_v50  ;;  %v1135_v56 = vsub.f32 %v6470_v24, %v9969_v63  ;;  %v9970_v50 = vand.u32 4294901760, %v6479_v42  ;;  %v6551_v39 = vsub.f32 %v214_v3, %v6519_v32  ;;  %v220_v58 = vld [vmem:[%s6342_s26 + $0x78] sm:$0xff] }
  0x52   : > { %9968 = vst [vmem:[#allocation62_spill] sm:$0xff] %v6536_v23  ;;  %440 = vmatpush2.msra.mxu0 %v6428_v26  ;;  %1109 = vmatpush2.msra.mxu1 %v1108_v38  ;;  %v457_v62 = vand.u32 4294901760, %v456_v31  ;;  %v6553_v26 = vand.u32 4294901760, %v217_v57  ;;  %v466_v63 = vand.u32 4294901760, %v465_v36  ;;  %v1142_v52 = vsub.f32 %v6487_v7, %v9972_v49 }
  0x53   : > { %441 = vmatprep.subr.mxu0 %v9935_v1  ;;  %1110 = vmatprep.subr.mxu1 %v9935_v1  ;;  %v471_v38 = vsub.f32 %v6479_v42, %v9970_v50  ;;  %v9973_v31 = vand.u32 4294901760, %v6490_v51  ;;  %v1129_v3 = vand.u32 4294901760, %v1128_v27  ;;  %v6569_v36 = vand.u32 4294901760, %v221_v29  ;;  %v227_v50 = vld [vmem:[%s6342_s26 + $0xb0] sm:$0xff] }
  0x54   : > { %9971 = vst [vmem:[#allocation63_spill] sm:$0xff] %v6553_v26  ;;  %443 = vmatpush2.msra.mxu0 %v6441_v8  ;;  %1116 = vmatpush2.msra.mxu1 %v1115_v59  ;;  %v6567_v59 = vsub.f32 %v218_v55, %v6536_v23  ;;  %v1136_v49 = vand.u32 4294901760, %v1135_v56  ;;  %v9976_v42 = vand.u32 4294901760, %v6510_v0  ;;  %v224_v8 = vld [vmem:[%s6342_s26 + $0x98] sm:$0xff]  ;;  %v1143_v56 = vand.u32 4294901760, %v1142_v52 }
  0x55   : > { %v480_v24 = vsub.f32 %v6490_v51, %v9973_v31  ;;  %444 = vmatprep.subr.mxu0 %v9935_v1  ;;  %1117 = vmatprep.subr.mxu1 %v9935_v1  ;;  %9974 = vst [vmem:[#allocation64_spill] sm:$0xff] %v6569_v36  ;;  %v9975_v31 = vand.u32 4294901760, %v6507_v22  ;;  %v472_v55 = vand.u32 4294901760, %v471_v38  ;;  %v6595_v38 = vand.u32 4294901760, %v224_v8 }
  0x56   : > { %446 = vmatpush2.msra.mxu0 %v6461_v13  ;;  %452 = vmatprep.mubr.f32.mxu0 %v451_v44  ;;  %v486_v27 = vsub.f32 %v6510_v0, %v9976_v42  ;;  %v6581_v13 = vsub.f32 %v217_v57, %v6553_v26  ;;  %v6583_v44 = vand.u32 4294901760, %v220_v58  ;;  %v9978_v42 = vand.u32 4294901760, %v6534_v41 }
  0x57   : > { %v1149_v51 = vsub.f32 %v6507_v22, %v9975_v31  ;;  %1123 = vmatpush2.msra.mxu1 %v1122_v9  ;;  %458 = vmatmul.mubr.f32.vlgmr.msra.gmra.mxu0 %v457_v62  ;;  %v481_v31 = vand.u32 4294901760, %v480_v24  ;;  %v223_v22 = vld [vmem:[%s6342_s26 + $0x90] sm:$0xff]  ;;  %v6593_v57 = vsub.f32 %v221_v29, %v6569_v36  ;;  %9980 = vst [vmem:[#allocation67_spill] sm:$0xff] %v6595_v38 }
  0x58   : > { %9977 = vst [vmem:[#allocation65_spill] sm:$0xff] %v6583_v44  ;;  %1124 = vmatprep.subr.mxu1 %v9935_v1  ;;  %467 = vmatprep.mubr.f32.mxu0 %v466_v63  ;;  %v495_v9 = vsub.f32 %v6534_v41, %v9978_v42  ;;  %v487_v52 = vand.u32 4294901760, %v486_v27  ;;  %v9981_v63 = vand.u32 4294901760, %v6551_v39  ;;  %v9516_v42 = vand.u32 4294901760, %v6581_v13  ;;  %v226_v41 = vld [vmem:[%s6342_s26 + $0xa8] sm:$0xff] }
  0x59   : > { %1130 = vmatpush2.msra.mxu1 %v1129_v3  ;;  %1377 = vmatprep.subr.mxu0 %v9935_v1  ;;  %9979 = vst [vmem:[#allocation66_spill] sm:$0xff] %v6593_v57  ;;  %v1150_v24 = vand.u32 4294901760, %v1149_v51  ;;  %v6605_v29 = vsub.f32 %v220_v58, %v6583_v44  ;;  %v6607_v62 = vand.u32 4294901760, %v223_v22  ;;  %v6611_v51 = vand.u32 4294901760, %v227_v50 }
  0x5a   : > { %1131 = vmatprep.subr.mxu1 %v9935_v1  ;;  %1153 = vmatprep.mubr.f32.mxu1 %v6392_v40  ;;  %v501_v3 = vsub.f32 %v6551_v39, %v9981_v63  ;;  %v9985_v27 = vand.u32 4294901760, %v6567_v59  ;;  %v6619_v63 = vsub.f32 %v224_v8, %v6595_v38 }
  0x5b   : > { %1137 = vmatpush2.msra.mxu1 %v1136_v49  ;;  %473 = vmatmul.mubr.f32.gmra.mxu0 %v472_v55  ;;  %9982 = vst [vmem:[#allocation68_spill] sm:$0xff] %v6605_v29  ;;  %9983 = vst [vmem:[#allocation69_spill] sm:$0xff] %v6607_v62  ;;  %v496_v49 = vand.u32 4294901760, %v495_v9  ;;  %v6631_v8 = vsub.f32 %v223_v22, %v6607_v62  ;;  %v6636_v40 = vsub.f32 %v227_v50, %v6611_v51 }
  0x5c   : > { %1138 = vmatprep.subr.mxu1 %v9935_v1  ;;  %482 = vmatprep.mubr.f32.mxu0 %v481_v31  ;;  %9984 = vst [vmem:[#allocation70_spill] sm:$0xff] %v6611_v51  ;;  %v510_v55 = vsub.f32 %v6567_v59, %v9985_v27  ;;  %9986 = vst [vmem:[#allocation71_spill] sm:$0xff] %v6619_v63  ;;  %v6623_v31 = vand.u32 4294901760, %v226_v41  ;;  %v502_v9 = vand.u32 4294901760, %v501_v3  ;;  %v9990_v3 = vand.u32 4294901760, %v6593_v57 }
  0x5d   : > { %1144 = vmatpush2.msra.mxu1 %v1143_v56  ;;  %1380 = vmatpush1.msra.mxu0 %v6041_v15  ;;  %v230_v56 = vld [vmem:[%s6342_s26 + $0xc8] sm:$0xff]  ;;  %v516_v27 = vsub.f32 %v6581_v13, %v9516_v42  ;;  %9988 = vst [vmem:[#allocation73_spill] sm:$0xff] %v6631_v8  ;;  %9989 = vst [vmem:[#allocation74_spill] sm:$0xff] %v6636_v40 }
  0x5e   : > { %1145 = vmatprep.subr.mxu1 %v9935_v1  ;;  %1381 = vmatprep.subr.mxu0 %v9935_v1  ;;  %9987 = vst [vmem:[#allocation72_spill] sm:$0xff] %v6623_v31  ;;  %v525_v42 = vsub.f32 %v6593_v57, %v9990_v3  ;;  %v6644_v58 = vand.u32 4294901760, %v230_v56  ;;  %v6649_v50 = vsub.f32 %v226_v41, %v6623_v31  ;;  %v10001_v41 = vand.u32 4294901760, %v6636_v40 }
  0x5f   : > { %1151 = vmatpush2.msra.mxu1 %v1150_v24  ;;  %488 = vmatmul.mubr.f32.gmra.mxu0 %v487_v52  ;;  %v229_v24 = vld [vmem:[%s6342_s26 + $0xc0] sm:$0xff]  ;;  %v511_v52 = vand.u32 4294901760, %v510_v55  ;;  %v9993_v55 = vand.u32 4294901760, %v6605_v29 }
  0x60   : > { %1155 = vmatmul.mubr.f32.vlgmr.msra.gmra.mxu1 %v6400_v46  ;;  %1794 = vmatprep.subr.mxu1 %v9935_v1  ;;  %9991 = vst [vmem:[#allocation75_spill] sm:$0xff] %v6644_v58  ;;  %9992 = vst [vmem:[#allocation76_spill] sm:$0xff] %v6649_v50  ;;  %v233_v46 = vld [vmem:[%s6342_s26 + $0xe0] sm:$0xff]  ;;  %v6657_v57 = vand.u32 4294901760, %v229_v24  ;;  %v6668_v22 = vsub.f32 %v230_v56, %v6644_v58 }
  0x61   : > { %1796 = vmatpush1.msra.mxu1 %v6011_v4  ;;  %497 = vmatprep.mubr.f32.mxu0 %v496_v49  ;;  %v517_v49 = vand.u32 4294901760, %v516_v27  ;;  %v531_v3 = vsub.f32 %v6605_v29, %v9993_v55  ;;  %v9995_v27 = vand.u32 4294901760, %v6619_v63  ;;  %v6670_v29 = vand.u32 4294901760, %v233_v46 }
  0x62   : > { %1160 = vmatprep.mubr.f32.mxu1 %v6412_v33  ;;  %1384 = vmatpush1.msra.mxu0 %v6044_v16  ;;  %9994 = vst [vmem:[#allocation77_spill] sm:$0xff] %v6657_v57  ;;  %v232_v33 = vld [vmem:[%s6342_s26 + $0xd8] sm:$0xff]  ;;  %9996 = vst [vmem:[#allocation78_spill] sm:$0xff] %v6668_v22  ;;  %v6681_v56 = vsub.f32 %v229_v24, %v6657_v57 }
  0x63   : > { %503 = vmatmul.mubr.f32.gmra.mxu0 %v502_v9  ;;  %1797 = vmatprep.subr.mxu1 %v9935_v1  ;;  %v526_v9 = vand.u32 4294901760, %v525_v42  ;;  %v540_v55 = vsub.f32 %v6619_v63, %v9995_v27  ;;  %9997 = vst [vmem:[#allocation79_spill] sm:$0xff] %v6670_v29  ;;  %v532_v42 = vand.u32 4294901760, %v531_v3  ;;  %v6683_v63 = vand.u32 4294901760, %v232_v33 }
  0x64   : > { %1162 = vmatmul.mubr.f32.gmra.mxu1 %v6446_v53  ;;  %1385 = vmatprep.subr.mxu0 %v9935_v1  ;;  %v236_v53 = vld [vmem:[%s6342_s26 + $0xf8] sm:$0xff]  ;;  %9999 = vst [vmem:[#allocation80_spill] sm:$0xff] %v6681_v56  ;;  %v6694_v24 = vsub.f32 %v233_v46, %v6670_v29 }
  0x65   : > { %1799 = vmatpush1.msra.mxu1 %v6013_v5  ;;  %512 = vmatprep.mubr.f32.mxu0 %v511_v52  ;;  %v9998_v52 = vand.u32 4294901760, %v6631_v8  ;;  %10000 = vst [vmem:[#allocation81_spill] sm:$0xff] %v6683_v63  ;;  %v541_v3 = vand.u32 4294901760, %v540_v55  ;;  %v6707_v46 = vsub.f32 %v232_v33, %v6683_v63 }
  0x66   : > { %1167 = vmatprep.mubr.f32.mxu1 %v6454_v61  ;;  %1388 = vmatpush1.msra.mxu0 %v6049_v18  ;;  %v235_v61 = vld [vmem:[%s6342_s26 + $0xf0] sm:$0xff] }
  0x67   : > { %518 = vmatmul.mubr.f32.gmra.mxu0 %v517_v49  ;;  %1800 = vmatprep.subr.mxu1 %v9935_v1  ;;  %v546_v27 = vsub.f32 %v6631_v8, %v9998_v52  ;;  %v555_v49 = vsub.f32 %v6636_v40, %v10001_v41  ;;  %v6696_v8 = vand.u32 4294901760, %v236_v53  ;;  %v239_v40 = vld [vmem:[%s6342_s26 + $0x110] sm:$0xff]  ;;  %10004 = vst [vmem:[#allocation83_spill] sm:$0xff] %v6707_v46  ;;  %v6709_v52 = vand.u32 4294901760, %v235_v61 }
  0x68   : > { %1169 = vmatmul.mubr.f32.gmra.mxu1 %v6472_v37  ;;  %1389 = vmatprep.subr.mxu0 %v9935_v1  ;;  %v10003_v37 = vand.u32 4294901760, %v6649_v50  ;;  %v6722_v55 = vand.u32 4294901760, %v239_v40 }
  0x69   : > { %1802 = vmatpush1.msra.mxu1 %v6015_v6  ;;  %527 = vmatprep.mubr.f32.mxu0 %v526_v9  ;;  %10002 = vst [vmem:[#allocation82_spill] sm:$0xff] %v6696_v8  ;;  %v547_v9 = vand.u32 4294901760, %v546_v27  ;;  %10005 = vst [vmem:[#allocation84_spill] sm:$0xff] %v6709_v52  ;;  %v6720_v33 = vsub.f32 %v236_v53, %v6696_v8  ;;  %v6733_v53 = vsub.f32 %v235_v61, %v6709_v52 }
  0x6a   : > { %1174 = vmatprep.mubr.f32.mxu1 %v6499_v14  ;;  %1392 = vmatpush1.msra.mxu0 %v6056_v20  ;;  %v561_v41 = vsub.f32 %v6649_v50, %v10003_v37  ;;  %v556_v14 = vand.u32 4294901760, %v555_v49  ;;  %v238_v20 = vld [vmem:[%s6342_s26 + $0x108] sm:$0xff]  ;;  %v10006_v37 = vand.u32 4294901760, %v6668_v22  ;;  %10008 = vst [vmem:[#allocation86_spill] sm:$0xff] %v6722_v55  ;;  %v241_v50 = vld [vmem:[%s6342_s26 + $0x120] sm:$0xff] }
  0x6b   : > { %533 = vmatmul.mubr.f32.gmra.mxu0 %v532_v42  ;;  %1803 = vmatprep.subr.mxu1 %v9935_v1  ;;  %10007 = vst [vmem:[#allocation85_spill] sm:$0xff] %v6720_v33  ;;  %10010 = vst [vmem:[#allocation87_spill] sm:$0xff] %v6733_v53 }
  0x6c   : > { %1176 = vmatmul.mubr.f32.gmra.mxu1 %v6519_v32  ;;  %1393 = vmatprep.subr.mxu0 %v9935_v1  ;;  %v570_v42 = vsub.f32 %v6668_v22, %v10006_v37  ;;  %v242_v32 = vld [vmem:[%s6342_s26 + $0x128] sm:$0xff]  ;;  %v562_v49 = vand.u32 4294901760, %v561_v41  ;;  %v6735_v22 = vand.u32 4294901760, %v238_v20 }
  0x6d   : > { %1805 = vmatpush1.msra.mxu1 %v6027_v10  ;;  %542 = vmatprep.mubr.f32.mxu0 %v541_v3  ;;  %v10009_v3 = vand.u32 4294901760, %v6681_v56  ;;  %v6740_v41 = vand.u32 4294901760, %v242_v32 }
  0x6e   : > { %1181 = vmatprep.mubr.f32.mxu1 %v6536_v23  ;;  %1396 = vmatpush1.msra.mxu0 %v6059_v21  ;;  %10011 = vst [vmem:[#allocation88_spill] sm:$0xff] %v6735_v22  ;;  %v6748_v23 = vsub.f32 %v239_v40, %v6722_v55  ;;  %v6761_v40 = vsub.f32 %v238_v20, %v6735_v22 }
  0x6f   : > { %548 = vmatmul.mubr.f32.gmra.mxu0 %v547_v9  ;;  %1806 = vmatprep.subr.mxu1 %v9935_v1  ;;  %v576_v37 = vsub.f32 %v6681_v56, %v10009_v3  ;;  %10012 = vst [vmem:[#allocation89_spill] sm:$0xff] %v6740_v41  ;;  %v571_v9 = vand.u32 4294901760, %v570_v42  ;;  %v10013_v3 = vand.u32 4294901760, %v6694_v24  ;;  %v245_v56 = vld [vmem:[%s6342_s26 + $0x140] sm:$0xff]  ;;  %v10016_v42 = vand.u32 4294901760, %v6707_v46 }
  0x70   : > { %1183 = vmatmul.mubr.f32.gmra.mxu1 %v6553_v26  ;;  %1397 = vmatprep.subr.mxu0 %v9935_v1  ;;  %10014 = vst [vmem:[#allocation90_spill] sm:$0xff] %v6748_v23  ;;  %v6752_v26 = vand.u32 4294901760, %v241_v50  ;;  %10017 = vst [vmem:[#allocation92_spill] sm:$0xff] %v6761_v40  ;;  %v6774_v61 = vand.u32 4294901760, %v245_v56 }
  0x71   : > { %1808 = vmatpush1.msra.mxu1 %v6029_v11  ;;  %557 = vmatprep.mubr.f32.mxu0 %v556_v14  ;;  %v585_v27 = vsub.f32 %v6694_v24, %v10013_v3  ;;  %v577_v14 = vand.u32 4294901760, %v576_v37  ;;  %v591_v3 = vsub.f32 %v6707_v46, %v10016_v42  ;;  %v10019_v42 = vand.u32 4294901760, %v6720_v33 }
  0x72   : > { %1188 = vmatprep.mubr.f32.mxu1 %v6569_v36  ;;  %1400 = vmatpush1.msra.mxu0 %v6076_v30  ;;  %10015 = vst [vmem:[#allocation91_spill] sm:$0xff] %v6752_v26  ;;  %v6766_v36 = vsub.f32 %v242_v32, %v6740_v41  ;;  %10020 = vst [vmem:[#allocation94_spill] sm:$0xff] %v6774_v61  ;;  %v6779_v32 = vsub.f32 %v241_v50, %v6752_v26 }
  0x73   : > { %563 = vmatmul.mubr.f32.gmra.mxu0 %v562_v49  ;;  %1809 = vmatprep.subr.mxu1 %v9935_v1  ;;  %v244_v49 = vld [vmem:[%s6342_s26 + $0x138] sm:$0xff]  ;;  %v586_v37 = vand.u32 4294901760, %v585_v27  ;;  %v600_v46 = vsub.f32 %v6720_v33, %v10019_v42  ;;  %v592_v27 = vand.u32 4294901760, %v591_v3  ;;  %v10024_v3 = vand.u32 4294901760, %v6748_v23 }
  0x74   : > { %1190 = vmatmul.mubr.f32.gmra.mxu1 %v6583_v44  ;;  %1401 = vmatprep.subr.mxu0 %v9935_v1  ;;  %10018 = vst [vmem:[#allocation93_spill] sm:$0xff] %v6766_v36  ;;  %10021 = vst [vmem:[#allocation95_spill] sm:$0xff] %v6779_v32  ;;  %v248_v44 = vld [vmem:[%s6342_s26 + $0x158] sm:$0xff]  ;;  %v6787_v33 = vand.u32 4294901760, %v244_v49  ;;  %v6798_v20 = vsub.f32 %v245_v56, %v6774_v61  ;;  %v10030_v50 = vand.u32 4294901760, %v6766_v36 }
  0x75   : > { %1811 = vmatpush1.msra.mxu1 %v6031_v12  ;;  %572 = vmatprep.mubr.f32.mxu0 %v571_v9  ;;  %v10022_v9 = vand.u32 4294901760, %v6733_v53 }
  0x76   : > { %1195 = vmatprep.mubr.f32.mxu1 %v6595_v38  ;;  %1404 = vmatpush1.msra.mxu0 %v6089_v34  ;;  %10023 = vst [vmem:[#allocation96_spill] sm:$0xff] %v6787_v33  ;;  %v247_v38 = vld [vmem:[%s6342_s26 + $0x150] sm:$0xff]  ;;  %10025 = vst [vmem:[#allocation97_spill] sm:$0xff] %v6798_v20  ;;  %v6811_v56 = vsub.f32 %v244_v49, %v6787_v33 }
  0x77   : > { %578 = vmatmul.mubr.f32.gmra.mxu0 %v577_v14  ;;  %1812 = vmatprep.subr.mxu1 %v9935_v1  ;;  %v606_v42 = vsub.f32 %v6733_v53, %v10022_v9  ;;  %v601_v14 = vand.u32 4294901760, %v600_v46  ;;  %v615_v9 = vsub.f32 %v6748_v23, %v10024_v3  ;;  %v6800_v53 = vand.u32 4294901760, %v248_v44 }
  0x78   : > { %1197 = vmatmul.mubr.f32.gmra.mxu1 %v6607_v62  ;;  %1405 = vmatprep.subr.mxu0 %v9935_v1  ;;  %v251_v62 = vld [vmem:[%s6342_s26 + $0x170] sm:$0xff]  ;;  %10028 = vst [vmem:[#allocation99_spill] sm:$0xff] %v6811_v56  ;;  %v6813_v23 = vand.u32 4294901760, %v247_v38 }
  0x79   : > { %1814 = vmatpush1.msra.mxu1 %v6046_v17  ;;  %587 = vmatprep.mubr.f32.mxu0 %v586_v37  ;;  %10026 = vst [vmem:[#allocation98_spill] sm:$0xff] %v6800_v53  ;;  %v607_v46 = vand.u32 4294901760, %v606_v42  ;;  %v10027_v37 = vand.u32 4294901760, %v6761_v40  ;;  %v616_v42 = vand.u32 4294901760, %v615_v9  ;;  %v6824_v49 = vsub.f32 %v248_v44, %v6800_v53 }
  0x7a   : > { %1202 = vmatprep.mubr.f32.mxu1 %v6611_v51  ;;  %1408 = vmatpush1.msra.mxu0 %v6110_v43  ;;  %10029 = vst [vmem:[#allocation100_spill] sm:$0xff] %v6813_v23  ;;  %v250_v51 = vld [vmem:[%s6342_s26 + $0x168] sm:$0xff]  ;;  %v6837_v44 = vsub.f32 %v247_v38, %v6813_v23 }
  0x7b   : > { %593 = vmatmul.mubr.f32.gmra.mxu0 %v592_v27  ;;  %1815 = vmatprep.subr.mxu1 %v9935_v1  ;;  %v621_v3 = vsub.f32 %v6761_v40, %v10027_v37  ;;  %v630_v27 = vsub.f32 %v6766_v36, %v10030_v50  ;;  %10031 = vst [vmem:[#allocation101_spill] sm:$0xff] %v6824_v49  ;;  %v6826_v40 = vand.u32 4294901760, %v251_v62  ;;  %v254_v36 = vld [vmem:[%s6342_s26 + $0x188] sm:$0xff]  ;;  %v6839_v37 = vand.u32 4294901760, %v250_v51 }
  0x7c   : > { %1204 = vmatmul.mubr.f32.gmra.mxu1 %v6623_v31  ;;  %1409 = vmatprep.subr.mxu0 %v9935_v1  ;;  %v10033_v31 = vand.u32 4294901760, %v6779_v32  ;;  %10034 = vst [vmem:[#allocation103_spill] sm:$0xff] %v6837_v44  ;;  %v6852_v9 = vand.u32 4294901760, %v254_v36 }
  0x7d   : > { %1817 = vmatpush1.msra.mxu1 %v6065_v25  ;;  %602 = vmatprep.mubr.f32.mxu0 %v601_v14  ;;  %10032 = vst [vmem:[#allocation102_spill] sm:$0xff] %v6826_v40  ;;  %v622_v14 = vand.u32 4294901760, %v621_v3  ;;  %10035 = vst [vmem:[#allocation104_spill] sm:$0xff] %v6839_v37  ;;  %v6850_v38 = vsub.f32 %v251_v62, %v6826_v40  ;;  %v6863_v62 = vsub.f32 %v250_v51, %v6839_v37 }
  0x7e   : > { %1209 = vmatprep.mubr.f32.mxu1 %v6644_v58  ;;  %1412 = vmatpush1.msra.mxu0 %v6117_v47  ;;  %v636_v50 = vsub.f32 %v6779_v32, %v10033_v31  ;;  %v631_v58 = vand.u32 4294901760, %v630_v27  ;;  %v253_v47 = vld [vmem:[%s6342_s26 + $0x180] sm:$0xff]  ;;  %v10036_v31 = vand.u32 4294901760, %v6798_v20  ;;  %10038 = vst [vmem:[#allocation106_spill] sm:$0xff] %v6852_v9  ;;  %v256_v32 = vld [vmem:[%s6342_s26 + $0x198] sm:$0xff] }
  0x7f   : > { %608 = vmatmul.mubr.f32.gmra.mxu0 %v607_v46  ;;  %1818 = vmatprep.subr.mxu1 %v9935_v1  ;;  %10037 = vst [vmem:[#allocation105_spill] sm:$0xff] %v6850_v38  ;;  %10040 = vst [vmem:[#allocation107_spill] sm:$0xff] %v6863_v62 }
  0x80   : > { %1211 = vmatmul.mubr.f32.gmra.mxu1 %v6657_v57  ;;  %1413 = vmatprep.subr.mxu0 %v9935_v1  ;;  %v645_v46 = vsub.f32 %v6798_v20, %v10036_v31  ;;  %v257_v57 = vld [vmem:[%s6342_s26 + $0x1a0] sm:$0xff]  ;;  %v637_v27 = vand.u32 4294901760, %v636_v50  ;;  %v6865_v20 = vand.u32 4294901760, %v253_v47 }
  0x81   : > { %1820 = vmatpush1.msra.mxu1 %v6072_v28  ;;  %617 = vmatprep.mubr.f32.mxu0 %v616_v42  ;;  %v10039_v42 = vand.u32 4294901760, %v6811_v56  ;;  %v6870_v50 = vand.u32 4294901760, %v257_v57 }
  0x82   : > { %1216 = vmatprep.mubr.f32.mxu1 %v6670_v29  ;;  %1416 = vmatpush1.msra.mxu0 %v6135_v54  ;;  %10041 = vst [vmem:[#allocation108_spill] sm:$0xff] %v6865_v20  ;;  %v6878_v29 = vsub.f32 %v254_v36, %v6852_v9  ;;  %v6891_v36 = vsub.f32 %v253_v47, %v6865_v20 }
  0x83   : > { %623 = vmatmul.mubr.f32.gmra.mxu0 %v622_v14  ;;  %1821 = vmatprep.subr.mxu1 %v9935_v1  ;;  %v651_v31 = vsub.f32 %v6811_v56, %v10039_v42  ;;  %10042 = vst [vmem:[#allocation109_spill] sm:$0xff] %v6870_v50  ;;  %v646_v14 = vand.u32 4294901760, %v645_v46  ;;  %v10043_v42 = vand.u32 4294901760, %v6824_v49  ;;  %v260_v56 = vld [vmem:[%s6342_s26 + $0x1b8] sm:$0xff]  ;;  %v10046_v46 = vand.u32 4294901760, %v6837_v44 }
  0x84   : > { %1218 = vmatmul.mubr.f32.gmra.mxu1 %v6683_v63  ;;  %1417 = vmatprep.subr.mxu0 %v9935_v1  ;;  %10044 = vst [vmem:[#allocation110_spill] sm:$0xff] %v6878_v29  ;;  %v6882_v63 = vand.u32 4294901760, %v256_v32  ;;  %10047 = vst [vmem:[#allocation112_spill] sm:$0xff] %v6891_v36  ;;  %v6904_v51 = vand.u32 4294901760, %v260_v56 }
  0x85   : > { %1823 = vmatpush1.msra.mxu1 %v6092_v35  ;;  %632 = vmatprep.mubr.f32.mxu0 %v631_v58  ;;  %v660_v3 = vsub.f32 %v6824_v49, %v10043_v42  ;;  %v652_v58 = vand.u32 4294901760, %v651_v31  ;;  %v666_v42 = vsub.f32 %v6837_v44, %v10046_v46  ;;  %v10049_v46 = vand.u32 4294901760, %v6850_v38 }
  0x86   : > { %1223 = vmatprep.mubr.f32.mxu1 %v6696_v8  ;;  %1420 = vmatpush1.msra.mxu0 %v6150_v60  ;;  %10045 = vst [vmem:[#allocation111_spill] sm:$0xff] %v6882_v63  ;;  %v6896_v8 = vsub.f32 %v257_v57, %v6870_v50  ;;  %10050 = vst [vmem:[#allocation114_spill] sm:$0xff] %v6904_v51  ;;  %v6909_v57 = vsub.f32 %v256_v32, %v6882_v63 }
  0x87   : > { %638 = vmatmul.mubr.f32.gmra.mxu0 %v637_v27  ;;  %1824 = vmatprep.subr.mxu1 %v9935_v1  ;;  %v259_v27 = vld [vmem:[%s6342_s26 + $0x1b0] sm:$0xff]  ;;  %v661_v31 = vand.u32 4294901760, %v660_v3  ;;  %v675_v44 = vsub.f32 %v6850_v38, %v10049_v46  ;;  %v667_v3 = vand.u32 4294901760, %v666_v42  ;;  %v10054_v42 = vand.u32 4294901760, %v6878_v29 }
  0x88   : > { %1225 = vmatmul.mubr.f32.gmra.mxu1 %v6709_v52  ;;  %1421 = vmatprep.subr.mxu0 %v9935_v1  ;;  %10048 = vst [vmem:[#allocation113_spill] sm:$0xff] %v6896_v8  ;;  %10051 = vst [vmem:[#allocation115_spill] sm:$0xff] %v6909_v57  ;;  %v263_v52 = vld [vmem:[%s6342_s26 + $0x1d0] sm:$0xff]  ;;  %v6917_v38 = vand.u32 4294901760, %v259_v27  ;;  %v6928_v47 = vsub.f32 %v260_v56, %v6904_v51  ;;  %v10060_v32 = vand.u32 4294901760, %v6896_v8  ;;  %v10065_v49 = vand.u32 4294901760, %v6909_v57 }
  0x89   : > { %1826 = vmatpush1.msra.mxu1 %v6113_v45  ;;  %647 = vmatprep.mubr.f32.mxu0 %v646_v14  ;;  %v10052_v14 = vand.u32 4294901760, %v6863_v62 }
  0x8a   : > { %1230 = vmatprep.mubr.f32.mxu1 %v6722_v55  ;;  %1424 = vmatpush1.msra.mxu0 %v6165_v2  ;;  %10053 = vst [vmem:[#allocation116_spill] sm:$0xff] %v6917_v38  ;;  %v262_v55 = vld [vmem:[%s6342_s26 + $0x1c8] sm:$0xff]  ;;  %10055 = vst [vmem:[#allocation117_spill] sm:$0xff] %v6928_v47  ;;  %v6941_v56 = vsub.f32 %v259_v27, %v6917_v38 }
  0x8b   : > { %653 = vmatmul.mubr.f32.gmra.mxu0 %v652_v58  ;;  %1827 = vmatprep.subr.mxu1 %v9935_v1  ;;  %v681_v46 = vsub.f32 %v6863_v62, %v10052_v14  ;;  %v676_v58 = vand.u32 4294901760, %v675_v44  ;;  %v690_v14 = vsub.f32 %v6878_v29, %v10054_v42  ;;  %v6930_v62 = vand.u32 4294901760, %v263_v52 }
  0x8c   : > { %1232 = vmatmul.mubr.f32.gmra.mxu1 %v6735_v22  ;;  %1425 = vmatprep.subr.mxu0 %v9935_v1  ;;  %v266_v22 = vld [vmem:[%s6342_s26 + $0x1e8] sm:$0xff]  ;;  %10058 = vst [vmem:[#allocation119_spill] sm:$0xff] %v6941_v56  ;;  %v6943_v29 = vand.u32 4294901760, %v262_v55 }
  0x8d   : > { %1829 = vmatpush1.msra.mxu1 %v6121_v48  ;;  %662 = vmatprep.mubr.f32.mxu0 %v661_v31  ;;  %10056 = vst [vmem:[#allocation118_spill] sm:$0xff] %v6930_v62  ;;  %v682_v44 = vand.u32 4294901760, %v681_v46  ;;  %v10057_v31 = vand.u32 4294901760, %v6891_v36  ;;  %v10061_v46 = vld [vmem:[#allocation9_spill] sm:$0xff]  ;;  %v6954_v27 = vsub.f32 %v263_v52, %v6930_v62  ;;  %v275_v48 = vld [vmem:[%s6342_s26 + $0x230] sm:$0xff] }
  0x8e   : > { %1237 = vmatprep.mubr.f32.mxu1 %v6740_v41  ;;  %1428 = vmatpush1.msra.mxu0 %v6180_v19  ;;  %10059 = vst [vmem:[#allocation120_spill] sm:$0xff] %v6943_v29  ;;  %v265_v41 = vld [vmem:[%s6342_s26 + $0x1e0] sm:$0xff]  ;;  %v691_v19 = vand.u32 4294901760, %v690_v14  ;;  %v6967_v52 = vsub.f32 %v262_v55, %v6943_v29 }
  0x8f   : > { %668 = vmatmul.mubr.f32.gmra.mxu0 %v667_v3  ;;  %1830 = vmatprep.subr.mxu1 %v9935_v1  ;;  %v696_v42 = vsub.f32 %v6891_v36, %v10057_v31  ;;  %v705_v3 = vsub.f32 %v6896_v8, %v10060_v32  ;;  %10062 = vst [vmem:[#allocation121_spill] sm:$0xff] %v6954_v27  ;;  %v6956_v36 = vand.u32 4294901760, %v266_v22  ;;  %v269_v8 = vld [vmem:[%s6342_s26 + $0x200] sm:$0xff]  ;;  %v6969_v31 = vand.u32 4294901760, %v265_v41 }
  0x90   : > { %1239 = vmatmul.mubr.f32.gmra.mxu1 %v6752_v26  ;;  %1429 = vmatprep.subr.mxu0 %v9935_v1  ;;  %v10064_v26 = vld [vmem:[#allocation14_spill] sm:$0xff]  ;;  %v711_v32 = vsub.f32 %v6909_v57, %v10065_v49  ;;  %10066 = vst [vmem:[#allocation123_spill] sm:$0xff] %v6967_v52  ;;  %v6982_v57 = vand.u32 4294901760, %v269_v8 }
  0x91   : > { %1832 = vmatpush1.msra.mxu1 %v10061_v46  ;;  %677 = vmatprep.mubr.f32.mxu0 %v676_v58  ;;  %10063 = vst [vmem:[#allocation122_spill] sm:$0xff] %v6956_v36  ;;  %v697_v58 = vand.u32 4294901760, %v696_v42  ;;  %10067 = vst [vmem:[#allocation124_spill] sm:$0xff] %v6969_v31  ;;  %v10068_v49 = vld [vmem:[#allocation10_spill] sm:$0xff]  ;;  %v6980_v55 = vsub.f32 %v266_v22, %v6956_v36  ;;  %v6993_v22 = vsub.f32 %v265_v41, %v6969_v31 }
  0x92   : > { %1244 = vmatprep.mubr.f32.mxu1 %v6774_v61  ;;  %1432 = vmatpush1.msra.mxu0 %v10064_v26  ;;  %v706_v61 = vand.u32 4294901760, %v705_v3  ;;  %v268_v26 = vld [vmem:[%s6342_s26 + $0x1f8] sm:$0xff]  ;;  %10071 = vst [vmem:[#allocation126_spill] sm:$0xff] %v6982_v57  ;;  %v10072_v3 = vld [vmem:[#allocation16_spill] sm:$0xff]  ;;  %v712_v46 = vand.u32 4294901760, %v711_v32  ;;  %v7034_v41 = vand.u32 4294901760, %v275_v48 }
  0x93   : > { %683 = vmatmul.mubr.f32.gmra.mxu0 %v682_v44  ;;  %1833 = vmatprep.subr.mxu1 %v9935_v1  ;;  %v10069_v44 = vand.u32 4294901760, %v6928_v47  ;;  %10070 = vst [vmem:[#allocation125_spill] sm:$0xff] %v6980_v55  ;;  %10074 = vst [vmem:[#allocation127_spill] sm:$0xff] %v6993_v22 }
  0x94   : > { %1246 = vmatmul.mubr.f32.gmra.mxu1 %v6787_v33  ;;  %1433 = vmatprep.subr.mxu0 %v9935_v1  ;;  %v272_v33 = vld [vmem:[%s6342_s26 + $0x218] sm:$0xff]  ;;  %10087 = vst [vmem:[#allocation134_spill] sm:$0xff] %v7034_v41 }
  0x95   : > { %1835 = vmatpush1.msra.mxu1 %v10068_v49  ;;  %692 = vmatprep.mubr.f32.mxu0 %v691_v19  ;;  %v720_v42 = vsub.f32 %v6928_v47, %v10069_v44  ;;  %v10073_v19 = vand.u32 4294901760, %v6941_v56  ;;  %v6995_v47 = vand.u32 4294901760, %v268_v26  ;;  %v271_v49 = vld [vmem:[%s6342_s26 + $0x210] sm:$0xff]  ;;  %v7000_v32 = vand.u32 4294901760, %v272_v33 }
  0x96   : > { %1251 = vmatprep.mubr.f32.mxu1 %v6800_v53  ;;  %1436 = vmatpush1.msra.mxu0 %v10072_v3  ;;  %v7012_v3 = vand.u32 4294901760, %v271_v49 }
  0x97   : > { %698 = vmatmul.mubr.f32.gmra.mxu0 %v697_v58  ;;  %1836 = vmatprep.subr.mxu1 %v9935_v1  ;;  %v726_v44 = vsub.f32 %v6941_v56, %v10073_v19  ;;  %10075 = vst [vmem:[#allocation128_spill] sm:$0xff] %v6995_v47  ;;  %10076 = vst [vmem:[#allocation129_spill] sm:$0xff] %v7000_v32  ;;  %v10077_v58 = vld [vmem:[#allocation11_spill] sm:$0xff]  ;;  %v721_v53 = vand.u32 4294901760, %v720_v42  ;;  %v10078_v19 = vand.u32 4294901760, %v6954_v27  ;;  %v10082_v42 = vand.u32 4294901760, %v6967_v52 }
  0x98   : > { %1253 = vmatmul.mubr.f32.gmra.mxu1 %v6813_v23  ;;  %1437 = vmatprep.subr.mxu0 %v9935_v1  ;;  %v7008_v56 = vsub.f32 %v269_v8, %v6982_v57  ;;  %v10080_v23 = vld [vmem:[#allocation18_spill] sm:$0xff]  ;;  %10081 = vst [vmem:[#allocation131_spill] sm:$0xff] %v7012_v3  ;;  %v7021_v8 = vsub.f32 %v268_v26, %v6995_v47 }
  0x99   : > { %1838 = vmatpush1.msra.mxu1 %v10077_v58  ;;  %707 = vmatprep.mubr.f32.mxu0 %v706_v61  ;;  %v735_v14 = vsub.f32 %v6954_v27, %v10078_v19  ;;  %v727_v61 = vand.u32 4294901760, %v726_v44  ;;  %v741_v19 = vsub.f32 %v6967_v52, %v10082_v42  ;;  %v10085_v27 = vld [vmem:[#allocation13_spill] sm:$0xff]  ;;  %v10086_v42 = vand.u32 4294901760, %v6980_v55  ;;  %v290_v58 = vld [vmem:[%s6342_s26 + $0x2a8] sm:$0xff] }
  0x9a   : > { %10079 = vst [vmem:[#allocation130_spill] sm:$0xff] %v7008_v56  ;;  %1258 = vmatprep.mubr.f32.mxu1 %v6826_v40  ;;  %1440 = vmatpush1.msra.mxu0 %v10080_v23  ;;  %10083 = vst [vmem:[#allocation132_spill] sm:$0xff] %v7021_v8  ;;  %v7026_v40 = vsub.f32 %v272_v33, %v7000_v32  ;;  %v7039_v33 = vsub.f32 %v271_v49, %v7012_v3  ;;  %v278_v23 = vld [vmem:[%s6342_s26 + $0x248] sm:$0xff] }
  0x9b   : > { %713 = vmatmul.mubr.f32.gmra.mxu0 %v712_v46  ;;  %1839 = vmatprep.subr.mxu1 %v9935_v1  ;;  %v274_v46 = vld [vmem:[%s6342_s26 + $0x228] sm:$0xff]  ;;  %v736_v44 = vand.u32 4294901760, %v735_v14  ;;  %v750_v52 = vsub.f32 %v6980_v55, %v10086_v42  ;;  %v10090_v14 = vand.u32 4294901760, %v6993_v22  ;;  %v7058_v26 = vsub.f32 %v275_v48, %v7034_v41 }
  0x9c   : > { %1260 = vmatmul.mubr.f32.gmra.mxu1 %v6839_v37  ;;  %1441 = vmatprep.subr.mxu0 %v9935_v1  ;;  %10084 = vst [vmem:[#allocation133_spill] sm:$0xff] %v7026_v40  ;;  %v10088_v37 = vld [vmem:[#allocation20_spill] sm:$0xff]  ;;  %10089 = vst [vmem:[#allocation135_spill] sm:$0xff] %v7039_v33  ;;  %v7047_v55 = vand.u32 4294901760, %v274_v46  ;;  %v10100_v49 = vand.u32 4294901760, %v7026_v40 }
  0x9d   : > { %1841 = vmatpush1.msra.mxu1 %v10085_v27  ;;  %722 = vmatprep.mubr.f32.mxu0 %v721_v53  ;;  %v742_v53 = vand.u32 4294901760, %v741_v19  ;;  %v756_v42 = vsub.f32 %v6993_v22, %v10090_v14  ;;  %v751_v19 = vand.u32 4294901760, %v750_v52  ;;  %10094 = vst [vmem:[#allocation137_spill] sm:$0xff] %v7058_v26  ;;  %v7060_v22 = vand.u32 4294901760, %v278_v23  ;;  %v281_v27 = vld [vmem:[%s6342_s26 + $0x260] sm:$0xff] }
  0x9e   : > { %1265 = vmatprep.mubr.f32.mxu1 %v6852_v9  ;;  %1444 = vmatpush2.msra.mxu0 %v10088_v37  ;;  %10091 = vst [vmem:[#allocation136_spill] sm:$0xff] %v7047_v55  ;;  %v277_v9 = vld [vmem:[%s6342_s26 + $0x240] sm:$0xff]  ;;  %v10093_v37 = vand.u32 4294901760, %v7008_v56  ;;  %v7071_v48 = vsub.f32 %v274_v46, %v7047_v55 }
  0x9f   : > { %728 = vmatmul.mubr.f32.gmra.mxu0 %v727_v61  ;;  %1842 = vmatprep.subr.mxu1 %v9935_v1  ;;  %v10092_v61 = vld [vmem:[#allocation15_spill] sm:$0xff]  ;;  %10095 = vst [vmem:[#allocation138_spill] sm:$0xff] %v7060_v22  ;;  %v757_v52 = vand.u32 4294901760, %v756_v42  ;;  %v10101_v42 = vld [vmem:[#allocation17_spill] sm:$0xff]  ;;  %v7084_v46 = vsub.f32 %v278_v23, %v7060_v22 }
  0xa0   : > { %1267 = vmatmul.mubr.f32.gmra.mxu1 %v6865_v20  ;;  %1445 = vmatprep.subr.mxu0 %v9935_v1  ;;  %v765_v14 = vsub.f32 %v7008_v56, %v10093_v37  ;;  %v10096_v20 = vld [vmem:[#allocation22_spill] sm:$0xff]  ;;  %10098 = vst [vmem:[#allocation139_spill] sm:$0xff] %v7071_v48  ;;  %v7073_v56 = vand.u32 4294901760, %v277_v9 }
  0xa1   : > { %1844 = vmatpush2.msra.mxu1 %v10092_v61  ;;  %737 = vmatprep.mubr.f32.mxu0 %v736_v44  ;;  %v10097_v44 = vand.u32 4294901760, %v7021_v8  ;;  %10102 = vst [vmem:[#allocation141_spill] sm:$0xff] %v7084_v46  ;;  %v10105_v61 = vand.u32 4294901760, %v7039_v33 }
  0xa2   : > { %1272 = vmatprep.mubr.f32.mxu1 %v6870_v50  ;;  %1448 = vmatpush2.msra.mxu0 %v10096_v20  ;;  %10099 = vst [vmem:[#allocation140_spill] sm:$0xff] %v7073_v56  ;;  %v280_v50 = vld [vmem:[%s6342_s26 + $0x258] sm:$0xff]  ;;  %v766_v20 = vand.u32 4294901760, %v765_v14  ;;  %v7097_v23 = vsub.f32 %v277_v9, %v7073_v56 }
  0xa3   : > { %743 = vmatmul.mubr.f32.gmra.mxu0 %v742_v53  ;;  %1845 = vmatprep.subr.mxu1 %v9935_v1  ;;  %v771_v37 = vsub.f32 %v7021_v8, %v10097_v44  ;;  %v780_v53 = vsub.f32 %v7026_v40, %v10100_v49  ;;  %v7086_v8 = vand.u32 4294901760, %v281_v27  ;;  %v786_v49 = vsub.f32 %v7039_v33, %v10105_v61  ;;  %v284_v40 = vld [vmem:[%s6342_s26 + $0x278] sm:$0xff]  ;;  %v10108_v61 = vld [vmem:[#allocation19_spill] sm:$0xff] }
  0xa4   : > { %1274 = vmatmul.mubr.f32.gmra.mxu1 %v6882_v63  ;;  %1449 = vmatprep.subr.mxu0 %v9935_v1  ;;  %v10104_v63 = vld [vmem:[#allocation24_spill] sm:$0xff]  ;;  %10106 = vst [vmem:[#allocation143_spill] sm:$0xff] %v7097_v23  ;;  %v7099_v44 = vand.u32 4294901760, %v280_v50  ;;  %v7112_v33 = vand.u32 4294901760, %v284_v40 }
  0xa5   : > { %1847 = vmatpush2.msra.mxu1 %v10101_v42  ;;  %752 = vmatprep.mubr.f32.mxu0 %v751_v19  ;;  %10103 = vst [vmem:[#allocation142_spill] sm:$0xff] %v7086_v8  ;;  %v772_v19 = vand.u32 4294901760, %v771_v37  ;;  %v7110_v9 = vsub.f32 %v281_v27, %v7086_v8  ;;  %v787_v42 = vand.u32 4294901760, %v786_v49 }
  0xa6   : > { %1279 = vmatprep.mubr.f32.mxu1 %v6904_v51  ;;  %1452 = vmatpush2.msra.mxu0 %v10104_v63  ;;  %10107 = vst [vmem:[#allocation144_spill] sm:$0xff] %v7099_v44  ;;  %v781_v51 = vand.u32 4294901760, %v780_v53  ;;  %v283_v63 = vld [vmem:[%s6342_s26 + $0x270] sm:$0xff]  ;;  %v10111_v53 = vld [vmem:[#allocation26_spill] sm:$0xff]  ;;  %v7123_v27 = vsub.f32 %v280_v50, %v7099_v44  ;;  %v7164_v50 = vand.u32 4294901760, %v290_v58 }
  0xa7   : > { %758 = vmatmul.mubr.f32.gmra.mxu0 %v757_v52  ;;  %1848 = vmatprep.subr.mxu1 %v9935_v1  ;;  %v10109_v52 = vand.u32 4294901760, %v7058_v26  ;;  %10110 = vst [vmem:[#allocation145_spill] sm:$0xff] %v7110_v9 }
  0xa8   : > { %1281 = vmatmul.mubr.f32.gmra.mxu1 %v6917_v38  ;;  %1453 = vmatprep.subr.mxu0 %v9935_v1  ;;  %v287_v38 = vld [vmem:[%s6342_s26 + $0x290] sm:$0xff]  ;;  %10113 = vst [vmem:[#allocation146_spill] sm:$0xff] %v7123_v27  ;;  %10124 = vst [vmem:[#allocation150_spill] sm:$0xff] %v7164_v50 }
  0xa9   : > { %1850 = vmatpush2.msra.mxu1 %v10108_v61  ;;  %767 = vmatprep.mubr.f32.mxu0 %v766_v20  ;;  %v795_v37 = vsub.f32 %v7058_v26, %v10109_v52  ;;  %v10112_v20 = vand.u32 4294901760, %v7071_v48  ;;  %v7125_v26 = vand.u32 4294901760, %v283_v63  ;;  %v286_v61 = vld [vmem:[%s6342_s26 + $0x288] sm:$0xff]  ;;  %v7130_v49 = vand.u32 4294901760, %v287_v38 }
  0xaa   : > { %1286 = vmatprep.mubr.f32.mxu1 %v6930_v62  ;;  %1456 = vmatpush2.msra.mxu0 %v10111_v53  ;;  %v7142_v53 = vand.u32 4294901760, %v286_v61 }
  0xab   : > { %773 = vmatmul.mubr.f32.gmra.mxu0 %v772_v19  ;;  %1851 = vmatprep.subr.mxu1 %v9935_v1  ;;  %v801_v52 = vsub.f32 %v7071_v48, %v10112_v20  ;;  %10114 = vst [vmem:[#allocation147_spill] sm:$0xff] %v7125_v26  ;;  %v10115_v19 = vld [vmem:[#allocation21_spill] sm:$0xff]  ;;  %v796_v62 = vand.u32 4294901760, %v795_v37  ;;  %v10116_v20 = vand.u32 4294901760, %v7084_v46  ;;  %v7138_v48 = vsub.f32 %v284_v40, %v7112_v33 }
  0xac   : > { %1288 = vmatmul.mubr.f32.gmra.mxu1 %v6943_v29  ;;  %1457 = vmatprep.subr.mxu0 %v9935_v1  ;;  %v10118_v29 = vld [vmem:[#allocation28_spill] sm:$0xff]  ;;  %v10119_v37 = vand.u32 4294901760, %v7097_v23  ;;  %v7151_v40 = vsub.f32 %v283_v63, %v7125_v26  ;;  %v7188_v63 = vsub.f32 %v290_v58, %v7164_v50 }
  0xad   : > { %1853 = vmatpush2.msra.mxu1 %v10115_v19  ;;  %782 = vmatprep.mubr.f32.mxu0 %v781_v51  ;;  %v810_v14 = vsub.f32 %v7084_v46, %v10116_v20  ;;  %10117 = vst [vmem:[#allocation21_spill] sm:$0xff] %v7138_v48  ;;  %v802_v51 = vand.u32 4294901760, %v801_v52  ;;  %v10122_v46 = vld [vmem:[#allocation23_spill] sm:$0xff] }
  0xae   : > { %1293 = vmatprep.mubr.f32.mxu1 %v6956_v36  ;;  %1460 = vmatpush2.msra.mxu0 %v10118_v29  ;;  %v816_v20 = vsub.f32 %v7097_v23, %v10119_v37  ;;  %10120 = vst [vmem:[#allocation148_spill] sm:$0xff] %v7151_v40  ;;  %v7156_v36 = vsub.f32 %v287_v38, %v7130_v49  ;;  %v10123_v37 = vand.u32 4294901760, %v7110_v9  ;;  %v293_v29 = vld [vmem:[%s6342_s26 + $0x2c0] sm:$0xff]  ;;  %10131 = vst [vmem:[#allocation153_spill] sm:$0xff] %v7188_v63 }
  0xaf   : > { %788 = vmatmul.mubr.f32.gmra.mxu0 %v787_v42  ;;  %1854 = vmatprep.subr.mxu1 %v9935_v1  ;;  %v289_v42 = vld [vmem:[%s6342_s26 + $0x2a0] sm:$0xff]  ;;  %v811_v52 = vand.u32 4294901760, %v810_v14  ;;  %v7169_v38 = vsub.f32 %v286_v61, %v7142_v53  ;;  %v10127_v14 = vand.u32 4294901760, %v7123_v27 }
  0xb0   : > { %1295 = vmatmul.mubr.f32.gmra.mxu1 %v6969_v31  ;;  %1461 = vmatprep.subr.mxu0 %v9935_v1  ;;  %10121 = vst [vmem:[#allocation149_spill] sm:$0xff] %v7156_v36  ;;  %v825_v23 = vsub.f32 %v7110_v9, %v10123_v37  ;;  %v10125_v31 = vld [vmem:[#allocation30_spill] sm:$0xff]  ;;  %v7177_v9 = vand.u32 4294901760, %v289_v42  ;;  %v10137_v61 = vand.u32 4294901760, %v7156_v36 }
  0xb1   : > { %1856 = vmatpush2.msra.mxu1 %v10122_v46  ;;  %797 = vmatprep.mubr.f32.mxu0 %v796_v62  ;;  %10126 = vst [vmem:[#allocation151_spill] sm:$0xff] %v7169_v38  ;;  %v817_v62 = vand.u32 4294901760, %v816_v20  ;;  %v831_v37 = vsub.f32 %v7123_v27, %v10127_v14  ;;  %v7190_v27 = vand.u32 4294901760, %v293_v29  ;;  %v296_v46 = vld [vmem:[%s6342_s26 + $0x2d8] sm:$0xff] }
  0xb2   : > { %1300 = vmatprep.mubr.f32.mxu1 %v6982_v57  ;;  %1464 = vmatpush2.msra.mxu0 %v10125_v31  ;;  %10128 = vst [vmem:[#allocation152_spill] sm:$0xff] %v7177_v9  ;;  %v292_v57 = vld [vmem:[%s6342_s26 + $0x2b8] sm:$0xff]  ;;  %v826_v20 = vand.u32 4294901760, %v825_v23  ;;  %v10130_v31 = vand.u32 4294901760, %v7138_v48  ;;  %v7201_v58 = vsub.f32 %v289_v42, %v7177_v9 }
  0xb3   : > { %803 = vmatmul.mubr.f32.gmra.mxu0 %v802_v51  ;;  %1857 = vmatprep.subr.mxu1 %v9935_v1  ;;  %v10129_v51 = vld [vmem:[#allocation25_spill] sm:$0xff]  ;;  %10132 = vst [vmem:[#allocation154_spill] sm:$0xff] %v7190_v27  ;;  %v832_v23 = vand.u32 4294901760, %v831_v37  ;;  %v10138_v37 = vld [vmem:[#allocation27_spill] sm:$0xff]  ;;  %v7214_v42 = vsub.f32 %v293_v29, %v7190_v27 }
  0xb4   : > { %1302 = vmatmul.mubr.f32.gmra.mxu1 %v6995_v47  ;;  %1465 = vmatprep.subr.mxu0 %v9935_v1  ;;  %v840_v14 = vsub.f32 %v7138_v48, %v10130_v31  ;;  %v10133_v47 = vld [vmem:[#allocation32_spill] sm:$0xff]  ;;  %10135 = vst [vmem:[#allocation155_spill] sm:$0xff] %v7201_v58  ;;  %v7203_v48 = vand.u32 4294901760, %v292_v57 }
  0xb5   : > { %1859 = vmatpush2.msra.mxu1 %v10129_v51  ;;  %812 = vmatprep.mubr.f32.mxu0 %v811_v52  ;;  %v10134_v52 = vand.u32 4294901760, %v7151_v40  ;;  %v10141_v51 = vand.u32 4294901760, %v7169_v38 }
  0xb6   : > { %1307 = vmatprep.mubr.f32.mxu1 %v7000_v32  ;;  %1468 = vmatpush2.msra.mxu0 %v10133_v47  ;;  %10136 = vst [vmem:[#allocation156_spill] sm:$0xff] %v7203_v48  ;;  %v295_v32 = vld [vmem:[%s6342_s26 + $0x2d0] sm:$0xff]  ;;  %v841_v47 = vand.u32 4294901760, %v840_v14  ;;  %v7227_v29 = vsub.f32 %v292_v57, %v7203_v48 }
  0xb7   : > { %818 = vmatmul.mubr.f32.gmra.mxu0 %v817_v62  ;;  %1860 = vmatprep.subr.mxu1 %v9935_v1  ;;  %v846_v31 = vsub.f32 %v7151_v40, %v10134_v52  ;;  %v855_v62 = vsub.f32 %v7156_v36, %v10137_v61  ;;  %v7216_v40 = vand.u32 4294901760, %v296_v46  ;;  %v861_v61 = vsub.f32 %v7169_v38, %v10141_v51  ;;  %v299_v36 = vld [vmem:[%s6342_s26 + $0x2f0] sm:$0xff] }
  0xb8   : > { %1309 = vmatmul.mubr.f32.gmra.mxu1 %v7012_v3  ;;  %1469 = vmatprep.subr.mxu0 %v9935_v1  ;;  %v10140_v3 = vld [vmem:[#allocation34_spill] sm:$0xff]  ;;  %v7229_v52 = vand.u32 4294901760, %v295_v32  ;;  %v10144_v51 = vand.u32 4294901760, %v7188_v63  ;;  %v7242_v14 = vand.u32 4294901760, %v299_v36 }
  0xb9   : > { %1862 = vmatpush2.msra.mxu1 %v10138_v37  ;;  %827 = vmatprep.mubr.f32.mxu0 %v826_v20  ;;  %10139 = vst [vmem:[#allocation157_spill] sm:$0xff] %v7216_v40  ;;  %v847_v20 = vand.u32 4294901760, %v846_v31  ;;  %v10143_v37 = vld [vmem:[#allocation29_spill] sm:$0xff]  ;;  %v7240_v57 = vsub.f32 %v296_v46, %v7216_v40 }
  0xba   : > { %1314 = vmatprep.mubr.f32.mxu1 %v7034_v41  ;;  %1472 = vmatpush2.msra.mxu0 %v10140_v3  ;;  %10142 = vst [vmem:[#allocation158_spill] sm:$0xff] %v7229_v52  ;;  %v856_v41 = vand.u32 4294901760, %v855_v62  ;;  %v298_v3 = vld [vmem:[%s6342_s26 + $0x2e8] sm:$0xff]  ;;  %10145 = vst [vmem:[#allocation29_spill] sm:$0xff] %v7242_v14  ;;  %v862_v62 = vand.u32 4294901760, %v861_v61  ;;  %v7252_v31 = vsub.f32 %v295_v32, %v7229_v52  ;;  %v10151_v32 = vld [vmem:[#allocation38_spill] sm:$0xff] }
  0xbb   : > { %833 = vmatmul.mubr.f32.gmra.mxu0 %v832_v23  ;;  %1863 = vmatprep.subr.mxu1 %v9935_v1  ;;  %v870_v23 = vsub.f32 %v7188_v63, %v10144_v51  ;;  %v7254_v46 = vand.u32 4294901760, %v298_v3  ;;  %v7264_v51 = vsub.f32 %v299_v36, %v7242_v14  ;;  %v10153_v36 = vld [vmem:[#allocation33_spill] sm:$0xff] }
  0xbc   : > { %1316 = vmatmul.mubr.f32.gmra.mxu1 %v7047_v55  ;;  %1473 = vmatprep.subr.mxu0 %v9935_v1  ;;  %v10146_v55 = vld [vmem:[#allocation35_spill] sm:$0xff] }
  0xbd   : > { %1865 = vmatpush2.msra.mxu1 %v10143_v37  ;;  %842 = vmatprep.mubr.f32.mxu0 %v841_v47  ;;  %v10147_v47 = vand.u32 4294901760, %v7201_v58  ;;  %10148 = vst [vmem:[#allocation35_spill] sm:$0xff] %v7254_v46  ;;  %v871_v61 = vand.u32 4294901760, %v870_v23 }
  0xbe   : > { %1321 = vmatprep.mubr.f32.mxu1 %v7060_v22  ;;  %1476 = vmatpush2.msra.mxu0 %v10146_v55  ;;  %v10149_v22 = vld [vmem:[#allocation31_spill] sm:$0xff] }
  0xbf   : > { %848 = vmatmul.mubr.f32.gmra.mxu0 %v847_v20  ;;  %1866 = vmatprep.subr.mxu1 %v9935_v1  ;;  %v876_v38 = vsub.f32 %v7201_v58, %v10147_v47  ;;  %v10150_v20 = vand.u32 4294901760, %v7214_v42  ;;  %v9717_v47 = vand.u32 4294901760, %v7240_v57  ;;  %v9718_v58 = vand.u32 4294901760, %v7252_v31 }
  0xc0   : > { %1323 = vmatmul.mubr.f32.gmra.mxu1 %v7073_v56  ;;  %1477 = vmatprep.subr.mxu0 %v9935_v1 }
  0xc1   : > { %1868 = vmatpush2.msra.mxu1 %v10149_v22  ;;  %857 = vmatprep.mubr.f32.mxu0 %v856_v41  ;;  %v885_v63 = vsub.f32 %v7214_v42, %v10150_v20  ;;  %v877_v56 = vand.u32 4294901760, %v876_v38  ;;  %v10152_v41 = vand.u32 4294901760, %v7227_v29  ;;  %v7274_v20 = vsub.f32 %v298_v3, %v7254_v46 }
  0xc2   : > { %1328 = vmatprep.mubr.f32.mxu1 %v7086_v8  ;;  %1480 = vmatpush2.msra.mxu0 %v10151_v32  ;;  %v900_v38 = vsub.f32 %v7240_v57, %v9717_v47  ;;  %v9721_v8 = vand.u32 4294901760, %v7264_v51 }
  0xc3   : > { %863 = vmatmul.mubr.f32.gmra.mxu0 %v862_v62  ;;  %1869 = vmatprep.subr.mxu1 %v9935_v1  ;;  %v891_v23 = vsub.f32 %v7227_v29, %v10152_v41  ;;  %v886_v62 = vand.u32 4294901760, %v885_v63  ;;  %v10154_v41 = vld [vmem:[#allocation41_spill] sm:$0xff]  ;;  %v9722_v63 = vand.u32 4294901760, %v7274_v20 }
  0xc4   : > { %1330 = vmatmul.mubr.f32.gmra.mxu1 %v7099_v44  ;;  %1481 = vmatprep.subr.mxu0 %v9935_v1  ;;  %v906_v44 = vsub.f32 %v7252_v31, %v9718_v58  ;;  %v901_v47 = vand.u32 4294901760, %v900_v38 }
  0xc5   : > { %1871 = vmatpush2.msra.mxu1 %v10153_v36  ;;  %872 = vmatprep.mubr.f32.mxu0 %v871_v61  ;;  %v892_v3 = vand.u32 4294901760, %v891_v23  ;;  %v10155_v61 = vld [vmem:[#allocation36_spill] sm:$0xff] }
  0xc6   : > { %1335 = vmatprep.mubr.f32.mxu1 %v7112_v33  ;;  %1484 = vmatpush2.msra.mxu0 %v10154_v41  ;;  %v10156_v23 = vld [vmem:[#allocation44_spill] sm:$0xff]  ;;  %v907_v58 = vand.u32 4294901760, %v906_v44 }
  0xc7   : > { %878 = vmatmul.mubr.f32.gmra.mxu0 %v877_v56  ;;  %1872 = vmatprep.subr.mxu1 %v9935_v1  ;;  %v915_v56 = vsub.f32 %v7264_v51, %v9721_v8  ;;  %v10158_v8 = vld [vmem:[#allocation53_spill] sm:$0xff] }
  0xc8   : > { %1337 = vmatmul.mubr.f32.gmra.mxu1 %v7125_v26  ;;  %1485 = vmatprep.subr.mxu0 %v9935_v1  ;;  %v921_v26 = vsub.f32 %v7274_v20, %v9722_v63  ;;  %v10160_v63 = vld [vmem:[#allocation54_spill] sm:$0xff] }
  0xc9   : > { %1874 = vmatpush2.msra.mxu1 %v10155_v61  ;;  %887 = vmatprep.mubr.f32.mxu0 %v886_v62  ;;  %v10157_v62 = vld [vmem:[#allocation37_spill] sm:$0xff]  ;;  %v916_v38 = vand.u32 4294901760, %v915_v56  ;;  %v10164_v56 = vld [vmem:[#allocation48_spill] sm:$0xff] }
  0xca   : > { %1342 = vmatprep.mubr.f32.mxu1 %v7130_v49  ;;  %1488 = vmatpush2.msra.mxu0 %v10156_v23  ;;  %v922_v44 = vand.u32 4294901760, %v921_v26  ;;  %v10161_v26 = vld [vmem:[#allocation45_spill] sm:$0xff] }
  0xcb   : > { %893 = vmatmul.mubr.f32.gmra.mxu0 %v892_v3  ;;  %1875 = vmatprep.subr.mxu1 %v9935_v1  ;;  %v10159_v3 = vld [vmem:[#allocation43_spill] sm:$0xff] }
  0xcc   : > { %1344 = vmatmul.mubr.f32.gmra.mxu1 %v7142_v53  ;;  %1489 = vmatprep.subr.mxu0 %v9935_v1 }
  0xcd   : > { %1877 = vmatpush2.msra.mxu1 %v10157_v62  ;;  %902 = vmatprep.mubr.f32.mxu0 %v901_v47  ;;  %v10163_v47 = vld [vmem:[#allocation46_spill] sm:$0xff] }
  0xce   : > { %1349 = vmatprep.mubr.f32.mxu1 %v7164_v50  ;;  %1492 = vmatpush2.msra.mxu0 %v10158_v8 }
  0xcf   : > { %908 = vmatmul.mubr.f32.gmra.mxu0 %v907_v58  ;;  %1878 = vmatprep.subr.mxu1 %v9935_v1  ;;  %v10162_v58 = vld [vmem:[#allocation59_spill] sm:$0xff] }
  0xd0   : > { %1351 = vmatmul.mubr.f32.gmra.mxu1 %v7177_v9  ;;  %1493 = vmatprep.subr.mxu0 %v9935_v1  ;;  %v10173_v9 = vld [vmem:[#allocation61_spill] sm:$0xff] }
  0xd1   : > { %1880 = vmatpush2.msra.mxu1 %v10159_v3  ;;  %917 = vmatprep.mubr.f32.mxu0 %v916_v38  ;;  %v10165_v38 = vld [vmem:[#allocation47_spill] sm:$0xff] }
  0xd2   : > { %1356 = vmatprep.mubr.f32.mxu1 %v7190_v27  ;;  %1496 = vmatpush2.msra.mxu0 %v10160_v63  ;;  %v10170_v27 = vand.u32 4294901760, %v10163_v47 }
  0xd3   : > { %923 = vmatmul.mubr.f32.gmra.mxu0 %v922_v44  ;;  %1497 = vmatprep.subr.mxu0 %v9935_v1  ;;  %v10166_v44 = vld [vmem:[#allocation50_spill] sm:$0xff] }
  0xd4   : > { %1358 = vmatmul.mubr.f32.gmra.mxu1 %v7203_v48  ;;  %1881 = vmatprep.subr.mxu1 %v9935_v1  ;;  %v10168_v48 = vld [vmem:[#allocation52_spill] sm:$0xff]  ;;  %v10174_v50 = vand.u32 4294901760, %v10166_v44 }
  0xd5   : > { %1500 = vmatpush2.msra.mxu0 %v6487_v7  ;;  %1883 = vmatpush2.msra.mxu1 %v10161_v26 }
  0xd6   : > { %1501 = vmatprep.subr.mxu0 %v9935_v1  ;;  %1363 = vmatprep.mubr.f32.mxu1 %v7216_v40  ;;  %v10167_v40 = vld [vmem:[#allocation56_spill] sm:$0xff] }
  0xd7   : > { %1504 = vmatpush2.msra.mxu0 %v10162_v58  ;;  %1507 = vmatprep.mubr.f32.mxu0 %v10163_v47  ;;  %v10189_v47 = vld [vmem:[#allocation73_spill] sm:$0xff] }
  0xd8   : > { %1365 = vmatmul.mubr.f32.gmra.mxu1 %v7229_v52  ;;  %1510 = vmatmul.mubr.f32.vlgmr.msra.gmra.mxu0 %v10164_v56  ;;  %v10169_v52 = vld [vmem:[#allocation57_spill] sm:$0xff] }
  0xd9   : > { %1884 = vmatprep.subr.mxu1 %v9935_v1  ;;  %1370 = vmatprep.mubr.f32.mxu1 %v7242_v14  ;;  %v10171_v14 = vand.u32 4294901760, %v6041_v15  ;;  %v10176_v15 = vand.u32 4294901760, %v10167_v40 }
  0xda   : > { %1886 = vmatpush2.msra.mxu1 %v10165_v38  ;;  %1516 = vmatprep.mubr.f32.mxu0 %v10166_v44 }
  0xdb   : > { %1887 = vmatprep.subr.mxu1 %v9935_v1  ;;  %2243 = vmatprep.subr.mxu0 %v9935_v1 }
  0xdc   : > { %1372 = vmatmul.mubr.f32.gmra.mxu1 %v7254_v46  ;;  %1519 = vmatmul.mubr.f32.gmra.mxu0 %v10167_v40  ;;  %v10172_v46 = vand.u32 4294901760, %v10164_v56  ;;  %v10181_v40 = vand.u32 4294901760, %v10173_v9  ;;  %v10190_v56 = vand.u32 4294901760, %v6581_v13 }
  0xdd   : > { %1889 = vmatpush2.msra.mxu1 %v10168_v48  ;;  %1525 = vmatprep.mubr.f32.mxu0 %v10169_v52 }
  0xde   : > { %1893 = vmatprep.mubr.f32.mxu1 %v10170_v27  ;;  %2247 = vmatpush1.msra.mxu0 %v10171_v14  ;;  %v10175_v27 = vand.u32 4294901760, %v6044_v16  ;;  %v10179_v16 = vand.u32 4294901760, %v6510_v0 }
  0xdf   : > { %2628 = vmatprep.subr.mxu1 %v9935_v1  ;;  %2248 = vmatprep.subr.mxu0 %v9935_v1 }
  0xe0   : > { %1528 = vmatmul.mubr.f32.gmra.mxu0 %v6510_v0  ;;  %1897 = vmatmul.mubr.f32.vlgmr.msra.gmra.mxu1 %v10172_v46  ;;  %v10185_v46 = vand.u32 4294901760, %v6551_v39  ;;  %v10187_v0 = vand.u32 4294901760, %v6567_v59 }
  0xe1   : > { %2630 = vmatpush1.msra.mxu1 %v6011_v4  ;;  %1534 = vmatprep.mubr.f32.mxu0 %v10173_v9  ;;  %v10177_v4 = vand.u32 4294901760, %v10169_v52  ;;  %v10182_v52 = vld [vmem:[#allocation6_spill] sm:$0xff]  ;;  %v10188_v9 = vand.u32 4294901760, %v6059_v21  ;;  %v10194_v21 = vld [vmem:[#allocation76_spill] sm:$0xff] }
  0xe2   : > { %1904 = vmatprep.mubr.f32.mxu1 %v10174_v50  ;;  %2252 = vmatpush1.msra.mxu0 %v10175_v27  ;;  %v10178_v50 = vand.u32 4294901760, %v6049_v18  ;;  %v10183_v14 = vand.u32 4294901760, %v10182_v52  ;;  %v10184_v18 = vld [vmem:[#allocation68_spill] sm:$0xff]  ;;  %v10198_v27 = vand.u32 4294901760, %v6089_v34  ;;  %v10203_v34 = vld [vmem:[#allocation83_spill] sm:$0xff] }
  0xe3   : > { %2631 = vmatprep.subr.mxu1 %v9935_v1  ;;  %2253 = vmatprep.subr.mxu0 %v9935_v1  ;;  %v10195_v44 = vand.u32 4294901760, %v10184_v18 }
  0xe4   : > { %1537 = vmatmul.mubr.f32.gmra.mxu0 %v6551_v39  ;;  %1908 = vmatmul.mubr.f32.gmra.mxu1 %v10176_v15  ;;  %v10200_v15 = vand.u32 4294901760, %v10189_v47 }
  0xe5   : > { %2633 = vmatpush1.msra.mxu1 %v6013_v5  ;;  %1543 = vmatprep.mubr.f32.mxu0 %v6567_v59  ;;  %v10180_v5 = vld [vmem:[#allocation66_spill] sm:$0xff]  ;;  %v10193_v59 = vand.u32 4294901760, %v6076_v30  ;;  %v10199_v30 = vld [vmem:[#allocation80_spill] sm:$0xff] }
  0xe6   : > { %1915 = vmatprep.mubr.f32.mxu1 %v10177_v4  ;;  %2257 = vmatpush1.msra.mxu0 %v10178_v50  ;;  %v10192_v39 = vand.u32 4294901760, %v10180_v5  ;;  %v10202_v4 = vand.u32 4294901760, %v6110_v43  ;;  %v10204_v50 = vand.u32 4294901760, %v10194_v21  ;;  %v10209_v43 = vld [vmem:[#allocation87_spill] sm:$0xff]  ;;  %v10210_v52 = vand.u32 4294901760, %v10199_v30 }
  0xe7   : > { %2634 = vmatprep.subr.mxu1 %v9935_v1  ;;  %2258 = vmatprep.subr.mxu0 %v9935_v1 }
  0xe8   : > { %1546 = vmatmul.mubr.f32.gmra.mxu0 %v6581_v13  ;;  %1919 = vmatmul.mubr.f32.gmra.mxu1 %v10179_v16 }
  0xe9   : > { %2636 = vmatpush1.msra.mxu1 %v6015_v6  ;;  %1552 = vmatprep.mubr.f32.mxu0 %v10180_v5  ;;  %v10186_v6 = vld [vmem:[#allocation71_spill] sm:$0xff] }
  0xea   : > { %1926 = vmatprep.mubr.f32.mxu1 %v10181_v40  ;;  %2262 = vmatpush1.msra.mxu0 %v10183_v14  ;;  %v10197_v13 = vand.u32 4294901760, %v10186_v6  ;;  %v10207_v5 = vld [vmem:[#allocation7_spill] sm:$0xff]  ;;  %v10212_v14 = vand.u32 4294901760, %v6694_v24 }
  0xeb   : > { %2637 = vmatprep.subr.mxu1 %v9935_v1  ;;  %2263 = vmatprep.subr.mxu0 %v9935_v1  ;;  %v10208_v40 = vand.u32 4294901760, %v10207_v5  ;;  %v10243_v5 = vld [vmem:[#allocation16_spill] sm:$0xff] }
  0xec   : > { %1555 = vmatmul.mubr.f32.gmra.mxu0 %v10184_v18  ;;  %1930 = vmatmul.mubr.f32.gmra.mxu1 %v10185_v46  ;;  %v10213_v18 = vand.u32 4294901760, %v6135_v54  ;;  %v10214_v46 = vld [vmem:[#allocation92_spill] sm:$0xff]  ;;  %v10219_v54 = vld [vmem:[#allocation95_spill] sm:$0xff] }
  0xed   : > { %2639 = vmatpush1.msra.mxu1 %v6027_v10  ;;  %1561 = vmatprep.mubr.f32.mxu0 %v10186_v6  ;;  %v10191_v10 = vld [vmem:[#allocation74_spill] sm:$0xff]  ;;  %v10215_v6 = vand.u32 4294901760, %v10203_v34 }
  0xee   : > { %1937 = vmatprep.mubr.f32.mxu1 %v10187_v0  ;;  %2267 = vmatpush1.msra.mxu0 %v10188_v9  ;;  %v10220_v9 = vand.u32 4294901760, %v10209_v43 }
  0xef   : > { %2640 = vmatprep.subr.mxu1 %v9935_v1  ;;  %2268 = vmatprep.subr.mxu0 %v9935_v1 }
  0xf0   : > { %1564 = vmatmul.mubr.f32.gmra.mxu0 %v10189_v47  ;;  %1941 = vmatmul.mubr.f32.gmra.mxu1 %v10190_v56  ;;  %v10223_v56 = vand.u32 4294901760, %v6165_v2  ;;  %v10231_v2 = vld [vmem:[#allocation103_spill] sm:$0xff] }
  0xf1   : > { %2642 = vmatpush1.msra.mxu1 %v6029_v11  ;;  %1570 = vmatprep.mubr.f32.mxu0 %v10191_v10  ;;  %v10196_v11 = vld [vmem:[#allocation78_spill] sm:$0xff] }
  0xf2   : > { %1948 = vmatprep.mubr.f32.mxu1 %v10192_v39  ;;  %2272 = vmatpush1.msra.mxu0 %v10193_v59  ;;  %v10206_v16 = vand.u32 4294901760, %v10196_v11  ;;  %v10226_v39 = vld [vmem:[#allocation8_spill] sm:$0xff] }
  0xf3   : > { %2643 = vmatprep.subr.mxu1 %v9935_v1  ;;  %2273 = vmatprep.subr.mxu0 %v9935_v1 }
  0xf4   : > { %1573 = vmatmul.mubr.f32.gmra.mxu0 %v10194_v21  ;;  %1952 = vmatmul.mubr.f32.gmra.mxu1 %v10195_v44  ;;  %v10229_v21 = vld [vmem:[#allocation12_spill] sm:$0xff] }
  0xf5   : > { %2645 = vmatpush1.msra.mxu1 %v6031_v12  ;;  %1579 = vmatprep.mubr.f32.mxu0 %v10196_v11  ;;  %v10201_v12 = vand.u32 4294901760, %v10191_v10  ;;  %v10225_v10 = vand.u32 4294901760, %v10214_v46  ;;  %v10230_v44 = vand.u32 4294901760, %v10229_v21  ;;  %v10232_v11 = vand.u32 4294901760, %v10219_v54 }
  0xf6   : > { %1959 = vmatprep.mubr.f32.mxu1 %v10197_v13  ;;  %2277 = vmatpush1.msra.mxu0 %v10198_v27  ;;  %v10233_v13 = vld [vmem:[#allocation9_spill] sm:$0xff] }
  0xf7   : > { %2646 = vmatprep.subr.mxu1 %v9935_v1  ;;  %2278 = vmatprep.subr.mxu0 %v9935_v1  ;;  %v10234_v27 = vld [vmem:[#allocation105_spill] sm:$0xff] }
  0xf8   : > { %1582 = vmatmul.mubr.f32.gmra.mxu0 %v10199_v30  ;;  %1963 = vmatmul.mubr.f32.gmra.mxu1 %v10200_v15  ;;  %v10236_v15 = vld [vmem:[#allocation14_spill] sm:$0xff] }
  0xf9   : > { %2648 = vmatpush1.msra.mxu1 %v6046_v17  ;;  %1588 = vmatprep.mubr.f32.mxu0 %v6694_v24  ;;  %v10205_v17 = vld [vmem:[#allocation85_spill] sm:$0xff]  ;;  %v10218_v24 = vand.u32 4294901760, %v6150_v60  ;;  %v10224_v60 = vld [vmem:[#allocation99_spill] sm:$0xff] }
  0xfa   : > { %1970 = vmatprep.mubr.f32.mxu1 %v10201_v12  ;;  %2282 = vmatpush1.msra.mxu0 %v10202_v4  ;;  %v10217_v0 = vand.u32 4294901760, %v10205_v17  ;;  %v10237_v12 = vand.u32 4294901760, %v10236_v15  ;;  %v10238_v4 = vld [vmem:[#allocation107_spill] sm:$0xff] }
  0xfb   : > { %2649 = vmatprep.subr.mxu1 %v9935_v1  ;;  %2283 = vmatprep.subr.mxu0 %v9935_v1 }
  0xfc   : > { %1591 = vmatmul.mubr.f32.gmra.mxu0 %v10203_v34  ;;  %1974 = vmatmul.mubr.f32.gmra.mxu1 %v10204_v50  ;;  %v10239_v34 = vand.u32 4294901760, %v10224_v60  ;;  %v10240_v50 = vld [vmem:[#allocation10_spill] sm:$0xff] }
  0xfd   : > { %2651 = vmatpush1.msra.mxu1 %v6065_v25  ;;  %1597 = vmatprep.mubr.f32.mxu0 %v10205_v17  ;;  %v10211_v25 = vld [vmem:[#allocation90_spill] sm:$0xff] }
  0xfe   : > { %1981 = vmatprep.mubr.f32.mxu1 %v10206_v16  ;;  %2287 = vmatpush1.msra.mxu0 %v10208_v40  ;;  %v10222_v47 = vand.u32 4294901760, %v10211_v25  ;;  %v10241_v17 = vld [vmem:[#allocation110_spill] sm:$0xff]  ;;  %v10244_v40 = vand.u32 4294901760, %v10243_v5 }
  0xff   : > { %2652 = vmatprep.subr.mxu1 %v9935_v1  ;;  %2288 = vmatprep.subr.mxu0 %v9935_v1 }
 0x100   : > { %1600 = vmatmul.mubr.f32.gmra.mxu0 %v10209_v43  ;;  %1985 = vmatmul.mubr.f32.gmra.mxu1 %v10210_v52  ;;  %v10245_v52 = vld [vmem:[#allocation112_spill] sm:$0xff] }
 0x101   : > { %2654 = vmatpush1.msra.mxu1 %v6072_v28  ;;  %1606 = vmatprep.mubr.f32.mxu0 %v10211_v25  ;;  %v10216_v28 = vld [vmem:[#allocation93_spill] sm:$0xff]  ;;  %v10246_v25 = vand.u32 4294901760, %v10231_v2 }
 0x102   : > { %1992 = vmatprep.mubr.f32.mxu1 %v10212_v14  ;;  %2292 = vmatpush1.msra.mxu0 %v10213_v18  ;;  %v10228_v59 = vand.u32 4294901760, %v10216_v28  ;;  %v10247_v14 = vld [vmem:[#allocation11_spill] sm:$0xff] }
 0x103   : > { %2655 = vmatprep.subr.mxu1 %v9935_v1  ;;  %2293 = vmatprep.subr.mxu0 %v9935_v1 }
 0x104   : > { %1609 = vmatmul.mubr.f32.gmra.mxu0 %v10214_v46  ;;  %1996 = vmatmul.mubr.f32.gmra.mxu1 %v10215_v6  ;;  %v10248_v46 = vld [vmem:[#allocation113_spill] sm:$0xff]  ;;  %v7499_v6 = vstv %s349_s12 }
 0x105   : > { %2657 = vmatpush1.msra.mxu1 %v6092_v35  ;;  %1615 = vmatprep.mubr.f32.mxu0 %v10216_v28  ;;  %v10221_v35 = vld [vmem:[#allocation97_spill] sm:$0xff]  ;;  %v10249_v28 = vand.u32 4294901760, %v10234_v27 }
 0x106   : > { %2003 = vmatprep.mubr.f32.mxu1 %v10217_v0  ;;  %2297 = vmatpush1.msra.mxu0 %v10218_v24  ;;  %v10235_v30 = vand.u32 4294901760, %v10221_v35  ;;  %v10250_v0 = vld [vmem:[#allocation18_spill] sm:$0xff] }
 0x107   : > { %2658 = vmatprep.subr.mxu1 %v9935_v1  ;;  %2298 = vmatprep.subr.mxu0 %v9935_v1  ;;  %v10251_v24 = vand.u32 4294901760, %v10250_v0 }
 0x108   : > { %1618 = vmatmul.mubr.f32.gmra.mxu0 %v10219_v54  ;;  %2007 = vmatmul.mubr.f32.gmra.mxu1 %v10220_v9  ;;  %v10252_v9 = vld [vmem:[#allocation115_spill] sm:$0xff] }
 0x109   : > { %2660 = vmatpush1.msra.mxu1 %v6113_v45  ;;  %1624 = vmatprep.mubr.f32.mxu0 %v10221_v35  ;;  %v10227_v45 = vld [vmem:[#allocation101_spill] sm:$0xff]  ;;  %v10253_v35 = vand.u32 4294901760, %v10238_v4 }
 0x10a   : > { %2014 = vmatprep.mubr.f32.mxu1 %v10222_v47  ;;  %2302 = vmatpush1.msra.mxu0 %v10223_v56  ;;  %v10242_v16 = vand.u32 4294901760, %v10227_v45  ;;  %v10254_v56 = vld [vmem:[#allocation13_spill] sm:$0xff] }
 0x10b   : > { %2661 = vmatprep.subr.mxu1 %v9935_v1  ;;  %2303 = vmatprep.subr.mxu0 %v9935_v1 }
 0x10c   : > { %1627 = vmatmul.mubr.f32.gmra.mxu0 %v10224_v60  ;;  %2018 = vmatmul.mubr.f32.gmra.mxu1 %v10225_v10  ;;  %v10255_v10 = vld [vmem:[#allocation117_spill] sm:$0xff] }
 0x10d   : > { %2663 = vmatpush1.msra.mxu1 %v10226_v39  ;;  %1633 = vmatprep.mubr.f32.mxu0 %v10227_v45  ;;  %v10256_v39 = vand.u32 4294901760, %v10241_v17  ;;  %v10257_v45 = vld [vmem:[#allocation20_spill] sm:$0xff]  ;;  %v10270_v0 = vand.u32 4294901760, %v10255_v10 }
 0x10e   : > { %2025 = vmatprep.mubr.f32.mxu1 %v10228_v59  ;;  %2307 = vmatpush1.msra.mxu0 %v10230_v44  ;;  %v10258_v59 = vand.u32 4294901760, %v10257_v45 }
 0x10f   : > { %2664 = vmatprep.subr.mxu1 %v9935_v1  ;;  %2308 = vmatprep.subr.mxu0 %v9935_v1 }
 0x110   : > { %1636 = vmatmul.mubr.f32.gmra.mxu0 %v10231_v2  ;;  %2029 = vmatmul.mubr.f32.gmra.mxu1 %v10232_v11  ;;  %v10259_v2 = vld [vmem:[#allocation119_spill] sm:$0xff]  ;;  %v10260_v11 = vand.u32 4294901760, %v10245_v52 }
 0x111   : > { %2666 = vmatpush1.msra.mxu1 %v10233_v13  ;;  %1642 = vmatprep.mubr.f32.mxu0 %v10234_v27 }
 0x112   : > { %2036 = vmatprep.mubr.f32.mxu1 %v10235_v30  ;;  %2312 = vmatpush1.msra.mxu0 %v10237_v12  ;;  %v10261_v30 = vld [vmem:[#allocation15_spill] sm:$0xff]  ;;  %v10262_v12 = vld [vmem:[#allocation121_spill] sm:$0xff] }
 0x113   : > { %2667 = vmatprep.subr.mxu1 %v9935_v1  ;;  %2313 = vmatprep.subr.mxu0 %v9935_v1 }
 0x114   : > { %1645 = vmatmul.mubr.f32.gmra.mxu0 %v10238_v4  ;;  %2040 = vmatmul.mubr.f32.gmra.mxu1 %v10239_v34  ;;  %v10263_v34 = vand.u32 4294901760, %v10248_v46 }
 0x115   : > { %2669 = vmatpush1.msra.mxu1 %v10240_v50  ;;  %1651 = vmatprep.mubr.f32.mxu0 %v10241_v17  ;;  %v10264_v50 = vld [vmem:[#allocation22_spill] sm:$0xff] }
 0x116   : > { %2047 = vmatprep.mubr.f32.mxu1 %v10242_v16  ;;  %2317 = vmatpush1.msra.mxu0 %v10244_v40  ;;  %v10265_v17 = vand.u32 4294901760, %v10264_v50  ;;  %v10266_v40 = vld [vmem:[#allocation123_spill] sm:$0xff] }
 0x117   : > { %v459_v43 = vpop.f32.mrf.mxu0  ;;  %2670 = vmatprep.subr.mxu1 %v9935_v1  ;;  %2318 = vmatprep.subr.mxu0 %v9935_v1 }
 0x118   : > { %1654 = vmatmul.mubr.f32.gmra.mxu0 %v10245_v52  ;;  %2051 = vmatmul.mubr.f32.gmra.mxu1 %v10246_v25  ;;  %v460_v47 = vadd.f32 %v459_v43, %v7499_v6  ;;  %v10267_v43 = vand.u32 4294901760, %v10252_v9 }
 0x119   : > { %2672 = vmatpush1.msra.mxu1 %v10247_v14  ;;  %v461_v18 = vpop.f32.mrf.mxu0  ;;  %1660 = vmatprep.mubr.f32.mxu0 %v10248_v46  ;;  %v10268_v14 = vld [vmem:[#allocation17_spill] sm:$0xff] }
 0x11a   : > { %2058 = vmatprep.mubr.f32.mxu1 %v10249_v28  ;;  %2322 = vmatpush1.msra.mxu0 %v10251_v24  ;;  %v10269_v46 = vld [vmem:[#allocation125_spill] sm:$0xff]  ;;  %v10271_v24 = vld [vmem:[#allocation24_spill] sm:$0xff] }
 0x11b   : > { %v474_v54 = vpop.f32.mrf.mxu0  ;;  %2673 = vmatprep.subr.mxu1 %v9935_v1  ;;  %2323 = vmatprep.subr.mxu0 %v9935_v1 }
 0x11c   : > { %1663 = vmatmul.mubr.f32.gmra.mxu0 %v10252_v9  ;;  %2062 = vmatmul.mubr.f32.gmra.mxu1 %v10253_v35  ;;  %v475_v13 = vadd.f32 %v474_v54, %v7499_v6  ;;  %v10272_v54 = vand.u32 4294901760, %v10271_v24 }
 0x11d   : > { %2675 = vmatpush1.msra.mxu1 %v10254_v56  ;;  %v476_v60 = vpop.f32.mrf.mxu0  ;;  %1669 = vmatprep.mubr.f32.mxu0 %v10255_v10  ;;  %v10274_v56 = vand.u32 4294901760, %v10259_v2  ;;  %v10275_v10 = vld [vmem:[#allocation19_spill] sm:$0xff] }
 0x11e   : > { %2069 = vmatprep.mubr.f32.mxu1 %v10256_v39  ;;  %2327 = vmatpush2.msra.mxu0 %v10258_v59  ;;  %v10276_v59 = vld [vmem:[#allocation130_spill] sm:$0xff] }
 0x11f   : > { %v489_v21 = vpop.f32.mrf.mxu0  ;;  %2676 = vmatprep.subr.mxu1 %v9935_v1  ;;  %2328 = vmatprep.subr.mxu0 %v9935_v1 }
 0x120   : > { %v1156_v44 = vpop.f32.mrf.mxu1  ;;  %1672 = vmatmul.mubr.f32.gmra.mxu0 %v10259_v2  ;;  %2073 = vmatmul.mubr.f32.gmra.mxu1 %v10260_v11  ;;  %v490_v52 = vadd.f32 %v489_v21, %v7499_v6  ;;  %v10278_v11 = vld [vmem:[#allocation26_spill] sm:$0xff] }
 0x121   : > { %v7523_v27 = vadd.f32 %v1156_v44, %v460_v47  ;;  %2678 = vmatpush2.msra.mxu1 %v10261_v30  ;;  %v491_v15 = vpop.f32.mrf.mxu0  ;;  %1678 = vmatprep.mubr.f32.mxu0 %v10262_v12  ;;  %v10273_v47 = vld [vmem:[#allocation127_spill] sm:$0xff]  ;;  %v10277_v44 = vand.u32 4294901760, %v10262_v12 }
 0x122   : > { %v1158_v4 = vpop.f32.mrf.mxu1  ;;  %2080 = vmatprep.mubr.f32.mxu1 %v10263_v34  ;;  %2332 = vmatpush2.msra.mxu0 %v10265_v17  ;;  %v10280_v15 = vld [vmem:[#allocation132_spill] sm:$0xff]  ;;  %v10282_v17 = vld [vmem:[#allocation133_spill] sm:$0xff] }
 0x123   : > { %v504_v16 = vpop.f32.mrf.mxu0  ;;  %2679 = vmatprep.subr.mxu1 %v9935_v1  ;;  %2333 = vmatprep.subr.mxu0 %v9935_v1  ;;  %v10281_v4 = vand.u32 4294901760, %v10266_v40 }
 0x124   : > { %v1163_v5 = vpop.f32.mrf.mxu1  ;;  %1681 = vmatmul.mubr.f32.gmra.mxu0 %v10266_v40  ;;  %2084 = vmatmul.mubr.f32.gmra.mxu1 %v10267_v43  ;;  %v505_v60 = vadd.f32 %v504_v16, %v7499_v6  ;;  %v10284_v43 = vld [vmem:[#allocation28_spill] sm:$0xff] }
 0x125   : > { %v7537_v25 = vadd.f32 %v1163_v5, %v475_v13  ;;  %2681 = vmatpush2.msra.mxu1 %v10268_v14  ;;  %v506_v18 = vpop.f32.mrf.mxu0  ;;  %1687 = vmatprep.mubr.f32.mxu0 %v10269_v46  ;;  %v10279_v13 = vand.u32 4294901760, %v10278_v11  ;;  %v10283_v5 = vand.u32 4294901760, %v10269_v46  ;;  %v10288_v46 = vld [vmem:[#allocation23_spill] sm:$0xff] }
 0x126   : > { %v1165_v28 = vpop.f32.mrf.mxu1  ;;  %2091 = vmatprep.mubr.f32.mxu1 %v10270_v0  ;;  %2337 = vmatpush2.msra.mxu0 %v10272_v54  ;;  %v10286_v18 = vld [vmem:[#allocation135_spill] sm:$0xff]  ;;  %v10289_v54 = vld [vmem:[#allocation137_spill] sm:$0xff] }
 0x127   : > { %v519_v35 = vpop.f32.mrf.mxu0  ;;  %2682 = vmatprep.subr.mxu1 %v9935_v1  ;;  %2338 = vmatprep.subr.mxu0 %v9935_v1 }
 0x128   : > { %v1170_v9 = vpop.f32.mrf.mxu1  ;;  %1690 = vmatmul.mubr.f32.gmra.mxu0 %v10273_v47  ;;  %2095 = vmatmul.mubr.f32.gmra.mxu1 %v10274_v56  ;;  %v520_v34 = vadd.f32 %v519_v35, %v7499_v6  ;;  %v10291_v56 = vld [vmem:[#allocation30_spill] sm:$0xff] }
 0x129   : > { %v7551_v39 = vadd.f32 %v1170_v9, %v490_v52  ;;  %2684 = vmatpush2.msra.mxu1 %v10275_v10  ;;  %v521_v45 = vpop.f32.mrf.mxu0  ;;  %1696 = vmatprep.mubr.f32.mxu0 %v10276_v59  ;;  %v10285_v52 = vand.u32 4294901760, %v10284_v43  ;;  %v10290_v9 = vand.u32 4294901760, %v10276_v59  ;;  %v10295_v59 = vld [vmem:[#allocation25_spill] sm:$0xff]  ;;  %v10301_v43 = vand.u32 4294901760, %v10286_v18 }
 0x12a   : > { %v1172_v21 = vpop.f32.mrf.mxu1  ;;  %2102 = vmatprep.mubr.f32.mxu1 %v10277_v44  ;;  %2342 = vmatpush2.msra.mxu0 %v10279_v13  ;;  %v10293_v45 = vld [vmem:[#allocation139_spill] sm:$0xff] }
 0x12b   : > { %v534_v30 = vpop.f32.mrf.mxu0  ;;  %2685 = vmatprep.subr.mxu1 %v9935_v1  ;;  %2343 = vmatprep.subr.mxu0 %v9935_v1  ;;  %v10294_v21 = vand.u32 4294901760, %v10280_v15 }
 0x12c   : > { %v1177_v2 = vpop.f32.mrf.mxu1  ;;  %1699 = vmatmul.mubr.f32.gmra.mxu0 %v10280_v15  ;;  %2106 = vmatmul.mubr.f32.gmra.mxu1 %v10281_v4  ;;  %v535_v28 = vadd.f32 %v534_v30, %v7499_v6  ;;  %v10296_v30 = vld [vmem:[#allocation141_spill] sm:$0xff]  ;;  %v10297_v4 = vand.u32 4294901760, %v10282_v17 }
 0x12d   : > { %v7565_v50 = vadd.f32 %v1177_v2, %v505_v60  ;;  %2687 = vmatpush2.msra.mxu1 %v10115_v19  ;;  %v536_v12 = vpop.f32.mrf.mxu0  ;;  %1705 = vmatprep.mubr.f32.mxu0 %v10282_v17  ;;  %v10287_v19 = vand.u32 4294901760, %v10273_v47  ;;  %v10292_v60 = vand.u32 4294901760, %v10291_v56  ;;  %v10302_v17 = vld [vmem:[#allocation27_spill] sm:$0xff]  ;;  %v10307_v56 = vld [vmem:[#allocation146_spill] sm:$0xff] }
 0x12e   : > { %v1179_v16 = vpop.f32.mrf.mxu1  ;;  %2113 = vmatprep.mubr.f32.mxu1 %v10283_v5  ;;  %2347 = vmatpush2.msra.mxu0 %v10285_v52  ;;  %v10300_v5 = vld [vmem:[#allocation143_spill] sm:$0xff] }
 0x12f   : > { %v549_v14 = vpop.f32.mrf.mxu0  ;;  %2688 = vmatprep.subr.mxu1 %v9935_v1  ;;  %2348 = vmatprep.subr.mxu0 %v9935_v1 }
 0x130   : > { %v1184_v40 = vpop.f32.mrf.mxu1  ;;  %1708 = vmatmul.mubr.f32.gmra.mxu0 %v10286_v18  ;;  %2117 = vmatmul.mubr.f32.gmra.mxu1 %v10287_v19  ;;  %v550_v44 = vadd.f32 %v549_v14, %v7499_v6  ;;  %v10303_v19 = vld [vmem:[#allocation145_spill] sm:$0xff] }
 0x131   : > { %v7579_v0 = vadd.f32 %v1184_v40, %v520_v34  ;;  %2690 = vmatpush2.msra.mxu1 %v10288_v46  ;;  %v551_v24 = vpop.f32.mrf.mxu0  ;;  %1714 = vmatprep.mubr.f32.mxu0 %v10289_v54  ;;  %v10298_v34 = vld [vmem:[#allocation32_spill] sm:$0xff]  ;;  %v10304_v46 = vand.u32 4294901760, %v10289_v54 }
 0x132   : > { %v1186_v35 = vpop.f32.mrf.mxu1  ;;  %2124 = vmatprep.mubr.f32.mxu1 %v10290_v9  ;;  %2352 = vmatpush2.msra.mxu0 %v10292_v60  ;;  %v10299_v12 = vand.u32 4294901760, %v10298_v34  ;;  %v10305_v24 = vld [vmem:[#allocation34_spill] sm:$0xff]  ;;  %v10308_v60 = vand.u32 4294901760, %v10293_v45 }
 0x133   : > { %v564_v10 = vpop.f32.mrf.mxu0  ;;  %2691 = vmatprep.subr.mxu1 %v9935_v1  ;;  %2353 = vmatprep.subr.mxu0 %v9935_v1  ;;  %v10306_v35 = vand.u32 4294901760, %v10305_v24 }
 0x134   : > { %v1191_v47 = vpop.f32.mrf.mxu1  ;;  %1717 = vmatmul.mubr.f32.gmra.mxu0 %v10293_v45  ;;  %2128 = vmatmul.mubr.f32.gmra.mxu1 %v10294_v21  ;;  %v565_v52 = vadd.f32 %v564_v10, %v7499_v6  ;;  %v10309_v21 = vld [vmem:[#allocation21_spill] sm:$0xff] }
 0x135   : > { %v7593_v11 = vadd.f32 %v1191_v47, %v535_v28  ;;  %2693 = vmatpush2.msra.mxu1 %v10295_v59  ;;  %v566_v13 = vpop.f32.mrf.mxu0  ;;  %1723 = vmatprep.mubr.f32.mxu0 %v10296_v30  ;;  %v10310_v59 = vand.u32 4294901760, %v10296_v30  ;;  %v10320_v24 = vand.u32 4294901760, %v10309_v21 }
 0x136   : > { %v1193_v2 = vpop.f32.mrf.mxu1  ;;  %2135 = vmatprep.mubr.f32.mxu1 %v10297_v4  ;;  %2357 = vmatpush2.msra.mxu0 %v10299_v12  ;;  %v10311_v13 = vand.u32 4294901760, %v10146_v55  ;;  %v10312_v4 = vld [vmem:[#allocation148_spill] sm:$0xff]  ;;  %v10314_v55 = vld [vmem:[#allocation149_spill] sm:$0xff] }
 0x137   : > { %v579_v16 = vpop.f32.mrf.mxu0  ;;  %2694 = vmatprep.subr.mxu1 %v9935_v1  ;;  %2358 = vmatprep.subr.mxu0 %v9935_v1 }
 0x138   : > { %v1198_v15 = vpop.f32.mrf.mxu1  ;;  %1726 = vmatmul.mubr.f32.gmra.mxu0 %v10300_v5  ;;  %2139 = vmatmul.mubr.f32.gmra.mxu1 %v10301_v43  ;;  %v580_v10 = vadd.f32 %v579_v16, %v7499_v6  ;;  %v10316_v43 = vand.u32 4294901760, %v10151_v32  ;;  %v10319_v32 = vld [vmem:[#allocation153_spill] sm:$0xff] }
 0x139   : > { %v7607_v14 = vadd.f32 %v1198_v15, %v550_v44  ;;  %2696 = vmatpush2.msra.mxu1 %v10302_v17  ;;  %v581_v40 = vpop.f32.mrf.mxu0  ;;  %1732 = vmatprep.mubr.f32.mxu0 %v10303_v19  ;;  %v10315_v15 = vand.u32 4294901760, %v10303_v19  ;;  %v10317_v17 = vld [vmem:[#allocation151_spill] sm:$0xff] }
 0x13a   : > { %v1200_v28 = vpop.f32.mrf.mxu1  ;;  %2146 = vmatprep.mubr.f32.mxu1 %v10304_v46  ;;  %2362 = vmatpush2.msra.mxu0 %v10306_v35  ;;  %v10321_v35 = vand.u32 4294901760, %v10154_v41 }
 0x13b   : > { %v594_v9 = vpop.f32.mrf.mxu0  ;;  %2697 = vmatprep.subr.mxu1 %v9935_v1  ;;  %2363 = vmatprep.subr.mxu0 %v9935_v1 }
 0x13c   : > { %v1205_v18 = vpop.f32.mrf.mxu1  ;;  %1735 = vmatmul.mubr.f32.gmra.mxu0 %v10307_v56  ;;  %2150 = vmatmul.mubr.f32.gmra.mxu1 %v10308_v60  ;;  %v595_v34 = vadd.f32 %v594_v9, %v7499_v6  ;;  %v348_v60 = vld [vmem:[%s9401_s1 + $0x178] sm:$0xff] }
 0x13d   : > { %v7621_v47 = vadd.f32 %v1205_v18, %v565_v52  ;;  %2699 = vmatpush2.msra.mxu1 %v10143_v37  ;;  %v596_v54 = vpop.f32.mrf.mxu0  ;;  %1741 = vmatprep.mubr.f32.mxu0 %v10309_v21  ;;  %v10313_v37 = vand.u32 4294901760, %v10300_v5 }
 0x13e   : > { %v1207_v44 = vpop.f32.mrf.mxu1  ;;  %2157 = vmatprep.mubr.f32.mxu1 %v10310_v59  ;;  %2367 = vmatpush2.msra.mxu0 %v10311_v13  ;;  %v10325_v59 = vand.u32 4294901760, %v10156_v23 }
 0x13f   : > { %v609_v2 = vpop.f32.mrf.mxu0  ;;  %2700 = vmatprep.subr.mxu1 %v9935_v1  ;;  %2368 = vmatprep.subr.mxu0 %v9935_v1  ;;  %v10324_v44 = vand.u32 4294901760, %v10314_v55 }
 0x140   : > { %v1212_v45 = vpop.f32.mrf.mxu1  ;;  %1744 = vmatmul.mubr.f32.gmra.mxu0 %v10312_v4  ;;  %2161 = vmatmul.mubr.f32.gmra.mxu1 %v10313_v37  ;;  %v610_v40 = vadd.f32 %v609_v2, %v7499_v6  ;;  %v7676_v2 = vand.u32 4294901760, %v348_v60 }
 0x141   : > { %v7635_v12 = vadd.f32 %v1212_v45, %v580_v10  ;;  %2702 = vmatpush2.msra.mxu1 %v10149_v22  ;;  %v611_v30 = vpop.f32.mrf.mxu0  ;;  %1750 = vmatprep.mubr.f32.mxu0 %v10314_v55  ;;  %v10318_v22 = vand.u32 4294901760, %v10307_v56  ;;  %v10322_v56 = vld [vmem:[#allocation155_spill] sm:$0xff]  ;;  %v10327_v55 = vand.u32 4294901760, %v10319_v32 }
 0x142   : > { %v1214_v16 = vpop.f32.mrf.mxu1  ;;  %2168 = vmatprep.mubr.f32.mxu1 %v10315_v15  ;;  %2372 = vmatpush2.msra.mxu0 %v10316_v43 }
 0x143   : > { %v624_v52 = vpop.f32.mrf.mxu0  ;;  %2703 = vmatprep.subr.mxu1 %v9935_v1  ;;  %2373 = vmatprep.subr.mxu0 %v9935_v1  ;;  %v10328_v16 = vand.u32 4294901760, %v10158_v8  ;;  %v346_v8 = vld [vmem:[%s9401_s1 + $0x168] sm:$0xff] }
 0x144   : > { %v1219_v5 = vpop.f32.mrf.mxu1  ;;  %1753 = vmatmul.mubr.f32.gmra.mxu0 %v10317_v17  ;;  %2172 = vmatmul.mubr.f32.gmra.mxu1 %v10318_v22  ;;  %v625_v10 = vadd.f32 %v624_v52, %v7499_v6  ;;  %v7698_v52 = vsub.f32 %v348_v60, %v7676_v2  ;;  %v10334_v60 = vand.u32 4294901760, %v6487_v7 }
 0x145   : > { %v7649_v28 = vadd.f32 %v1219_v5, %v595_v34  ;;  %2705 = vmatpush2.msra.mxu1 %v10153_v36  ;;  %v626_v19 = vpop.f32.mrf.mxu0  ;;  %1759 = vmatprep.mubr.f32.mxu0 %v10319_v32  ;;  %v10323_v36 = vand.u32 4294901760, %v10312_v4  ;;  %v10326_v4 = vand.u32 4294901760, %v10317_v17  ;;  %v10329_v5 = vand.u32 4294901760, %v10322_v56 }
 0x146   : > { %v1221_v46 = vpop.f32.mrf.mxu1  ;;  %2179 = vmatprep.mubr.f32.mxu1 %v10320_v24  ;;  %2377 = vmatpush2.msra.mxu0 %v10321_v35  ;;  %v10330_v32 = vand.u32 4294901760, %v7214_v42 }
 0x147   : > { %v639_v9 = vpop.f32.mrf.mxu0  ;;  %2706 = vmatprep.subr.mxu1 %v9935_v1  ;;  %2378 = vmatprep.subr.mxu0 %v9935_v1  ;;  %v10331_v46 = vand.u32 4294901760, %v10160_v63  ;;  %v345_v63 = vld [vmem:[%s9401_s1 + $0x160] sm:$0xff] }
 0x148   : > { %v1226_v18 = vpop.f32.mrf.mxu1  ;;  %1762 = vmatmul.mubr.f32.gmra.mxu0 %v10322_v56  ;;  %2183 = vmatmul.mubr.f32.gmra.mxu1 %v10323_v36  ;;  %v640_v23 = vadd.f32 %v639_v9, %v7499_v6  ;;  %v7723_v9 = vand.u32 4294901760, %v346_v8 }
 0x149   : > { %v7666_v54 = vadd.f32 %v1226_v18, %v610_v40  ;;  %2708 = vmatpush2.msra.mxu1 %v10155_v61  ;;  %v641_v41 = vpop.f32.mrf.mxu0  ;;  %1768 = vmatprep.mubr.f32.mxu0 %v7214_v42  ;;  %v347_v61 = vld [vmem:[%s9401_s1 + $0x170] sm:$0xff]  ;;  %v10333_v42 = vand.u32 4294901760, %v7227_v29 }
 0x14a   : > { %v1228_v21 = vpop.f32.mrf.mxu1  ;;  %2190 = vmatprep.mubr.f32.mxu1 %v10324_v44  ;;  %2382 = vmatpush2.msra.mxu0 %v10325_v59  ;;  %v7693_v15 = vand.u32 4294901760, %v347_v61  ;;  %v10337_v44 = vand.u32 4294901760, %v10162_v58  ;;  %v10338_v59 = vld [vmem:[#allocation39_spill] sm:$0xff]  ;;  %v344_v58 = vld [vmem:[%s9401_s1 + $0x158] sm:$0xff] }
 0x14b   : > { %v654_v13 = vpop.f32.mrf.mxu0  ;;  %2709 = vmatprep.subr.mxu1 %v9935_v1  ;;  %2383 = vmatprep.subr.mxu0 %v9935_v1 }
 0x14c   : > { %v1233_v45 = vpop.f32.mrf.mxu1  ;;  %1771 = vmatmul.mubr.f32.gmra.mxu0 %v7227_v29  ;;  %2194 = vmatmul.mubr.f32.gmra.mxu1 %v10326_v4  ;;  %v655_v17 = vadd.f32 %v654_v13, %v7499_v6  ;;  %v7716_v24 = vsub.f32 %v347_v61, %v7693_v15  ;;  %v10335_v29 = vand.u32 4294901760, %v7240_v57  ;;  %v7751_v61 = vand.u32 4294901760, %v345_v63  ;;  %v10340_v4 = vld [vmem:[#allocation40_spill] sm:$0xff] }
 0x14d   : > { %v7685_v37 = vadd.f32 %v1233_v45, %v625_v10  ;;  %2711 = vmatpush2.msra.mxu1 %v10157_v62  ;;  %v656_v34 = vpop.f32.mrf.mxu0  ;;  %1777 = vmatprep.mubr.f32.mxu0 %v7240_v57  ;;  %v10339_v57 = vand.u32 4294901760, %v7252_v31 }
 0x14e   : > { %v1235_v30 = vpop.f32.mrf.mxu1  ;;  %2201 = vmatprep.mubr.f32.mxu1 %v10327_v55  ;;  %2387 = vmatpush2.msra.mxu0 %v10328_v16  ;;  %v7741_v21 = vand.u32 4294901760, %v7716_v24  ;;  %v10341_v55 = vand.u32 4294901760, %v7264_v51  ;;  %v10342_v16 = vld [vmem:[#allocation42_spill] sm:$0xff] }
 0x14f   : > { %v669_v43 = vpop.f32.mrf.mxu0  ;;  %2712 = vmatprep.subr.mxu1 %v9935_v1  ;;  %2388 = vmatprep.subr.mxu0 %v9935_v1 }
 0x150   : > { %v1240_v62 = vpop.f32.mrf.mxu1  ;;  %1780 = vmatmul.mubr.f32.gmra.mxu0 %v7252_v31  ;;  %2205 = vmatmul.mubr.f32.gmra.mxu1 %v10329_v5  ;;  %v670_v56 = vadd.f32 %v669_v43, %v7499_v6  ;;  %10336 = vst [vmem:[#allocation38_spill] sm:$0xff] %v7741_v21  ;;  %v3361_v43 = vsub.f32 %v7716_v24, %v7741_v21  ;;  %v10371_v21 = vld [vmem:[#allocation70_spill] sm:$0xff] }
 0x151   : > { %v7707_v22 = vadd.f32 %v1240_v62, %v640_v23  ;;  %2714 = vmatpush2.msra.mxu1 %v10159_v3  ;;  %v671_v40 = vpop.f32.mrf.mxu0  ;;  %1786 = vmatprep.mubr.f32.mxu0 %v7264_v51  ;;  %v7721_v3 = vand.u32 4294901760, %v7698_v52  ;;  %v7775_v51 = vsub.f32 %v345_v63, %v7751_v61 }
 0x152   : > { %v1242_v19 = vpop.f32.mrf.mxu1  ;;  %2212 = vmatprep.mubr.f32.mxu1 %v10330_v32  ;;  %2392 = vmatpush2.msra.mxu0 %v10331_v46  ;;  %v10345_v40 = vand.u32 4294901760, %v7274_v20 }
 0x153   : > { %v684_v35 = vpop.f32.mrf.mxu0  ;;  %2393 = vmatprep.subr.mxu0 %v9935_v1  ;;  %2715 = vmatprep.subr.mxu1 %v9935_v1  ;;  %10332 = vst [vmem:[#allocation31_spill] sm:$0xff] %v7721_v3  ;;  %v3354_v7 = vsub.f32 %v7698_v52, %v7721_v3  ;;  %v10346_v19 = vld [vmem:[#allocation49_spill] sm:$0xff] }
 0x154   : > { %v1247_v18 = vpop.f32.mrf.mxu1  ;;  %1789 = vmatmul.mubr.f32.gmra.mxu0 %v7274_v20  ;;  %2216 = vmatmul.mubr.f32.gmra.mxu1 %v10333_v42  ;;  %v685_v23 = vadd.f32 %v684_v35, %v7499_v6  ;;  %v3362_v20 = vand.u32 4294901760, %v3361_v43 }
 0x155   : > { %v7732_v36 = vadd.f32 %v1247_v18, %v655_v17  ;;  %2397 = vmatpush2.msra.mxu0 %v10334_v60  ;;  %2717 = vmatpush2.msra.mxu1 %v10161_v26  ;;  %v686_v10 = vpop.f32.mrf.mxu0  ;;  %v7749_v26 = vsub.f32 %v346_v8, %v7723_v9  ;;  %v3355_v5 = vand.u32 4294901760, %v3354_v7  ;;  %v7777_v17 = vand.u32 4294901760, %v344_v58  ;;  %v10347_v18 = vld [vmem:[#allocation51_spill] sm:$0xff] }
 0x156   : > { %v1249_v41 = vpop.f32.mrf.mxu1  ;;  %2398 = vmatprep.subr.mxu0 %v9935_v1  ;;  %2223 = vmatprep.mubr.f32.mxu1 %v10335_v29  ;;  %v7796_v60 = vand.u32 4294901760, %v7775_v51 }
 0x157   : > { %2402 = vmatpush2.msra.mxu0 %v10337_v44  ;;  %2404 = vmatprep.mubr.f32.mxu0 %v10338_v59  ;;  %v699_v13 = vpop.f32.mrf.mxu0  ;;  %v7772_v8 = vand.u32 4294901760, %v7749_v26  ;;  %10344 = vst [vmem:[#allocation41_spill] sm:$0xff] %v7777_v17  ;;  %v342_v41 = vld [vmem:[%s9401_s1 + $0x148] sm:$0xff] }
 0x158   : > { %v1254_v45 = vpop.f32.mrf.mxu1  ;;  %2227 = vmatmul.mubr.f32.gmra.mxu1 %v10339_v57  ;;  %2406 = vmatmul.mubr.f32.vlgmr.msra.gmra.mxu0 %v10340_v4  ;;  %v700_v32 = vadd.f32 %v699_v13, %v7499_v6  ;;  %10348 = vst [vmem:[#allocation36_spill] sm:$0xff] %v7796_v60  ;;  %v10350_v44 = vld [vmem:[#allocation55_spill] sm:$0xff] }
 0x159   : > { %v7760_v34 = vadd.f32 %v1254_v45, %v670_v56  ;;  %2718 = vmatprep.subr.mxu1 %v9935_v1  ;;  %v701_v30 = vpop.f32.mrf.mxu0  ;;  %2234 = vmatprep.mubr.f32.mxu1 %v10341_v55  ;;  %10343 = vst [vmem:[#allocation33_spill] sm:$0xff] %v7772_v8  ;;  %v3368_v56 = vsub.f32 %v7749_v26, %v7772_v8  ;;  %v10351_v45 = vld [vmem:[#allocation58_spill] sm:$0xff] }
 0x15a   : > { %2720 = vmatpush2.msra.mxu1 %v10165_v38  ;;  %v1256_v31 = vpop.f32.mrf.mxu1  ;;  %2411 = vmatprep.mubr.f32.mxu0 %v10342_v16  ;;  %v3375_v30 = vsub.f32 %v7775_v51, %v7796_v60 }
 0x15b   : > { %v714_v62 = vpop.f32.mrf.mxu0  ;;  %2721 = vmatprep.subr.mxu1 %v9935_v1  ;;  %5342 = vmatprep.subr.mxu0 %v7676_v2  ;;  %v343_v1 = vld [vmem:[%s9401_s1 + $0x150] sm:$0xff] }
 0x15c   : > { %v1261_v38 = vpop.f32.mrf.mxu1  ;;  %2238 = vmatmul.mubr.f32.gmra.mxu1 %v10345_v40  ;;  %2413 = vmatmul.mubr.f32.gmra.mxu0 %v10346_v19  ;;  %v7801_v10 = vand.u32 4294901760, %v343_v1 }
 0x15d   : > { %v7786_v46 = vadd.f32 %v1261_v38, %v685_v23  ;;  %2723 = vmatpush2.msra.mxu1 %v10168_v48  ;;  %v716_v35 = vpop.f32.mrf.mxu0  ;;  %2418 = vmatprep.mubr.f32.mxu0 %v10347_v18  ;;  %v7799_v48 = vsub.f32 %v344_v58, %v7777_v17  ;;  %v7814_v58 = vand.u32 4294901760, %v342_v41 }
 0x15e   : > { %v1263_v42 = vpop.f32.mrf.mxu1  ;;  %2725 = vmatprep.mubr.f32.mxu1 %v10338_v59  ;;  %5343 = vmatpush3.msra.mxu0 %v7676_v2  ;;  %10349 = vst [vmem:[#allocation44_spill] sm:$0xff] %v7801_v10  ;;  %v715_v59 = vadd.f32 %v714_v62, %v7499_v6  ;;  %v7823_v31 = vsub.f32 %v343_v1, %v7801_v10  ;;  %v341_v62 = vld [vmem:[%s9401_s1 + $0x140] sm:$0xff] }
 0x15f   : > { %v729_v63 = vpop.f32.mrf.mxu0  ;;  %5422 = vmatprep.subr.mxu1 %v3355_v5  ;;  %5344 = vmatprep.subr.mxu0 %v7693_v15  ;;  %10352 = vst [vmem:[#allocation37_spill] sm:$0xff] %v7814_v58  ;;  %v7820_v55 = vand.u32 4294901760, %v7799_v48  ;;  %v7837_v35 = vsub.f32 %v342_v41, %v7814_v58  ;;  %v3376_v42 = vand.u32 4294901760, %v3375_v30  ;;  %v340_v41 = vld [vmem:[%s9401_s1 + $0x138] sm:$0xff]  ;;  %v10361_v30 = vld [vmem:[#allocation64_spill] sm:$0xff] }
 0x160   : > { %v1268_v29 = vpop.f32.mrf.mxu1  ;;  %2420 = vmatmul.mubr.f32.gmra.mxu0 %v10350_v44  ;;  %2727 = vmatmul.mubr.f32.vlgmr.msra.gmra.mxu1 %v10340_v4  ;;  %v3369_v4 = vand.u32 4294901760, %v3368_v56  ;;  %10354 = vst [vmem:[#allocation43_spill] sm:$0xff] %v7823_v31  ;;  %v7843_v56 = vand.u32 4294901760, %v7823_v31 }
 0x161   : > { %v7809_v13 = vadd.f32 %v1268_v29, %v700_v32  ;;  %5423 = vmatpush3.msra.mxu1 %v3355_v5  ;;  %v731_v7 = vpop.f32.mrf.mxu0  ;;  %2425 = vmatprep.mubr.f32.mxu0 %v10351_v45  ;;  %10353 = vst [vmem:[#allocation53_spill] sm:$0xff] %v7820_v55  ;;  %v730_v5 = vadd.f32 %v729_v63, %v7499_v6  ;;  %v10356_v32 = vld [vmem:[#allocation62_spill] sm:$0xff]  ;;  %10357 = vst [vmem:[#allocation54_spill] sm:$0xff] %v7837_v35  ;;  %v7845_v29 = vand.u32 4294901760, %v341_v62 }
 0x162   : > { %v1270_v57 = vpop.f32.mrf.mxu1  ;;  %2732 = vmatprep.mubr.f32.mxu1 %v10342_v16  ;;  %5345 = vmatpush3.msra.mxu0 %v7693_v15  ;;  %v10355_v16 = vld [vmem:[#allocation60_spill] sm:$0xff]  ;;  %v3382_v63 = vsub.f32 %v7799_v48, %v7820_v55  ;;  %10358 = vst [vmem:[#allocation45_spill] sm:$0xff] %v7843_v56 }
 0x163   : > { %v744_v23 = vpop.f32.mrf.mxu0  ;;  %5424 = vmatprep.subr.mxu1 %v3362_v20  ;;  %5346 = vmatprep.subr.mxu0 %v7723_v9  ;;  %10359 = vst [vmem:[#allocation59_spill] sm:$0xff] %v7845_v29 }
 0x164   : > { %v1275_v43 = vpop.f32.mrf.mxu1  ;;  %2427 = vmatmul.mubr.f32.gmra.mxu0 %v10355_v16  ;;  %2734 = vmatmul.mubr.f32.gmra.mxu1 %v10346_v19 }
 0x165   : > { %v7831_v38 = vadd.f32 %v1275_v43, %v715_v59  ;;  %v746_v40 = vpop.f32.mrf.mxu0  ;;  %2432 = vmatprep.mubr.f32.mxu0 %v10356_v32  ;;  %2739 = vmatprep.mubr.f32.mxu1 %v10347_v18  ;;  %v745_v59 = vadd.f32 %v744_v23, %v7499_v6  ;;  %v3389_v23 = vsub.f32 %v7823_v31, %v7843_v56  ;;  %v10366_v56 = vld [vmem:[#allocation67_spill] sm:$0xff] }
 0x166   : > { %v1277_v1 = vpop.f32.mrf.mxu1  ;;  %5425 = vmatpush3.msra.mxu1 %v3362_v20  ;;  %5347 = vmatpush3.msra.mxu0 %v7723_v9  ;;  %v10360_v20 = vld [vmem:[#allocation63_spill] sm:$0xff]  ;;  %v7859_v40 = vand.u32 4294901760, %v7837_v35 }
 0x167   : > { %v759_v19 = vpop.f32.mrf.mxu0  ;;  %5426 = vmatprep.subr.mxu1 %v3369_v4  ;;  %5348 = vmatprep.subr.mxu0 %v7751_v61  ;;  %v3383_v1 = vand.u32 4294901760, %v3382_v63  ;;  %v3390_v8 = vand.u32 4294901760, %v3389_v23 }
 0x168   : > { %v1282_v18 = vpop.f32.mrf.mxu1  ;;  %2434 = vmatmul.mubr.f32.gmra.mxu0 %v10360_v20  ;;  %2741 = vmatmul.mubr.f32.gmra.mxu1 %v10350_v44  ;;  %10362 = vst [vmem:[#allocation46_spill] sm:$0xff] %v7859_v40 }
 0x169   : > { %v7853_v7 = vadd.f32 %v1282_v18, %v730_v5  ;;  %v761_v57 = vpop.f32.mrf.mxu0  ;;  %2439 = vmatprep.mubr.f32.mxu0 %v10361_v30  ;;  %2746 = vmatprep.mubr.f32.mxu1 %v10351_v45  ;;  %v7865_v5 = vsub.f32 %v341_v62, %v7845_v29  ;;  %v7867_v18 = vand.u32 4294901760, %v340_v41 }
 0x16a   : > { %v1284_v43 = vpop.f32.mrf.mxu1  ;;  %5427 = vmatpush3.msra.mxu1 %v3369_v4  ;;  %5349 = vmatpush3.msra.mxu0 %v7751_v61  ;;  %v10365_v4 = vld [vmem:[#allocation65_spill] sm:$0xff]  ;;  %v339_v57 = vld [vmem:[%s9401_s1 + $0x130] sm:$0xff] }
 0x16b   : > { %v774_v44 = vpop.f32.mrf.mxu0  ;;  %5428 = vmatprep.subr.mxu1 %v3376_v42  ;;  %5350 = vmatprep.subr.mxu0 %v7777_v17  ;;  %10363 = vst [vmem:[#allocation48_spill] sm:$0xff] %v7865_v5  ;;  %10364 = vst [vmem:[#allocation47_spill] sm:$0xff] %v7867_v18  ;;  %v760_v43 = vadd.f32 %v759_v19, %v7499_v6  ;;  %v7884_v19 = vand.u32 4294901760, %v7865_v5 }
 0x16c   : > { %v1289_v45 = vpop.f32.mrf.mxu1  ;;  %2441 = vmatmul.mubr.f32.gmra.mxu0 %v10365_v4  ;;  %2748 = vmatmul.mubr.f32.gmra.mxu1 %v10355_v16  ;;  %v3396_v16 = vsub.f32 %v7837_v35, %v7859_v40 }
 0x16d   : > { %v7875_v63 = vadd.f32 %v1289_v45, %v745_v59  ;;  %v776_v55 = vpop.f32.mrf.mxu0  ;;  %2446 = vmatprep.mubr.f32.mxu0 %v10366_v56  ;;  %2753 = vmatprep.mubr.f32.mxu1 %v10356_v32  ;;  %10367 = vst [vmem:[#allocation50_spill] sm:$0xff] %v7884_v19  ;;  %v7889_v59 = vand.u32 4294901760, %v339_v57  ;;  %v338_v45 = vld [vmem:[%s9401_s1 + $0x128] sm:$0xff] }
 0x16e   : > { %v1291_v62 = vpop.f32.mrf.mxu1  ;;  %5429 = vmatpush3.msra.mxu1 %v3376_v42  ;;  %5351 = vmatpush3.msra.mxu0 %v7777_v17  ;;  %v7887_v55 = vsub.f32 %v340_v41, %v7867_v18  ;;  %v10370_v42 = vld [vmem:[#allocation69_spill] sm:$0xff]  ;;  %v3397_v3 = vand.u32 4294901760, %v3396_v16  ;;  %v10375_v16 = vld [vmem:[#allocation72_spill] sm:$0xff] }
 0x16f   : > { %v789_v60 = vpop.f32.mrf.mxu0  ;;  %5430 = vmatprep.subr.mxu1 %v3383_v1  ;;  %5352 = vmatprep.subr.mxu0 %v7801_v10  ;;  %10369 = vst [vmem:[#allocation52_spill] sm:$0xff] %v7889_v59  ;;  %v775_v62 = vadd.f32 %v774_v44, %v7499_v6 }
 0x170   : > { %10368 = vst [vmem:[#allocation56_spill] sm:$0xff] %v7887_v55  ;;  %v1296_v32 = vpop.f32.mrf.mxu1  ;;  %2448 = vmatmul.mubr.f32.gmra.mxu0 %v10370_v42  ;;  %2755 = vmatmul.mubr.f32.gmra.mxu1 %v10360_v20  ;;  %v3403_v20 = vsub.f32 %v7865_v5, %v7884_v19  ;;  %v7906_v44 = vand.u32 4294901760, %v7887_v55  ;;  %v10376_v5 = vld [vmem:[#allocation75_spill] sm:$0xff] }
 0x171   : > { %v7897_v23 = vadd.f32 %v1296_v32, %v760_v43  ;;  %v791_v40 = vpop.f32.mrf.mxu0  ;;  %2453 = vmatprep.mubr.f32.mxu0 %v10371_v21  ;;  %2760 = vmatprep.mubr.f32.mxu1 %v10361_v30  ;;  %v7911_v43 = vand.u32 4294901760, %v338_v45  ;;  %v337_v30 = vld [vmem:[%s9401_s1 + $0x120] sm:$0xff]  ;;  %v790_v32 = vadd.f32 %v789_v60, %v7499_v6 }
 0x172   : > { %v1298_v41 = vpop.f32.mrf.mxu1  ;;  %5431 = vmatpush3.msra.mxu1 %v3383_v1  ;;  %5353 = vmatpush3.msra.mxu0 %v7801_v10  ;;  %10372 = vst [vmem:[#allocation57_spill] sm:$0xff] %v7906_v44  ;;  %v7909_v40 = vsub.f32 %v339_v57, %v7889_v59  ;;  %v7924_v10 = vand.u32 4294901760, %v337_v30  ;;  %v3410_v60 = vsub.f32 %v7887_v55, %v7906_v44  ;;  %v10381_v55 = vld [vmem:[#allocation79_spill] sm:$0xff] }
 0x173   : > { %v804_v35 = vpop.f32.mrf.mxu0  ;;  %5432 = vmatprep.subr.mxu1 %v3390_v8  ;;  %5354 = vmatprep.subr.mxu0 %v7814_v58  ;;  %10374 = vst [vmem:[#allocation66_spill] sm:$0xff] %v7911_v43 }
 0x174   : > { %10373 = vst [vmem:[#allocation61_spill] sm:$0xff] %v7909_v40  ;;  %v1303_v1 = vpop.f32.mrf.mxu1  ;;  %2455 = vmatmul.mubr.f32.gmra.mxu0 %v10375_v16  ;;  %2762 = vmatmul.mubr.f32.gmra.mxu1 %v10365_v4  ;;  %v3404_v4 = vand.u32 4294901760, %v3403_v20  ;;  %v805_v20 = vadd.f32 %v804_v35, %v7499_v6  ;;  %v3411_v17 = vand.u32 4294901760, %v3410_v60 }
 0x175   : > { %v7919_v41 = vadd.f32 %v1303_v1, %v775_v62  ;;  %v806_v19 = vpop.f32.mrf.mxu0  ;;  %2460 = vmatprep.mubr.f32.mxu0 %v10376_v5  ;;  %2767 = vmatprep.mubr.f32.mxu1 %v10366_v56  ;;  %v7933_v62 = vsub.f32 %v338_v45, %v7911_v43  ;;  %v336_v1 = vld [vmem:[%s9401_s1 + $0x118] sm:$0xff] }
 0x176   : > { %v1305_v57 = vpop.f32.mrf.mxu1  ;;  %5433 = vmatpush3.msra.mxu1 %v3390_v8  ;;  %5355 = vmatpush3.msra.mxu0 %v7814_v58  ;;  %v7930_v19 = vand.u32 4294901760, %v7909_v40  ;;  %v10379_v8 = vld [vmem:[#allocation77_spill] sm:$0xff]  ;;  %v7947_v58 = vsub.f32 %v337_v30, %v7924_v10  ;;  %v335_v30 = vld [vmem:[%s9401_s1 + $0x110] sm:$0xff] }
 0x177   : > { %v819_v31 = vpop.f32.mrf.mxu0  ;;  %5434 = vmatprep.subr.mxu1 %v3397_v3  ;;  %5356 = vmatprep.subr.mxu0 %v7845_v29  ;;  %10378 = vst [vmem:[#allocation68_spill] sm:$0xff] %v7933_v62 }
 0x178   : > { %10377 = vst [vmem:[#allocation6_spill] sm:$0xff] %v7930_v19  ;;  %v1310_v56 = vpop.f32.mrf.mxu1  ;;  %2462 = vmatmul.mubr.f32.gmra.mxu0 %v10379_v8  ;;  %2769 = vmatmul.mubr.f32.gmra.mxu1 %v10370_v42  ;;  %10382 = vst [vmem:[#allocation73_spill] sm:$0xff] %v7947_v58  ;;  %v3417_v35 = vsub.f32 %v7909_v40, %v7930_v19  ;;  %v10386_v19 = vld [vmem:[#allocation82_spill] sm:$0xff] }
 0x179   : > { %v7941_v57 = vadd.f32 %v1310_v56, %v790_v32  ;;  %v821_v44 = vpop.f32.mrf.mxu0  ;;  %2467 = vmatprep.mubr.f32.mxu0 %v10381_v55  ;;  %2774 = vmatprep.mubr.f32.mxu1 %v10371_v21  ;;  %v7955_v32 = vand.u32 4294901760, %v336_v1  ;;  %v820_v56 = vadd.f32 %v819_v31, %v7499_v6 }
 0x17a   : > { %v1312_v45 = vpop.f32.mrf.mxu1  ;;  %5435 = vmatpush3.msra.mxu1 %v3397_v3  ;;  %5357 = vmatpush3.msra.mxu0 %v7845_v29  ;;  %v7953_v44 = vand.u32 4294901760, %v7933_v62  ;;  %v10384_v3 = vld [vmem:[#allocation81_spill] sm:$0xff]  ;;  %v7969_v29 = vand.u32 4294901760, %v7947_v58 }
 0x17b   : > { %10380 = vst [vmem:[#allocation71_spill] sm:$0xff] %v7941_v57  ;;  %v834_v42 = vpop.f32.mrf.mxu0  ;;  %5436 = vmatprep.subr.mxu1 %v3404_v4  ;;  %5358 = vmatprep.subr.mxu0 %v7867_v18  ;;  %v3418_v57 = vand.u32 4294901760, %v3417_v35 }
 0x17c   : > { %10383 = vst [vmem:[#allocation74_spill] sm:$0xff] %v7953_v44  ;;  %v1317_v21 = vpop.f32.mrf.mxu1  ;;  %2469 = vmatmul.mubr.f32.gmra.mxu0 %v10384_v3  ;;  %2776 = vmatmul.mubr.f32.gmra.mxu1 %v10375_v16  ;;  %10387 = vst [vmem:[#allocation78_spill] sm:$0xff] %v7969_v29  ;;  %v3424_v31 = vsub.f32 %v7933_v62, %v7953_v44  ;;  %v10392_v44 = vld [vmem:[#allocation86_spill] sm:$0xff] }
 0x17d   : > { %v7963_v60 = vadd.f32 %v1317_v21, %v805_v20  ;;  %v836_v45 = vpop.f32.mrf.mxu0  ;;  %2474 = vmatprep.mubr.f32.mxu0 %v10386_v19  ;;  %2781 = vmatprep.mubr.f32.mxu1 %v10376_v5  ;;  %v7975_v20 = vsub.f32 %v336_v1, %v7955_v32  ;;  %v7977_v21 = vand.u32 4294901760, %v335_v30 }
 0x17e   : > { %v1319_v40 = vpop.f32.mrf.mxu1  ;;  %5437 = vmatpush3.msra.mxu1 %v3404_v4  ;;  %5359 = vmatpush3.msra.mxu0 %v7867_v18  ;;  %v334_v4 = vld [vmem:[%s9401_s1 + $0x108] sm:$0xff]  ;;  %v835_v45 = vadd.f32 %v834_v42, %v7499_v6 }
 0x17f   : > { %10385 = vst [vmem:[#allocation76_spill] sm:$0xff] %v7963_v60  ;;  %v849_v16 = vpop.f32.mrf.mxu0  ;;  %5438 = vmatprep.subr.mxu1 %v3411_v17  ;;  %5360 = vmatprep.subr.mxu0 %v7889_v59  ;;  %10388 = vst [vmem:[#allocation80_spill] sm:$0xff] %v7975_v20  ;;  %v10390_v40 = vld [vmem:[#allocation84_spill] sm:$0xff]  ;;  %v3425_v60 = vand.u32 4294901760, %v3424_v31  ;;  %v7994_v42 = vand.u32 4294901760, %v7975_v20 }
 0x180   : > { %10389 = vst [vmem:[#allocation83_spill] sm:$0xff] %v7977_v21  ;;  %v1324_v5 = vpop.f32.mrf.mxu1  ;;  %2476 = vmatmul.mubr.f32.gmra.mxu0 %v10390_v40  ;;  %2783 = vmatmul.mubr.f32.gmra.mxu1 %v10379_v8  ;;  %v3431_v8 = vsub.f32 %v7947_v58, %v7969_v29  ;;  %v10397_v58 = vld [vmem:[#allocation89_spill] sm:$0xff] }
 0x181   : > { %v7985_v35 = vadd.f32 %v1324_v5, %v820_v56  ;;  %v851_v18 = vpop.f32.mrf.mxu0  ;;  %2481 = vmatprep.mubr.f32.mxu0 %v10392_v44  ;;  %2788 = vmatprep.mubr.f32.mxu1 %v10381_v55  ;;  %10393 = vst [vmem:[#allocation7_spill] sm:$0xff] %v7994_v42  ;;  %v7999_v56 = vand.u32 4294901760, %v334_v4  ;;  %v333_v5 = vld [vmem:[%s9401_s1 + $0x100] sm:$0xff] }
 0x182   : > { %v1326_v1 = vpop.f32.mrf.mxu1  ;;  %5439 = vmatpush3.msra.mxu1 %v3411_v17  ;;  %5361 = vmatpush3.msra.mxu0 %v7889_v59  ;;  %v7997_v18 = vsub.f32 %v335_v30, %v7977_v21  ;;  %v10396_v17 = vld [vmem:[#allocation88_spill] sm:$0xff]  ;;  %v3432_v59 = vand.u32 4294901760, %v3431_v8 }
 0x183   : > { %10391 = vst [vmem:[#allocation85_spill] sm:$0xff] %v7985_v35  ;;  %v864_v62 = vpop.f32.mrf.mxu0  ;;  %5440 = vmatprep.subr.mxu1 %v3418_v57  ;;  %5362 = vmatprep.subr.mxu0 %v7911_v43  ;;  %10395 = vst [vmem:[#allocation90_spill] sm:$0xff] %v7999_v56  ;;  %v850_v1 = vadd.f32 %v849_v16, %v7499_v6 }
 0x184   : > { %10394 = vst [vmem:[#allocation87_spill] sm:$0xff] %v7997_v18  ;;  %v1331_v55 = vpop.f32.mrf.mxu1  ;;  %2483 = vmatmul.mubr.f32.gmra.mxu0 %v10396_v17  ;;  %2790 = vmatmul.mubr.f32.gmra.mxu1 %v10384_v3  ;;  %v3438_v3 = vsub.f32 %v7975_v20, %v7994_v42  ;;  %v8016_v16 = vand.u32 4294901760, %v7997_v18  ;;  %v865_v8 = vadd.f32 %v864_v62, %v7499_v6 }
 0x185   : > { %v8007_v31 = vadd.f32 %v1331_v55, %v835_v45  ;;  %v866_v29 = vpop.f32.mrf.mxu0  ;;  %2488 = vmatprep.mubr.f32.mxu0 %v10397_v58  ;;  %2795 = vmatprep.mubr.f32.mxu1 %v10386_v19  ;;  %v8021_v45 = vand.u32 4294901760, %v333_v5 }
 0x186   : > { %v1333_v30 = vpop.f32.mrf.mxu1  ;;  %5441 = vmatpush3.msra.mxu1 %v3418_v57  ;;  %5363 = vmatpush3.msra.mxu0 %v7911_v43  ;;  %10398 = vst [vmem:[#allocation92_spill] sm:$0xff] %v8016_v16  ;;  %v8019_v29 = vsub.f32 %v334_v4, %v7999_v56  ;;  %v10401_v57 = vld [vmem:[#allocation91_spill] sm:$0xff]  ;;  %v10402_v43 = vld [vmem:[#allocation94_spill] sm:$0xff]  ;;  %v3439_v20 = vand.u32 4294901760, %v3438_v3 }
 0x187   : > { %v879_v35 = vpop.f32.mrf.mxu0  ;;  %5442 = vmatprep.subr.mxu1 %v3425_v60  ;;  %5364 = vmatprep.subr.mxu0 %v7924_v10  ;;  %10400 = vst [vmem:[#allocation95_spill] sm:$0xff] %v8021_v45  ;;  %v10406_v3 = vld [vmem:[#allocation98_spill] sm:$0xff] }
 0x188   : > { %10399 = vst [vmem:[#allocation93_spill] sm:$0xff] %v8019_v29  ;;  %v1338_v19 = vpop.f32.mrf.mxu1  ;;  %2490 = vmatmul.mubr.f32.gmra.mxu0 %v10401_v57  ;;  %2797 = vmatmul.mubr.f32.gmra.mxu1 %v10390_v40  ;;  %v3445_v40 = vsub.f32 %v7997_v18, %v8016_v16  ;;  %v8035_v62 = vand.u32 4294901760, %v8019_v29 }
 0x189   : > { %v8026_v55 = vadd.f32 %v1338_v19, %v850_v1  ;;  %v881_v30 = vpop.f32.mrf.mxu0  ;;  %2495 = vmatprep.mubr.f32.mxu0 %v10402_v43  ;;  %2802 = vmatprep.mubr.f32.mxu1 %v10392_v44  ;;  %v8038_v1 = vsub.f32 %v333_v5, %v8021_v45  ;;  %v10405_v44 = vld [vmem:[#allocation96_spill] sm:$0xff] }
 0x18a   : > { %v1340_v42 = vpop.f32.mrf.mxu1  ;;  %5443 = vmatpush3.msra.mxu1 %v3425_v60  ;;  %5365 = vmatpush3.msra.mxu0 %v7924_v10  ;;  %10403 = vst [vmem:[#allocation97_spill] sm:$0xff] %v8035_v62  ;;  %v880_v60 = vadd.f32 %v879_v35, %v7499_v6  ;;  %v3446_v18 = vand.u32 4294901760, %v3445_v40 }
 0x18b   : > { %v894_v4 = vpop.f32.mrf.mxu0  ;;  %5444 = vmatprep.subr.mxu1 %v3432_v59  ;;  %5366 = vmatprep.subr.mxu0 %v7955_v32  ;;  %10404 = vst [vmem:[#allocation99_spill] sm:$0xff] %v8038_v1  ;;  %v8052_v35 = vand.u32 4294901760, %v8038_v1 }
 0x18c   : > { %v1345_v19 = vpop.f32.mrf.mxu1  ;;  %2497 = vmatmul.mubr.f32.gmra.mxu0 %v10405_v44  ;;  %2804 = vmatmul.mubr.f32.gmra.mxu1 %v10396_v17  ;;  %v3452_v17 = vsub.f32 %v8019_v29, %v8035_v62 }
 0x18d   : > { %v8043_v42 = vadd.f32 %v1345_v19, %v865_v8  ;;  %v896_v30 = vpop.f32.mrf.mxu0  ;;  %2502 = vmatprep.mubr.f32.mxu0 %v10406_v3  ;;  %2809 = vmatprep.mubr.f32.mxu1 %v10397_v58  ;;  %10407 = vst [vmem:[#allocation8_spill] sm:$0xff] %v8052_v35  ;;  %v10408_v19 = vld [vmem:[#allocation100_spill] sm:$0xff]  ;;  %v895_v58 = vadd.f32 %v894_v4, %v7499_v6 }
 0x18e   : > { %v1347_v16 = vpop.f32.mrf.mxu1  ;;  %5445 = vmatpush3.msra.mxu1 %v3432_v59  ;;  %5367 = vmatpush3.msra.mxu0 %v7955_v32  ;;  %v10409_v30 = vld [vmem:[#allocation102_spill] sm:$0xff]  ;;  %v3453_v29 = vand.u32 4294901760, %v3452_v17 }
 0x18f   : > { %v909_v5 = vpop.f32.mrf.mxu0  ;;  %5446 = vmatprep.subr.mxu1 %v3439_v20  ;;  %5368 = vmatprep.subr.mxu0 %v7977_v21 }
 0x190   : > { %v1352_v8 = vpop.f32.mrf.mxu1  ;;  %2504 = vmatmul.mubr.f32.gmra.mxu0 %v10408_v19  ;;  %2811 = vmatmul.mubr.f32.gmra.mxu1 %v10401_v57  ;;  %v3459_v57 = vsub.f32 %v8038_v1, %v8052_v35 }
 0x191   : > { %v8057_v59 = vadd.f32 %v1352_v8, %v880_v60  ;;  %v911_v16 = vpop.f32.mrf.mxu0  ;;  %2509 = vmatprep.mubr.f32.mxu0 %v10409_v30  ;;  %2816 = vmatprep.mubr.f32.mxu1 %v10402_v43  ;;  %v10410_v60 = vld [vmem:[#allocation104_spill] sm:$0xff]  ;;  %v910_v8 = vadd.f32 %v909_v5, %v7499_v6 }
 0x192   : > { %v1354_v40 = vpop.f32.mrf.mxu1  ;;  %5447 = vmatpush3.msra.mxu1 %v3439_v20  ;;  %5369 = vmatpush3.msra.mxu0 %v7977_v21  ;;  %v10411_v16 = vld [vmem:[#allocation106_spill] sm:$0xff]  ;;  %v3460_v17 = vand.u32 4294901760, %v3459_v57 }
 0x193   : > { %v924_v62 = vpop.f32.mrf.mxu0  ;;  %5448 = vmatprep.subr.mxu1 %v3446_v18  ;;  %5370 = vmatprep.subr.mxu0 %v7999_v56 }
 0x194   : > { %v1359_v4 = vpop.f32.mrf.mxu1  ;;  %2511 = vmatmul.mubr.f32.gmra.mxu0 %v10410_v60  ;;  %2818 = vmatmul.mubr.f32.gmra.mxu1 %v10405_v44  ;;  %v10412_v44 = vld [vmem:[#allocation108_spill] sm:$0xff]  ;;  %v925_v5 = vadd.f32 %v924_v62, %v7499_v6  ;;  %v10416_v62 = vld [vmem:[#allocation114_spill] sm:$0xff] }
 0x195   : > { %v8068_v43 = vadd.f32 %v1359_v4, %v895_v58  ;;  %v926_v20 = vpop.f32.mrf.mxu0  ;;  %2516 = vmatprep.mubr.f32.mxu0 %v10411_v16  ;;  %2823 = vmatprep.mubr.f32.mxu1 %v10406_v3  ;;  %v10413_v4 = vld [vmem:[#allocation109_spill] sm:$0xff] }
 0x196   : > { %v1361_v40 = vpop.f32.mrf.mxu1  ;;  %5449 = vmatpush3.msra.mxu1 %v3446_v18  ;;  %5371 = vmatpush3.msra.mxu0 %v7999_v56 }
 0x197   : > { %5450 = vmatprep.subr.mxu1 %v3453_v29  ;;  %5372 = vmatprep.subr.mxu0 %v8021_v45  ;;  %v10414_v40 = vld [vmem:[#allocation111_spill] sm:$0xff] }
 0x198   : > { %v1366_v35 = vpop.f32.mrf.mxu1  ;;  %v1511_v1 = vpop.f32.mrf.mxu0  ;;  %2518 = vmatmul.mubr.f32.gmra.mxu0 %v10412_v44  ;;  %2825 = vmatmul.mubr.f32.gmra.mxu1 %v10408_v19 }
 0x199   : > { %v8077_v58 = vadd.f32 %v1366_v35, %v910_v8  ;;  %v1512_v3 = vadd.f32 %v1511_v1, %v7523_v27  ;;  %2523 = vmatprep.mubr.f32.mxu0 %v10413_v4  ;;  %2830 = vmatprep.mubr.f32.mxu1 %v10409_v30  ;;  %v10417_v8 = vld [vmem:[#allocation116_spill] sm:$0xff] }
 0x19a   : > { %v1368_v18 = vpop.f32.mrf.mxu1  ;;  %v1513_v20 = vpop.f32.mrf.mxu0  ;;  %5451 = vmatpush3.msra.mxu1 %v3453_v29  ;;  %5373 = vmatpush3.msra.mxu0 %v8021_v45 }
 0x19b   : > { %5452 = vmatprep.subr.mxu1 %v3460_v17  ;;  %5502 = vmatprep.subr.mxu0 %v7698_v52 }
 0x19c   : > { %v1373_v57 = vpop.f32.mrf.mxu1  ;;  %v1520_v19 = vpop.f32.mrf.mxu0  ;;  %2525 = vmatmul.mubr.f32.gmra.mxu0 %v10414_v40  ;;  %2832 = vmatmul.mubr.f32.gmra.mxu1 %v10410_v60 }
 0x19d   : > { %v8086_v6 = vadd.f32 %v1373_v57, %v925_v5  ;;  %v1521_v27 = vadd.f32 %v1520_v19, %v7537_v25  ;;  %2530 = vmatprep.mubr.f32.mxu0 %v10416_v62  ;;  %2837 = vmatprep.mubr.f32.mxu1 %v10411_v16  ;;  %v10419_v25 = vld [vmem:[#allocation118_spill] sm:$0xff]  ;;  %v10420_v57 = vld [vmem:[#allocation120_spill] sm:$0xff] }
 0x19e   : > { %v1375_v29 = vpop.f32.mrf.mxu1  ;;  %v1522_v1 = vpop.f32.mrf.mxu0  ;;  %5453 = vmatpush3.msra.mxu1 %v3460_v17 }
 0x19f   : > { %10415 = vst [vmem:[#allocation101_spill] sm:$0xff] %v8086_v6  ;;  %5582 = vmatprep.subr.mxu1 %v7676_v2 }
 0x1a0   : > { %v1529_v35 = vpop.f32.mrf.mxu0  ;;  %v1898_v30 = vpop.f32.mrf.mxu1  ;;  %2532 = vmatmul.mubr.f32.gmra.mxu0 %v10417_v8  ;;  %2839 = vmatmul.mubr.f32.gmra.mxu1 %v10412_v44  ;;  %v10422_v44 = vld [vmem:[#allocation122_spill] sm:$0xff] }
 0x1a1   : > { %v1530_v60 = vadd.f32 %v1529_v35, %v7551_v39  ;;  %v8095_v5 = vadd.f32 %v1898_v30, %v1512_v3  ;;  %2537 = vmatprep.mubr.f32.mxu0 %v10419_v25  ;;  %2844 = vmatprep.mubr.f32.mxu1 %v10413_v4  ;;  %v10423_v35 = vld [vmem:[#allocation124_spill] sm:$0xff] }
 0x1a2   : > { %v1531_v16 = vpop.f32.mrf.mxu0  ;;  %v1900_v18 = vpop.f32.mrf.mxu1 }
 0x1a3   : > { %10418 = vst [vmem:[#allocation12_spill] sm:$0xff] %v8095_v5 }
 0x1a4   : > { %v1538_v20 = vpop.f32.mrf.mxu0  ;;  %v1909_v17 = vpop.f32.mrf.mxu1  ;;  %2539 = vmatmul.mubr.f32.gmra.mxu0 %v10420_v57  ;;  %2846 = vmatmul.mubr.f32.gmra.mxu1 %v10414_v40  ;;  %v10425_v40 = vld [vmem:[#allocation126_spill] sm:$0xff] }
 0x1a5   : > { %v1539_v19 = vadd.f32 %v1538_v20, %v7565_v50  ;;  %v8102_v29 = vadd.f32 %v1909_v17, %v1521_v27  ;;  %2544 = vmatprep.mubr.f32.mxu0 %v10422_v44  ;;  %2851 = vmatprep.mubr.f32.mxu1 %v10416_v62  ;;  %v10426_v20 = vld [vmem:[#allocation128_spill] sm:$0xff] }
 0x1a6   : > { %v1540_v39 = vpop.f32.mrf.mxu0  ;;  %v1911_v3 = vpop.f32.mrf.mxu1 }
 0x1a7   : > { %10421 = vst [vmem:[#allocation103_spill] sm:$0xff] %v8102_v29 }
 0x1a8   : > { %v1547_v1 = vpop.f32.mrf.mxu0  ;;  %v1920_v4 = vpop.f32.mrf.mxu1  ;;  %2546 = vmatmul.mubr.f32.gmra.mxu0 %v10423_v35  ;;  %2853 = vmatmul.mubr.f32.gmra.mxu1 %v10417_v8  ;;  %v10428_v8 = vld [vmem:[#allocation129_spill] sm:$0xff] }
 0x1a9   : > { %v1548_v30 = vadd.f32 %v1547_v1, %v7579_v0  ;;  %v8109_v16 = vadd.f32 %v1920_v4, %v1530_v60  ;;  %2551 = vmatprep.mubr.f32.mxu0 %v10425_v40  ;;  %2858 = vmatprep.mubr.f32.mxu1 %v10419_v25  ;;  %v10429_v1 = vld [vmem:[#allocation131_spill] sm:$0xff] }
 0x1aa   : > { %v1549_v50 = vpop.f32.mrf.mxu0  ;;  %v1922_v27 = vpop.f32.mrf.mxu1 }
 0x1ab   : > { %10424 = vst [vmem:[#allocation9_spill] sm:$0xff] %v8109_v16 }
 0x1ac   : > { %v1556_v18 = vpop.f32.mrf.mxu0  ;;  %v1931_v62 = vpop.f32.mrf.mxu1  ;;  %2553 = vmatmul.mubr.f32.gmra.mxu0 %v10426_v20  ;;  %2860 = vmatmul.mubr.f32.gmra.mxu1 %v10420_v57  ;;  %v10431_v57 = vld [vmem:[#allocation134_spill] sm:$0xff] }
 0x1ad   : > { %v1557_v17 = vadd.f32 %v1556_v18, %v7593_v11  ;;  %v8116_v39 = vadd.f32 %v1931_v62, %v1539_v19  ;;  %2558 = vmatprep.mubr.f32.mxu0 %v10428_v8  ;;  %2865 = vmatprep.mubr.f32.mxu1 %v10422_v44  ;;  %v10432_v18 = vld [vmem:[#allocation136_spill] sm:$0xff] }
 0x1ae   : > { %v1558_v0 = vpop.f32.mrf.mxu0  ;;  %v1933_v60 = vpop.f32.mrf.mxu1 }
 0x1af   : > { %10427 = vst [vmem:[#allocation105_spill] sm:$0xff] %v8116_v39 }
 0x1b0   : > { %v1565_v3 = vpop.f32.mrf.mxu0  ;;  %v1942_v25 = vpop.f32.mrf.mxu1  ;;  %2560 = vmatmul.mubr.f32.gmra.mxu0 %v10429_v1  ;;  %2867 = vmatmul.mubr.f32.gmra.mxu1 %v10423_v35  ;;  %v10434_v35 = vld [vmem:[#allocation138_spill] sm:$0xff] }
 0x1b1   : > { %v1566_v4 = vadd.f32 %v1565_v3, %v7607_v14  ;;  %v8123_v50 = vadd.f32 %v1942_v25, %v1548_v30  ;;  %2565 = vmatprep.mubr.f32.mxu0 %v10431_v57  ;;  %2872 = vmatprep.mubr.f32.mxu1 %v10425_v40  ;;  %v10435_v3 = vld [vmem:[#allocation140_spill] sm:$0xff] }
 0x1b2   : > { %v1567_v11 = vpop.f32.mrf.mxu0  ;;  %v1944_v19 = vpop.f32.mrf.mxu1 }
 0x1b3   : > { %10430 = vst [vmem:[#allocation14_spill] sm:$0xff] %v8123_v50 }
 0x1b4   : > { %v1574_v27 = vpop.f32.mrf.mxu0  ;;  %v1953_v44 = vpop.f32.mrf.mxu1  ;;  %2567 = vmatmul.mubr.f32.gmra.mxu0 %v10432_v18  ;;  %2874 = vmatmul.mubr.f32.gmra.mxu1 %v10426_v20 }
 0x1b5   : > { %v1575_v62 = vadd.f32 %v1574_v27, %v7621_v47  ;;  %v8130_v0 = vadd.f32 %v1953_v44, %v1557_v17  ;;  %2572 = vmatprep.mubr.f32.mxu0 %v10434_v35  ;;  %2879 = vmatprep.mubr.f32.mxu1 %v10428_v8  ;;  %v10437_v47 = vld [vmem:[#allocation142_spill] sm:$0xff]  ;;  %v10438_v27 = vld [vmem:[#allocation144_spill] sm:$0xff] }
 0x1b6   : > { %v1576_v14 = vpop.f32.mrf.mxu0  ;;  %v1955_v30 = vpop.f32.mrf.mxu1 }
 0x1b7   : > { %10433 = vst [vmem:[#allocation107_spill] sm:$0xff] %v8130_v0 }
 0x1b8   : > { %v1583_v60 = vpop.f32.mrf.mxu0  ;;  %v1964_v40 = vpop.f32.mrf.mxu1  ;;  %2574 = vmatmul.mubr.f32.gmra.mxu0 %v10435_v3  ;;  %2881 = vmatmul.mubr.f32.gmra.mxu1 %v10429_v1 }
 0x1b9   : > { %v1584_v25 = vadd.f32 %v1583_v60, %v7635_v12  ;;  %v8137_v20 = vadd.f32 %v1964_v40, %v1566_v4  ;;  %2579 = vmatprep.mubr.f32.mxu0 %v10437_v47  ;;  %2886 = vmatprep.mubr.f32.mxu1 %v10431_v57  ;;  %v207_v57 = vld [vmem:[%s6342_s26 + $0x10] sm:$0xff]  ;;  %v10440_v60 = vld [vmem:[#allocation147_spill] sm:$0xff]  ;;  %v213_v40 = vld [vmem:[%s6342_s26 + $0x40] sm:$0xff] }
 0x1ba   : > { %v1585_v17 = vpop.f32.mrf.mxu0  ;;  %v1966_v11 = vpop.f32.mrf.mxu1 }
 0x1bb   : > { %10436 = vst [vmem:[#allocation10_spill] sm:$0xff] %v8137_v20 }
 0x1bc   : > { %v1592_v8 = vpop.f32.mrf.mxu0  ;;  %v1975_v19 = vpop.f32.mrf.mxu1  ;;  %2581 = vmatmul.mubr.f32.gmra.mxu0 %v10438_v27  ;;  %2888 = vmatmul.mubr.f32.gmra.mxu1 %v10432_v18  ;;  %v210_v18 = vld [vmem:[%s6342_s26 + $0x28] sm:$0xff] }
 0x1bd   : > { %v1593_v1 = vadd.f32 %v1592_v8, %v7649_v28  ;;  %v8144_v44 = vadd.f32 %v1975_v19, %v1575_v62  ;;  %2586 = vmatprep.mubr.f32.mxu0 %v7112_v33  ;;  %2893 = vmatprep.mubr.f32.mxu1 %v10434_v35  ;;  %v8157_v35 = vand.u32 4294901760, %v207_v57  ;;  %v8160_v8 = vand.u32 4294901760, %v210_v18 }
 0x1be   : > { %v1594_v12 = vpop.f32.mrf.mxu0  ;;  %v1977_v4 = vpop.f32.mrf.mxu1 }
 0x1bf   : > { %10439 = vst [vmem:[#allocation110_spill] sm:$0xff] %v8144_v44  ;;  %10442 = vst [vmem:[#allocation112_spill] sm:$0xff] %v8157_v35  ;;  %v219_v12 = vld [vmem:[%s6342_s26 + $0x70] sm:$0xff] }
 0x1c0   : > { %v1601_v14 = vpop.f32.mrf.mxu0  ;;  %v1986_v30 = vpop.f32.mrf.mxu1  ;;  %2588 = vmatmul.mubr.f32.gmra.mxu0 %v10440_v60  ;;  %2895 = vmatmul.mubr.f32.gmra.mxu1 %v10435_v3  ;;  %10443 = vst [vmem:[#allocation11_spill] sm:$0xff] %v8160_v8  ;;  %v8181_v44 = vand.u32 4294901760, %v219_v12 }
 0x1c1   : > { %v1602_v28 = vadd.f32 %v1601_v14, %v7666_v54  ;;  %v8153_v62 = vadd.f32 %v1986_v30, %v1584_v25  ;;  %2593 = vmatprep.mubr.f32.mxu0 %v7130_v49  ;;  %2900 = vmatprep.mubr.f32.mxu1 %v10437_v47  ;;  %v8164_v54 = vand.u32 4294901760, %v213_v40  ;;  %v216_v25 = vld [vmem:[%s6342_s26 + $0x58] sm:$0xff]  ;;  %v10446_v14 = vld [vmem:[#allocation150_spill] sm:$0xff]  ;;  %v8174_v30 = vsub.f32 %v207_v57, %v8157_v35  ;;  %v222_v57 = vld [vmem:[%s6342_s26 + $0x88] sm:$0xff] }
 0x1c2   : > { %v1603_v17 = vpop.f32.mrf.mxu0  ;;  %v1988_v11 = vpop.f32.mrf.mxu1  ;;  %10450 = vst [vmem:[#allocation20_spill] sm:$0xff] %v8181_v44  ;;  %v8201_v50 = vsub.f32 %v219_v12, %v8181_v44 }
 0x1c3   : > { %10441 = vst [vmem:[#allocation16_spill] sm:$0xff] %v8153_v62  ;;  %10444 = vst [vmem:[#allocation113_spill] sm:$0xff] %v8164_v54  ;;  %v8179_v62 = vand.u32 4294901760, %v216_v25 }
 0x1c4   : > { %v1610_v19 = vpop.f32.mrf.mxu0  ;;  %v1997_v3 = vpop.f32.mrf.mxu1  ;;  %2595 = vmatmul.mubr.f32.gmra.mxu0 %v7142_v53  ;;  %2902 = vmatmul.mubr.f32.gmra.mxu1 %v10438_v27  ;;  %10447 = vst [vmem:[#allocation115_spill] sm:$0xff] %v8174_v30  ;;  %v8177_v27 = vsub.f32 %v210_v18, %v8160_v8  ;;  %v10454_v18 = vld [vmem:[#allocation154_spill] sm:$0xff]  ;;  %10456 = vst [vmem:[#allocation22_spill] sm:$0xff] %v8201_v50 }
 0x1c5   : > { %v1611_v47 = vadd.f32 %v1610_v19, %v7685_v37  ;;  %v8169_v4 = vadd.f32 %v1997_v3, %v1593_v1  ;;  %2600 = vmatprep.mubr.f32.mxu0 %v10446_v14  ;;  %2907 = vmatprep.mubr.f32.mxu1 %v7112_v33  ;;  %10449 = vst [vmem:[#allocation117_spill] sm:$0xff] %v8179_v62  ;;  %v10451_v19 = vld [vmem:[#allocation152_spill] sm:$0xff] }
 0x1c6   : > { %v1612_v17 = vpop.f32.mrf.mxu0  ;;  %v1999_v11 = vpop.f32.mrf.mxu1  ;;  %10448 = vst [vmem:[#allocation13_spill] sm:$0xff] %v8177_v27  ;;  %v8186_v33 = vsub.f32 %v213_v40, %v8164_v54  ;;  %v8198_v40 = vsub.f32 %v216_v25, %v8179_v62 }
 0x1c7   : > { %10445 = vst [vmem:[#allocation18_spill] sm:$0xff] %v8169_v4  ;;  %v9807_v11 = vand.u32 4294901760, %v8174_v30  ;;  %v225_v4 = vld [vmem:[%s6342_s26 + $0xa0] sm:$0xff] }
 0x1c8   : > { %v1619_v37 = vpop.f32.mrf.mxu0  ;;  %v2008_v1 = vpop.f32.mrf.mxu1  ;;  %2602 = vmatmul.mubr.f32.gmra.mxu0 %v10451_v19  ;;  %2909 = vmatmul.mubr.f32.gmra.mxu1 %v10440_v60  ;;  %10452 = vst [vmem:[#allocation119_spill] sm:$0xff] %v8186_v33  ;;  %10455 = vst [vmem:[#allocation121_spill] sm:$0xff] %v8198_v40  ;;  %v10461_v60 = vld [vmem:[#allocation157_spill] sm:$0xff]  ;;  %v10469_v56 = vand.u32 4294901760, %v8198_v40 }
 0x1c9   : > { %v1620_v3 = vadd.f32 %v1619_v37, %v7707_v22  ;;  %v8190_v17 = vadd.f32 %v2008_v1, %v1602_v28  ;;  %2607 = vmatprep.mubr.f32.mxu0 %v10454_v18  ;;  %2914 = vmatprep.mubr.f32.mxu1 %v7130_v49  ;;  %v8203_v22 = vand.u32 4294901760, %v222_v57  ;;  %v10458_v49 = vld [vmem:[#allocation156_spill] sm:$0xff]  ;;  %v3033_v12 = vsub.f32 %v8174_v30, %v9807_v11  ;;  %v10463_v11 = vld [vmem:[#allocation158_spill] sm:$0xff] }
 0x1ca   : > { %v1621_v20 = vpop.f32.mrf.mxu0  ;;  %v2010_v0 = vpop.f32.mrf.mxu1  ;;  %v3063_v30 = vsub.f32 %v8198_v40, %v10469_v56 }
 0x1cb   : > { %10453 = vst [vmem:[#allocation15_spill] sm:$0xff] %v8190_v17  ;;  %10457 = vst [vmem:[#allocation123_spill] sm:$0xff] %v8203_v22  ;;  %v8208_v20 = vand.u32 4294901760, %v225_v4  ;;  %v228_v17 = vld [vmem:[%s6342_s26 + $0xb8] sm:$0xff]  ;;  %v10462_v0 = vand.u32 4294901760, %v8177_v27  ;;  %v3034_v45 = vand.u32 4294901760, %v3033_v12 }
 0x1cc   : > { %v1628_v28 = vpop.f32.mrf.mxu0  ;;  %v2019_v37 = vpop.f32.mrf.mxu1  ;;  %2609 = vmatmul.mubr.f32.gmra.mxu0 %v10458_v49  ;;  %2916 = vmatmul.mubr.f32.gmra.mxu1 %v7142_v53  ;;  %v231_v53 = vld [vmem:[%s6342_s26 + $0xd0] sm:$0xff]  ;;  %v3064_v40 = vand.u32 4294901760, %v3063_v30 }
 0x1cd   : > { %10459 = vst [vmem:[#allocation17_spill] sm:$0xff] %v8208_v20  ;;  %v1629_v1 = vadd.f32 %v1628_v28, %v7732_v36  ;;  %v8211_v25 = vadd.f32 %v2019_v37, %v1611_v47  ;;  %2614 = vmatprep.mubr.f32.mxu0 %v10461_v60  ;;  %2921 = vmatprep.mubr.f32.mxu1 %v10446_v14  ;;  %v8236_v36 = vand.u32 4294901760, %v228_v17  ;;  %v8243_v5 = vand.u32 4294901760, %v231_v53 }
 0x1ce   : > { %v1630_v39 = vpop.f32.mrf.mxu0  ;;  %v2021_v16 = vpop.f32.mrf.mxu1  ;;  %v3043_v29 = vsub.f32 %v8177_v27, %v10462_v0  ;;  %v8226_v28 = vsub.f32 %v222_v57, %v8203_v22  ;;  %v8234_v0 = vsub.f32 %v225_v4, %v8208_v20 }
 0x1cf   : > { %10460 = vst [vmem:[#allocation125_spill] sm:$0xff] %v8211_v25  ;;  %v10464_v16 = vand.u32 4294901760, %v8186_v33  ;;  %10465 = vst [vmem:[#allocation24_spill] sm:$0xff] %v8236_v36  ;;  %v10467_v25 = vld [vmem:[#allocation29_spill] sm:$0xff] }
 0x1d0   : > { %v1637_v14 = vpop.f32.mrf.mxu0  ;;  %v2030_v37 = vpop.f32.mrf.mxu1  ;;  %2616 = vmatmul.mubr.f32.gmra.mxu0 %v10463_v11  ;;  %2923 = vmatmul.mubr.f32.gmra.mxu1 %v10451_v19  ;;  %10468 = vst [vmem:[#allocation19_spill] sm:$0xff] %v8243_v5  ;;  %v234_v19 = vld [vmem:[%s6342_s26 + $0xe8] sm:$0xff]  ;;  %v3044_v4 = vand.u32 4294901760, %v3043_v29  ;;  %v10475_v21 = vand.u32 4294901760, %v8226_v28 }
 0x1d1   : > { %v3053_v39 = vsub.f32 %v8186_v33, %v10464_v16  ;;  %v1638_v47 = vadd.f32 %v1637_v14, %v7760_v34  ;;  %v8239_v57 = vadd.f32 %v2030_v37, %v1620_v3  ;;  %2621 = vmatprep.mubr.f32.mxu0 %v10467_v25  ;;  %2928 = vmatprep.mubr.f32.mxu1 %v10454_v18  ;;  %v237_v33 = vld [vmem:[%s6342_s26 + $0x100] sm:$0xff]  ;;  %v10470_v34 = vand.u32 4294901760, %v8201_v50  ;;  %v10471_v37 = vld [vmem:[#allocation35_spill] sm:$0xff] }
 0x1d2   : > { %v1639_v27 = vpop.f32.mrf.mxu0  ;;  %v2032_v16 = vpop.f32.mrf.mxu1  ;;  %v8260_v56 = vand.u32 4294901760, %v234_v19  ;;  %v8268_v14 = vsub.f32 %v231_v53, %v8243_v5  ;;  %v10477_v53 = vand.u32 4294901760, %v8234_v0 }
 0x1d3   : > { %10466 = vst [vmem:[#allocation127_spill] sm:$0xff] %v8239_v57  ;;  %v3073_v3 = vsub.f32 %v8201_v50, %v10470_v34  ;;  %v3054_v27 = vand.u32 4294901760, %v3053_v39  ;;  %v8258_v16 = vsub.f32 %v228_v17, %v8236_v36  ;;  %v240_v57 = vld [vmem:[%s6342_s26 + $0x118] sm:$0xff]  ;;  %v243_v39 = vld [vmem:[%s6342_s26 + $0x130] sm:$0xff] }
 0x1d4   : > { %v1646_v18 = vpop.f32.mrf.mxu0  ;;  %v2041_v12 = vpop.f32.mrf.mxu1  ;;  %2623 = vmatmul.mubr.f32.gmra.mxu0 %v10471_v37  ;;  %2930 = vmatmul.mubr.f32.gmra.mxu1 %v10458_v49  ;;  %10472 = vst [vmem:[#allocation130_spill] sm:$0xff] %v8260_v56  ;;  %v8270_v49 = vand.u32 4294901760, %v237_v33  ;;  %v8284_v30 = vsub.f32 %v234_v19, %v8260_v56 }
 0x1d5   : > { %v1647_v34 = vadd.f32 %v1646_v18, %v7786_v46  ;;  %v8264_v50 = vadd.f32 %v2041_v12, %v1629_v1  ;;  %2935 = vmatprep.mubr.f32.mxu1 %v10461_v60  ;;  %5374 = vmatprep.mubr.f32.mxu0 %v3034_v45  ;;  %v3074_v6 = vand.u32 4294901760, %v3073_v3  ;;  %v3083_v46 = vsub.f32 %v8226_v28, %v10475_v21  ;;  %v249_v21 = vld [vmem:[%s6342_s26 + $0x160] sm:$0xff] }
 0x1d6   : > { %10474 = vst [vmem:[#allocation132_spill] sm:$0xff] %v8270_v49  ;;  %v1648_v17 = vpop.f32.mrf.mxu0  ;;  %v2043_v29 = vpop.f32.mrf.mxu1  ;;  %v8276_v1 = vand.u32 4294901760, %v240_v57  ;;  %v3093_v18 = vsub.f32 %v8234_v0, %v10477_v53  ;;  %v8286_v3 = vand.u32 4294901760, %v243_v39 }
 0x1d7   : > { %10473 = vst [vmem:[#allocation26_spill] sm:$0xff] %v8264_v50  ;;  %v246_v29 = vld [vmem:[%s6342_s26 + $0x148] sm:$0xff]  ;;  %v3084_v12 = vand.u32 4294901760, %v3083_v46 }
 0x1d8   : > { %10476 = vst [vmem:[#allocation133_spill] sm:$0xff] %v8276_v1  ;;  %v1655_v60 = vpop.f32.mrf.mxu0  ;;  %v2052_v45 = vpop.f32.mrf.mxu1  ;;  %2937 = vmatmul.mubr.f32.gmra.mxu1 %v10463_v11  ;;  %5375 = vmatmul.mubr.f32.vlgmr.msra.gmra.mxu0 %v3044_v4  ;;  %10478 = vst [vmem:[#allocation28_spill] sm:$0xff] %v8286_v3  ;;  %v8296_v4 = vsub.f32 %v237_v33, %v8270_v49  ;;  %v3094_v33 = vand.u32 4294901760, %v3093_v18 }
 0x1d9   : > { %v1656_v17 = vadd.f32 %v1655_v60, %v7809_v13  ;;  %v8291_v50 = vadd.f32 %v2052_v45, %v1638_v47  ;;  %2942 = vmatprep.mubr.f32.mxu1 %v10467_v25  ;;  %5377 = vmatprep.mubr.f32.mxu0 %v3054_v27  ;;  %v8301_v13 = vsub.f32 %v240_v57, %v8276_v1  ;;  %v8303_v47 = vand.u32 4294901760, %v246_v29 }
 0x1da   : > { %v1657_v53 = vpop.f32.mrf.mxu0  ;;  %v2054_v19 = vpop.f32.mrf.mxu1  ;;  %5503 = vmatpush3.msra.mxu0 %v7698_v52  ;;  %v8305_v25 = vand.u32 4294901760, %v249_v21  ;;  %v10482_v45 = vand.u32 4294901760, %v8258_v16  ;;  %v8313_v57 = vsub.f32 %v243_v39, %v8286_v3  ;;  %v9828_v18 = vand.u32 4294901760, %v8296_v4 }
 0x1db   : > { %10479 = vst [vmem:[#allocation135_spill] sm:$0xff] %v8291_v50  ;;  %5504 = vmatprep.subr.mxu0 %v7716_v24  ;;  %10480 = vst [vmem:[#allocation23_spill] sm:$0xff] %v8303_v47  ;;  %v252_v53 = vld [vmem:[%s6342_s26 + $0x178] sm:$0xff] }
 0x1dc   : > { %10481 = vst [vmem:[#allocation137_spill] sm:$0xff] %v8305_v25  ;;  %v1664_v27 = vpop.f32.mrf.mxu0  ;;  %v2063_v60 = vpop.f32.mrf.mxu1  ;;  %2944 = vmatmul.mubr.f32.gmra.mxu1 %v10471_v37  ;;  %5378 = vmatmul.mubr.f32.gmra.mxu0 %v3064_v40  ;;  %v3103_v52 = vsub.f32 %v8258_v16, %v10482_v45  ;;  %v10484_v40 = vand.u32 4294901760, %v8268_v14  ;;  %v255_v45 = vld [vmem:[%s6342_s26 + $0x190] sm:$0xff]  ;;  %v8334_v39 = vand.u32 4294901760, %v252_v53 }
 0x1dd   : > { %v1665_v19 = vadd.f32 %v1664_v27, %v7831_v38  ;;  %v8317_v11 = vadd.f32 %v2063_v60, %v1647_v34  ;;  %5380 = vmatprep.mubr.f32.mxu0 %v3074_v6  ;;  %5454 = vmatprep.mubr.f32.mxu1 %v8157_v35  ;;  %v8329_v34 = vsub.f32 %v246_v29, %v8303_v47  ;;  %v9833_v29 = vand.u32 4294901760, %v8313_v57 }
 0x1de   : > { %v3113_v37 = vsub.f32 %v8268_v14, %v10484_v40  ;;  %v1666_v50 = vpop.f32.mrf.mxu0  ;;  %v2065_v46 = vpop.f32.mrf.mxu1  ;;  %5505 = vmatpush3.msra.mxu0 %v7716_v24  ;;  %v8332_v6 = vsub.f32 %v249_v21, %v8305_v25  ;;  %10486 = vst [vmem:[#allocation25_spill] sm:$0xff] %v8334_v39  ;;  %v3104_v24 = vand.u32 4294901760, %v3103_v52  ;;  %v8341_v40 = vand.u32 4294901760, %v255_v45 }
 0x1df   : > { %10483 = vst [vmem:[#allocation30_spill] sm:$0xff] %v8317_v11  ;;  %5506 = vmatprep.subr.mxu0 %v7749_v26  ;;  %v10487_v50 = vand.u32 4294901760, %v8284_v30  ;;  %v3133_v52 = vsub.f32 %v8296_v4, %v9828_v18 }
 0x1e0   : > { %10485 = vst [vmem:[#allocation139_spill] sm:$0xff] %v8332_v6  ;;  %v1673_v27 = vpop.f32.mrf.mxu0  ;;  %v2074_v60 = vpop.f32.mrf.mxu1  ;;  %5381 = vmatmul.mubr.f32.gmra.mxu0 %v3084_v12  ;;  %5455 = vmatmul.mubr.f32.vlgmr.msra.gmra.mxu1 %v8160_v8  ;;  %10488 = vst [vmem:[#allocation141_spill] sm:$0xff] %v8341_v40  ;;  %v3114_v12 = vand.u32 4294901760, %v3113_v37  ;;  %v258_v8 = vld [vmem:[%s6342_s26 + $0x1a8] sm:$0xff] }
 0x1e1   : > { %v3123_v46 = vsub.f32 %v8284_v30, %v10487_v50  ;;  %v1674_v21 = vadd.f32 %v1673_v27, %v7853_v7  ;;  %v8344_v38 = vadd.f32 %v2074_v60, %v1656_v17  ;;  %5583 = vmatpush3.msra.mxu1 %v7676_v2  ;;  %5383 = vmatprep.mubr.f32.mxu0 %v3094_v33  ;;  %v261_v50 = vld [vmem:[%s6342_s26 + $0x1c0] sm:$0xff]  ;;  %v10490_v7 = vand.u32 4294901760, %v8301_v13 }
 0x1e2   : > { %v1675_v35 = vpop.f32.mrf.mxu0  ;;  %v2076_v11 = vpop.f32.mrf.mxu1  ;;  %5457 = vmatprep.mubr.f32.mxu1 %v8164_v54  ;;  %5584 = vmatprep.subr.mxu1 %v7693_v15  ;;  %v8371_v18 = vand.u32 4294901760, %v258_v8  ;;  %v8377_v33 = vand.u32 4294901760, %v261_v50 }
 0x1e3   : > { %10489 = vst [vmem:[#allocation32_spill] sm:$0xff] %v8344_v38  ;;  %5585 = vmatpush3.msra.mxu1 %v7693_v15  ;;  %5507 = vmatpush3.msra.mxu0 %v7749_v26  ;;  %v3143_v17 = vsub.f32 %v8301_v13, %v10490_v7  ;;  %v8362_v35 = vsub.f32 %v252_v53, %v8334_v39  ;;  %v3124_v60 = vand.u32 4294901760, %v3123_v46  ;;  %v264_v46 = vld [vmem:[%s6342_s26 + $0x1d8] sm:$0xff] }
 0x1e4   : > { %v1682_v11 = vpop.f32.mrf.mxu0  ;;  %v2085_v27 = vpop.f32.mrf.mxu1  ;;  %5384 = vmatmul.mubr.f32.gmra.mxu0 %v3104_v24  ;;  %5458 = vmatmul.mubr.f32.gmra.mxu1 %v8179_v62  ;;  %v3153_v26 = vsub.f32 %v8313_v57, %v9833_v29  ;;  %v8369_v7 = vsub.f32 %v255_v45, %v8341_v40  ;;  %10493 = vst [vmem:[#allocation145_spill] sm:$0xff] %v8371_v18  ;;  %v3134_v24 = vand.u32 4294901760, %v3133_v52  ;;  %10495 = vst [vmem:[#allocation146_spill] sm:$0xff] %v8377_v33  ;;  %v267_v45 = vld [vmem:[%s6342_s26 + $0x1f0] sm:$0xff] }
 0x1e5   : > { %10491 = vst [vmem:[#allocation143_spill] sm:$0xff] %v8362_v35  ;;  %v1683_v37 = vadd.f32 %v1682_v11, %v7875_v63  ;;  %v8374_v53 = vadd.f32 %v2085_v27, %v1665_v19  ;;  %5386 = vmatprep.mubr.f32.mxu0 %v3114_v12  ;;  %5460 = vmatprep.mubr.f32.mxu1 %v8181_v44  ;;  %v3144_v63 = vand.u32 4294901760, %v3143_v17  ;;  %v10496_v19 = vand.u32 4294901760, %v8329_v34  ;;  %v270_v44 = vld [vmem:[%s6342_s26 + $0x208] sm:$0xff] }
 0x1e6   : > { %10492 = vst [vmem:[#allocation27_spill] sm:$0xff] %v8369_v7  ;;  %v1684_v62 = vpop.f32.mrf.mxu0  ;;  %v2087_v54 = vpop.f32.mrf.mxu1  ;;  %5586 = vmatprep.subr.mxu1 %v7723_v9  ;;  %5508 = vmatprep.subr.mxu0 %v7775_v51  ;;  %v10497_v52 = vand.u32 4294901760, %v8332_v6  ;;  %v3154_v29 = vand.u32 4294901760, %v3153_v26  ;;  %v8397_v17 = vsub.f32 %v258_v8, %v8371_v18  ;;  %v273_v26 = vld [vmem:[%s6342_s26 + $0x220] sm:$0xff] }
 0x1e7   : > { %10494 = vst [vmem:[#allocation34_spill] sm:$0xff] %v8374_v53  ;;  %5587 = vmatpush3.msra.mxu1 %v7723_v9  ;;  %5509 = vmatpush3.msra.mxu0 %v7775_v51  ;;  %v3163_v12 = vsub.f32 %v8329_v34, %v10496_v19  ;;  %v8399_v19 = vand.u32 4294901760, %v264_v46  ;;  %v8409_v54 = vand.u32 4294901760, %v267_v45 }
 0x1e8   : > { %v8391_v62 = vsub.f32 %v8332_v6, %v10497_v52  ;;  %v1691_v11 = vpop.f32.mrf.mxu0  ;;  %v2096_v27 = vpop.f32.mrf.mxu1  ;;  %5387 = vmatmul.mubr.f32.gmra.mxu0 %v3124_v60  ;;  %5461 = vmatmul.mubr.f32.gmra.mxu1 %v8203_v22  ;;  %10498 = vst [vmem:[#allocation21_spill] sm:$0xff] %v8397_v17  ;;  %v8407_v60 = vsub.f32 %v261_v50, %v8377_v33  ;;  %v10515_v6 = vld [vmem:[#allocation44_spill] sm:$0xff] }
 0x1e9   : > { %10499 = vst [vmem:[#allocation148_spill] sm:$0xff] %v8399_v19  ;;  %v1692_v52 = vadd.f32 %v1691_v11, %v7897_v23  ;;  %v8403_v53 = vadd.f32 %v2096_v27, %v1674_v21  ;;  %5389 = vmatprep.mubr.f32.mxu0 %v3134_v24  ;;  %5463 = vmatprep.mubr.f32.mxu1 %v8208_v20  ;;  %v3164_v23 = vand.u32 4294901760, %v3163_v12  ;;  %v10502_v21 = vand.u32 4294901760, %v8362_v35  ;;  %v276_v20 = vld [vmem:[%s6342_s26 + $0x238] sm:$0xff] }
 0x1ea   : > { %10501 = vst [vmem:[#allocation151_spill] sm:$0xff] %v8407_v60  ;;  %v1693_v51 = vpop.f32.mrf.mxu0  ;;  %v2098_v22 = vpop.f32.mrf.mxu1  ;;  %5588 = vmatprep.subr.mxu1 %v7751_v61  ;;  %5510 = vmatprep.subr.mxu0 %v7799_v48  ;;  %v3174_v8 = vand.u32 4294901760, %v8391_v62  ;;  %v8420_v24 = vand.u32 4294901760, %v270_v44  ;;  %v10504_v27 = vand.u32 4294901760, %v8369_v7  ;;  %v8428_v12 = vsub.f32 %v264_v46, %v8399_v19  ;;  %v10508_v46 = vld [vmem:[#allocation41_spill] sm:$0xff] }
 0x1eb   : > { %10500 = vst [vmem:[#allocation149_spill] sm:$0xff] %v8403_v53  ;;  %5589 = vmatpush3.msra.mxu1 %v7751_v61  ;;  %5511 = vmatpush3.msra.mxu0 %v7799_v48  ;;  %v3183_v50 = vsub.f32 %v8362_v35, %v10502_v21  ;;  %v8430_v62 = vand.u32 4294901760, %v273_v26  ;;  %v279_v21 = vld [vmem:[%s6342_s26 + $0x250] sm:$0xff] }
 0x1ec   : > { %10503 = vst [vmem:[#allocation153_spill] sm:$0xff] %v8420_v24  ;;  %v1700_v22 = vpop.f32.mrf.mxu0  ;;  %v2107_v11 = vpop.f32.mrf.mxu1  ;;  %5390 = vmatmul.mubr.f32.gmra.mxu0 %v3144_v63  ;;  %5464 = vmatmul.mubr.f32.gmra.mxu1 %v8236_v36  ;;  %v3193_v51 = vsub.f32 %v8369_v7, %v10504_v27  ;;  %10505 = vst [vmem:[#allocation155_spill] sm:$0xff] %v8428_v12  ;;  %v8440_v27 = vsub.f32 %v267_v45, %v8409_v54  ;;  %v10509_v7 = vld [vmem:[#allocation43_spill] sm:$0xff] }
 0x1ed   : > { %v1701_v53 = vadd.f32 %v1700_v22, %v7919_v41  ;;  %v8435_v38 = vadd.f32 %v2107_v11, %v1683_v37  ;;  %5392 = vmatprep.mubr.f32.mxu0 %v3154_v29  ;;  %5466 = vmatprep.mubr.f32.mxu1 %v8243_v5  ;;  %v3184_v41 = vand.u32 4294901760, %v3183_v50  ;;  %v8447_v29 = vsub.f32 %v270_v44, %v8420_v24  ;;  %v282_v50 = vld [vmem:[%s6342_s26 + $0x268] sm:$0xff] }
 0x1ee   : > { %10507 = vst [vmem:[#allocation40_spill] sm:$0xff] %v8440_v27  ;;  %v1702_v48 = vpop.f32.mrf.mxu0  ;;  %v2109_v36 = vpop.f32.mrf.mxu1  ;;  %5590 = vmatprep.subr.mxu1 %v10508_v46  ;;  %5512 = vmatprep.subr.mxu0 %v10509_v7  ;;  %v8449_v37 = vand.u32 4294901760, %v276_v20  ;;  %v8451_v22 = vand.u32 4294901760, %v279_v21  ;;  %v3194_v11 = vand.u32 4294901760, %v3193_v51  ;;  %v8459_v44 = vsub.f32 %v273_v26, %v8430_v62  ;;  %v10512_v5 = vld [vmem:[#allocation71_spill] sm:$0xff]  ;;  %v10516_v26 = vld [vmem:[#allocation54_spill] sm:$0xff] }
 0x1ef   : > { %10506 = vst [vmem:[#allocation39_spill] sm:$0xff] %v8435_v38  ;;  %5591 = vmatpush3.msra.mxu1 %v10508_v46  ;;  %5513 = vmatpush3.msra.mxu0 %v10509_v7  ;;  %10510 = vst [vmem:[#allocation42_spill] sm:$0xff] %v8447_v29  ;;  %v10511_v48 = vand.u32 4294901760, %v8397_v17 }
 0x1f0   : > { %v1709_v45 = vpop.f32.mrf.mxu0  ;;  %v2118_v36 = vpop.f32.mrf.mxu1  ;;  %5393 = vmatmul.mubr.f32.gmra.mxu0 %v3164_v23  ;;  %5467 = vmatmul.mubr.f32.gmra.mxu1 %v8260_v56  ;;  %v10514_v23 = vand.u32 4294901760, %v8407_v60 }
 0x1f1   : > { %v3203_v63 = vsub.f32 %v8397_v17, %v10511_v48  ;;  %v1710_v38 = vadd.f32 %v1709_v45, %v10512_v5  ;;  %v8463_v35 = vadd.f32 %v2118_v36, %v1692_v52  ;;  %5395 = vmatprep.mubr.f32.mxu0 %v3174_v8  ;;  %5469 = vmatprep.mubr.f32.mxu1 %v8270_v49  ;;  %v285_v48 = vld [vmem:[%s6342_s26 + $0x280] sm:$0xff]  ;;  %v8482_v45 = vand.u32 4294901760, %v282_v50 }
 0x1f2   : > { %v3213_v51 = vsub.f32 %v8407_v60, %v10514_v23  ;;  %v1711_v17 = vpop.f32.mrf.mxu0  ;;  %v2120_v7 = vpop.f32.mrf.mxu1  ;;  %5592 = vmatprep.subr.mxu1 %v10515_v6  ;;  %5514 = vmatprep.subr.mxu0 %v10516_v26  ;;  %v8477_v52 = vsub.f32 %v276_v20, %v8449_v37  ;;  %v8480_v8 = vsub.f32 %v279_v21, %v8451_v22  ;;  %v10518_v23 = vand.u32 4294901760, %v8428_v12  ;;  %v10519_v21 = vld [vmem:[#allocation76_spill] sm:$0xff] }
 0x1f3   : > { %10513 = vst [vmem:[#allocation49_spill] sm:$0xff] %v8463_v35  ;;  %5593 = vmatpush3.msra.mxu1 %v10515_v6  ;;  %5515 = vmatpush3.msra.mxu0 %v10516_v26  ;;  %v3204_v7 = vand.u32 4294901760, %v3203_v63  ;;  %v8489_v5 = vand.u32 4294901760, %v285_v48  ;;  %v288_v35 = vld [vmem:[%s6342_s26 + $0x298] sm:$0xff]  ;;  %v10523_v20 = vld [vmem:[#allocation48_spill] sm:$0xff] }
 0x1f4   : > { %10517 = vst [vmem:[#allocation51_spill] sm:$0xff] %v8477_v52  ;;  %v1718_v17 = vpop.f32.mrf.mxu0  ;;  %v2129_v36 = vpop.f32.mrf.mxu1  ;;  %5396 = vmatmul.mubr.f32.gmra.mxu0 %v3184_v41  ;;  %5470 = vmatmul.mubr.f32.gmra.mxu1 %v8276_v1  ;;  %v3223_v26 = vsub.f32 %v8428_v12, %v10518_v23  ;;  %v3214_v41 = vand.u32 4294901760, %v3213_v51  ;;  %v10521_v1 = vand.u32 4294901760, %v8440_v27  ;;  %v10522_v23 = vld [vmem:[#allocation37_spill] sm:$0xff]  ;;  %v291_v12 = vld [vmem:[%s6342_s26 + $0x2b0] sm:$0xff]  ;;  %v8519_v51 = vand.u32 4294901760, %v288_v35 }
 0x1f5   : > { %v1719_v56 = vadd.f32 %v1718_v17, %v10519_v21  ;;  %v8492_v49 = vadd.f32 %v2129_v36, %v1701_v53  ;;  %5398 = vmatprep.mubr.f32.mxu0 %v3194_v11  ;;  %5472 = vmatprep.mubr.f32.mxu1 %v8286_v3  ;;  %v10524_v53 = vand.u32 4294901760, %v8447_v29 }
 0x1f6   : > { %v3233_v63 = vsub.f32 %v8440_v27, %v10521_v1  ;;  %v1720_v60 = vpop.f32.mrf.mxu0  ;;  %v2131_v6 = vpop.f32.mrf.mxu1  ;;  %5594 = vmatprep.subr.mxu1 %v10522_v23  ;;  %5516 = vmatprep.subr.mxu0 %v10523_v20  ;;  %v3224_v36 = vand.u32 4294901760, %v3223_v26  ;;  %v10526_v1 = vld [vmem:[#allocation85_spill] sm:$0xff]  ;;  %v294_v26 = vld [vmem:[%s6342_s26 + $0x2c8] sm:$0xff] }
 0x1f7   : > { %10520 = vst [vmem:[#allocation55_spill] sm:$0xff] %v8492_v49  ;;  %5595 = vmatpush3.msra.mxu1 %v10522_v23  ;;  %5517 = vmatpush3.msra.mxu0 %v10523_v20  ;;  %v3243_v11 = vsub.f32 %v8447_v29, %v10524_v53  ;;  %v8510_v6 = vsub.f32 %v282_v50, %v8482_v45  ;;  %v10525_v20 = vand.u32 4294901760, %v8459_v44  ;;  %v10529_v27 = vld [vmem:[#allocation59_spill] sm:$0xff] }
 0x1f8   : > { %v1727_v60 = vpop.f32.mrf.mxu0  ;;  %v2140_v17 = vpop.f32.mrf.mxu1  ;;  %5399 = vmatmul.mubr.f32.gmra.mxu0 %v3204_v7  ;;  %5473 = vmatmul.mubr.f32.gmra.mxu1 %v8303_v47  ;;  %v8517_v53 = vsub.f32 %v285_v48, %v8489_v5  ;;  %v3234_v7 = vand.u32 4294901760, %v3233_v63  ;;  %v8525_v47 = vand.u32 4294901760, %v291_v12  ;;  %v297_v48 = vld [vmem:[%s6342_s26 + $0x2e0] sm:$0xff]  ;;  %v10532_v63 = vand.u32 4294901760, %v8480_v8 }
 0x1f9   : > { %v3253_v21 = vsub.f32 %v8459_v44, %v10525_v20  ;;  %v1728_v3 = vadd.f32 %v1727_v60, %v10526_v1  ;;  %v8522_v50 = vadd.f32 %v2140_v17, %v1710_v38  ;;  %5401 = vmatprep.mubr.f32.mxu0 %v3214_v41  ;;  %5475 = vmatprep.mubr.f32.mxu1 %v8305_v25  ;;  %v10530_v20 = vld [vmem:[#allocation56_spill] sm:$0xff]  ;;  %v3244_v38 = vand.u32 4294901760, %v3243_v11 }
 0x1fa   : > { %10528 = vst [vmem:[#allocation60_spill] sm:$0xff] %v8525_v47  ;;  %v1729_v49 = vpop.f32.mrf.mxu0  ;;  %v2142_v29 = vpop.f32.mrf.mxu1  ;;  %5596 = vmatprep.subr.mxu1 %v10529_v27  ;;  %5518 = vmatprep.subr.mxu0 %v10530_v20  ;;  %v10531_v41 = vand.u32 4294901760, %v8477_v52  ;;  %v3273_v60 = vsub.f32 %v8480_v8, %v10532_v63  ;;  %v8543_v11 = vsub.f32 %v288_v35, %v8519_v51  ;;  %v10537_v35 = vld [vmem:[#allocation61_spill] sm:$0xff] }
 0x1fb   : > { %10527 = vst [vmem:[#allocation58_spill] sm:$0xff] %v8522_v50  ;;  %5597 = vmatpush3.msra.mxu1 %v10529_v27  ;;  %5519 = vmatpush3.msra.mxu0 %v10530_v20  ;;  %v3254_v25 = vand.u32 4294901760, %v3253_v21  ;;  %v8545_v50 = vand.u32 4294901760, %v294_v26  ;;  %v8552_v63 = vsub.f32 %v291_v12, %v8525_v47  ;;  %v300_v21 = vld [vmem:[%s6342_s26 + $0x2f8] sm:$0xff]  ;;  %s180_s26 = sand.u32 1, %s5916_s15  }
 0x1fc   : > { %v3263_v1 = vsub.f32 %v8477_v52, %v10531_v41  ;;  %v1736_v29 = vpop.f32.mrf.mxu0  ;;  %v2151_v17 = vpop.f32.mrf.mxu1  ;;  %5402 = vmatmul.mubr.f32.gmra.mxu0 %v3224_v36  ;;  %5476 = vmatmul.mubr.f32.gmra.mxu1 %v8334_v39  ;;  %v8554_v36 = vand.u32 4294901760, %v297_v48  ;;  %v10536_v39 = vld [vmem:[#allocation47_spill] sm:$0xff]  ;;  %s5041_s11 = sshll.u32 %s180_s26, 8  ;;  %s9340_s13 = scalar_lea.sflag [#allocation4], %s180_s26 }
 0x1fd   : > { %10533 = vst [vmem:[#allocation62_spill] sm:$0xff] %v8545_v50  ;;  %v1737_v41 = vadd.f32 %v1736_v29, %v8007_v31  ;;  %v8548_v52 = vadd.f32 %v2151_v17, %v1719_v56  ;;  %5404 = vmatprep.mubr.f32.mxu0 %v3234_v7  ;;  %5478 = vmatprep.mubr.f32.mxu1 %v8341_v40  ;;  %v3274_v56 = vand.u32 4294901760, %v3273_v60  ;;  %v10538_v7 = vand.u32 4294901760, %v8510_v6  ;;  %v10541_v40 = vld [vmem:[#allocation52_spill] sm:$0xff]  ;;  %s9222_s12 = scalar_lea.vmem [#allocation3], %s5041_s11 }
 0x1fe   : > { %10535 = vst [vmem:[#allocation64_spill] sm:$0xff] %v8554_v36  ;;  %v1738_v49 = vpop.f32.mrf.mxu0  ;;  %v2153_v20 = vpop.f32.mrf.mxu1  ;;  %5598 = vmatprep.subr.mxu1 %v10536_v39  ;;  %5520 = vmatprep.subr.mxu0 %v10537_v35  ;;  %v3264_v31 = vand.u32 4294901760, %v3263_v1  ;;  %v8572_v1 = vand.u32 4294901760, %v300_v21 }
 0x1ff   : > { %10534 = vst [vmem:[#allocation63_spill] sm:$0xff] %v8548_v52  ;;  %5599 = vmatpush3.msra.mxu1 %v10536_v39  ;;  %5521 = vmatpush3.msra.mxu0 %v10537_v35  ;;  %v3283_v12 = vsub.f32 %v8510_v6, %v10538_v7  ;;  %v10539_v49 = vand.u32 4294901760, %v8517_v53  ;;  %v8570_v52 = vsub.f32 %v294_v26, %v8545_v50  ;;  %v10542_v26 = vld [vmem:[#allocation68_spill] sm:$0xff] }
 0x200   : > { %v1745_v29 = vpop.f32.mrf.mxu0  ;;  %v2162_v17 = vpop.f32.mrf.mxu1  ;;  %5405 = vmatmul.mubr.f32.gmra.mxu0 %v3244_v38  ;;  %5479 = vmatmul.mubr.f32.gmra.mxu1 %v8371_v18  ;;  %10540 = vst [vmem:[#allocation65_spill] sm:$0xff] %v8572_v1  ;;  %v8580_v7 = vsub.f32 %v297_v48, %v8554_v36  ;;  %v10543_v48 = vand.u32 4294901760, %v8543_v11 }
 0x201   : > { %v3293_v20 = vsub.f32 %v8517_v53, %v10539_v49  ;;  %v1746_v60 = vadd.f32 %v1745_v29, %v8026_v55  ;;  %v8575_v35 = vadd.f32 %v2162_v17, %v1728_v3  ;;  %5407 = vmatprep.mubr.f32.mxu0 %v3254_v25  ;;  %5481 = vmatprep.mubr.f32.mxu1 %v8377_v33  ;;  %v3284_v55 = vand.u32 4294901760, %v3283_v12 }
 0x202   : > { %v1747_v49 = vpop.f32.mrf.mxu0  ;;  %v2164_v18 = vpop.f32.mrf.mxu1  ;;  %5600 = vmatprep.subr.mxu1 %v10541_v40  ;;  %5522 = vmatprep.subr.mxu0 %v10542_v26  ;;  %v3303_v17 = vsub.f32 %v8543_v11, %v10543_v48 }
 0x203   : > { %5601 = vmatpush3.msra.mxu1 %v10541_v40  ;;  %5523 = vmatpush3.msra.mxu0 %v10542_v26  ;;  %v3294_v29 = vand.u32 4294901760, %v3293_v20  ;;  %v8592_v49 = vsub.f32 %v300_v21, %v8572_v1  ;;  %v9888_v20 = vand.u32 4294901760, %v8580_v7  ;;  %v10546_v18 = vld [vmem:[#allocation73_spill] sm:$0xff] }
 0x204   : > { %v1754_v3 = vpop.f32.mrf.mxu0  ;;  %v2173_v25 = vpop.f32.mrf.mxu1  ;;  %5408 = vmatmul.mubr.f32.gmra.mxu0 %v3264_v31  ;;  %5482 = vmatmul.mubr.f32.gmra.mxu1 %v8399_v19  ;;  %v10544_v31 = vand.u32 4294901760, %v8552_v63  ;;  %v10545_v19 = vld [vmem:[#allocation66_spill] sm:$0xff]  ;;  %v3304_v21 = vand.u32 4294901760, %v3303_v17 }
 0x205   : > { %v1755_v38 = vadd.f32 %v1754_v3, %v8043_v42  ;;  %v8595_v33 = vadd.f32 %v2173_v25, %v1737_v41  ;;  %5410 = vmatprep.mubr.f32.mxu0 %v3274_v56  ;;  %5484 = vmatprep.mubr.f32.mxu1 %v8409_v54  ;;  %v10547_v56 = vand.u32 4294901760, %v8570_v52  ;;  %v9887_v25 = vand.u32 4294901760, %v8592_v49 }
 0x206   : > { %v3313_v12 = vsub.f32 %v8552_v63, %v10544_v31  ;;  %v1756_v26 = vpop.f32.mrf.mxu0  ;;  %v2175_v48 = vpop.f32.mrf.mxu1  ;;  %5602 = vmatprep.subr.mxu1 %v10545_v19  ;;  %5524 = vmatprep.subr.mxu0 %v10546_v18 }
 0x207   : > { %5603 = vmatpush3.msra.mxu1 %v10545_v19  ;;  %5525 = vmatpush3.msra.mxu0 %v10546_v18  ;;  %v3323_v3 = vsub.f32 %v8570_v52, %v10547_v56 }
 0x208   : > { %v1763_v42 = vpop.f32.mrf.mxu0  ;;  %v2184_v41 = vpop.f32.mrf.mxu1  ;;  %5411 = vmatmul.mubr.f32.gmra.mxu0 %v3284_v55  ;;  %5485 = vmatmul.mubr.f32.gmra.mxu1 %v8420_v24  ;;  %v3314_v18 = vand.u32 4294901760, %v3313_v12  ;;  %v3333_v55 = vsub.f32 %v8580_v7, %v9888_v20  ;;  %v10548_v24 = vld [vmem:[#allocation80_spill] sm:$0xff]  ;;  %v3343_v12 = vsub.f32 %v8592_v49, %v9887_v25  ;;  %v10561_v25 = vld [vmem:[#allocation95_spill] sm:$0xff] }
 0x209   : > { %v1764_v31 = vadd.f32 %v1763_v42, %v8057_v59  ;;  %v8612_v26 = vadd.f32 %v2184_v41, %v1746_v60  ;;  %5413 = vmatprep.mubr.f32.mxu0 %v3294_v29  ;;  %5487 = vmatprep.mubr.f32.mxu1 %v8430_v62  ;;  %v3324_v29 = vand.u32 4294901760, %v3323_v3 }
 0x20a   : > { %v1765_v48 = vpop.f32.mrf.mxu0  ;;  %v2186_v17 = vpop.f32.mrf.mxu1  ;;  %5604 = vmatprep.subr.mxu1 %v7924_v10  ;;  %5526 = vmatprep.subr.mxu0 %v10548_v24  ;;  %v3334_v56 = vand.u32 4294901760, %v3333_v55 }
 0x20b   : > { %5605 = vmatpush3.msra.mxu1 %v7924_v10  ;;  %5527 = vmatpush3.msra.mxu0 %v10548_v24 }
 0x20c   : > { %v1772_v59 = vpop.f32.mrf.mxu0  ;;  %v2195_v60 = vpop.f32.mrf.mxu1  ;;  %5414 = vmatmul.mubr.f32.gmra.mxu0 %v3304_v21  ;;  %5488 = vmatmul.mubr.f32.gmra.mxu1 %v8449_v37  ;;  %v10549_v21 = vld [vmem:[#allocation87_spill] sm:$0xff] }
 0x20d   : > { %v1773_v42 = vadd.f32 %v1772_v59, %v8068_v43  ;;  %v8627_v41 = vadd.f32 %v2195_v60, %v1755_v38  ;;  %5416 = vmatprep.mubr.f32.mxu0 %v3314_v18  ;;  %5490 = vmatprep.mubr.f32.mxu1 %v8451_v22  ;;  %v3344_v43 = vand.u32 4294901760, %v3343_v12  ;;  %v10550_v60 = vld [vmem:[#allocation93_spill] sm:$0xff] }
 0x20e   : > { %v1774_v48 = vpop.f32.mrf.mxu0  ;;  %v2197_v24 = vpop.f32.mrf.mxu1  ;;  %5606 = vmatprep.subr.mxu1 %v7955_v32  ;;  %5528 = vmatprep.subr.mxu0 %v10549_v21 }
 0x20f   : > { %5607 = vmatpush3.msra.mxu1 %v7955_v32  ;;  %5529 = vmatpush3.msra.mxu0 %v10549_v21  ;;  %v10551_v48 = vld [vmem:[#allocation83_spill] sm:$0xff] }
 0x210   : > { %v1781_v3 = vpop.f32.mrf.mxu0  ;;  %v2206_v17 = vpop.f32.mrf.mxu1  ;;  %5417 = vmatmul.mubr.f32.gmra.mxu0 %v3324_v29  ;;  %5491 = vmatmul.mubr.f32.gmra.mxu1 %v8482_v45 }
 0x211   : > { %v1782_v38 = vadd.f32 %v1781_v3, %v8077_v58  ;;  %v8636_v18 = vadd.f32 %v2206_v17, %v1764_v31  ;;  %5419 = vmatprep.mubr.f32.mxu0 %v3334_v56  ;;  %5493 = vmatprep.mubr.f32.mxu1 %v8489_v5  ;;  %v10552_v58 = vld [vmem:[#allocation101_spill] sm:$0xff]  ;;  %v10553_v56 = vld [vmem:[#allocation99_spill] sm:$0xff] }
 0x212   : > { %v1783_v55 = vpop.f32.mrf.mxu0  ;;  %v2208_v59 = vpop.f32.mrf.mxu1  ;;  %5530 = vmatprep.subr.mxu0 %v10550_v60  ;;  %5608 = vmatprep.subr.mxu1 %v10551_v48  ;;  %v10554_v17 = vld [vmem:[#allocation115_spill] sm:$0xff] }
 0x213   : > { %5531 = vmatpush3.msra.mxu0 %v10550_v60  ;;  %5609 = vmatpush3.msra.mxu1 %v10551_v48  ;;  %v10555_v55 = vld [vmem:[#allocation90_spill] sm:$0xff]  ;;  %v10556_v59 = vld [vmem:[#allocation31_spill] sm:$0xff] }
 0x214   : > { %v1790_v29 = vpop.f32.mrf.mxu0  ;;  %v2217_v24 = vpop.f32.mrf.mxu1  ;;  %5420 = vmatmul.mubr.f32.gmra.mxu0 %v3344_v43  ;;  %5494 = vmatmul.mubr.f32.gmra.mxu1 %v8519_v51 }
 0x215   : > { %v1791_v31 = vadd.f32 %v1790_v29, %v10552_v58  ;;  %v8645_v12 = vadd.f32 %v2217_v24, %v1773_v42  ;;  %5532 = vmatprep.subr.mxu0 %v10553_v56  ;;  %5496 = vmatprep.mubr.f32.mxu1 %v8525_v47  ;;  %v10557_v42 = vld [vmem:[#allocation13_spill] sm:$0xff]  ;;  %v10559_v24 = vld [vmem:[#allocation12_spill] sm:$0xff] }
 0x216   : > { %v1792_v21 = vpop.f32.mrf.mxu0  ;;  %v2219_v3 = vpop.f32.mrf.mxu1  ;;  %5533 = vmatpush3.msra.mxu0 %v10553_v56  ;;  %5534 = vmatprep.mubr.f32.mxu0 %v10554_v17 }
 0x217   : > { %5610 = vmatprep.subr.mxu1 %v10555_v55  ;;  %5662 = vmatprep.subr.mxu0 %v10556_v59  ;;  %v10560_v3 = vld [vmem:[#allocation119_spill] sm:$0xff] }
 0x218   : > { %v2228_v43 = vpop.f32.mrf.mxu1  ;;  %v2407_v60 = vpop.f32.mrf.mxu0  ;;  %5497 = vmatmul.mubr.f32.gmra.mxu1 %v8545_v50  ;;  %5535 = vmatmul.mubr.f32.vlgmr.msra.gmra.mxu0 %v10557_v42 }
 0x219   : > { %v8655_v29 = vadd.f32 %v2228_v43, %v1782_v38  ;;  %v2408_v58 = vadd.f32 %v2407_v60, %v10559_v24  ;;  %5611 = vmatpush3.msra.mxu1 %v10555_v55  ;;  %5499 = vmatprep.mubr.f32.mxu1 %v8554_v36  ;;  %v10562_v38 = vld [vmem:[#allocation121_spill] sm:$0xff]  ;;  %v10563_v60 = vld [vmem:[#allocation103_spill] sm:$0xff] }
 0x21a   : > { %v2230_v56 = vpop.f32.mrf.mxu1  ;;  %v2409_v21 = vpop.f32.mrf.mxu0  ;;  %5537 = vmatprep.mubr.f32.mxu0 %v10560_v3  ;;  %5612 = vmatprep.subr.mxu1 %v10561_v25 }
 0x21b   : > { %10558 = vst [vmem:[#allocation67_spill] sm:$0xff] %v8655_v29  ;;  %5613 = vmatpush3.msra.mxu1 %v10561_v25  ;;  %5663 = vmatpush3.msra.mxu0 %v10556_v59  ;;  %v10564_v56 = vld [vmem:[#allocation22_spill] sm:$0xff]  ;;  %v10565_v21 = vand.u32 4294901760, %v10554_v17 }
 0x21c   : > { %v2239_v20 = vpop.f32.mrf.mxu1  ;;  %v2414_v50 = vpop.f32.mrf.mxu0  ;;  %5500 = vmatmul.mubr.f32.gmra.mxu1 %v8572_v1  ;;  %5538 = vmatmul.mubr.f32.gmra.mxu0 %v10562_v38  ;;  %v10566_v59 = vld [vmem:[#allocation38_spill] sm:$0xff] }
 0x21d   : > { %v8666_v43 = vadd.f32 %v2239_v20, %v1791_v31  ;;  %v2415_v24 = vadd.f32 %v2414_v50, %v10563_v60  ;;  %5540 = vmatprep.mubr.f32.mxu0 %v10564_v56  ;;  %5614 = vmatprep.mubr.f32.mxu1 %v10565_v21  ;;  %v10567_v20 = vand.u32 4294901760, %v10557_v42  ;;  %v10568_v50 = vld [vmem:[#allocation9_spill] sm:$0xff] }
 0x21e   : > { %v2241_v36 = vpop.f32.mrf.mxu1  ;;  %v2416_v29 = vpop.f32.mrf.mxu0  ;;  %5742 = vmatprep.subr.mxu1 %v7676_v2  ;;  %5664 = vmatprep.subr.mxu0 %v10566_v59  ;;  %v10570_v21 = vld [vmem:[#allocation33_spill] sm:$0xff] }
 0x21f   : > { %5665 = vmatpush3.msra.mxu0 %v10566_v59  ;;  %v10569_v29 = vand.u32 4294901760, %v10560_v3  ;;  %v10573_v3 = vand.u32 4294901760, %v10564_v56 }
 0x220   : > { %v2421_v1 = vpop.f32.mrf.mxu0  ;;  %v2728_v47 = vpop.f32.mrf.mxu1  ;;  %5541 = vmatmul.mubr.f32.gmra.mxu0 %v8226_v28  ;;  %5615 = vmatmul.mubr.f32.vlgmr.msra.gmra.mxu1 %v10567_v20 }
 0x221   : > { %v2422_v31 = vadd.f32 %v2421_v1, %v10568_v50  ;;  %v8679_v60 = vadd.f32 %v2728_v47, %v2408_v58  ;;  %5743 = vmatpush3.msra.mxu1 %v7676_v2  ;;  %5543 = vmatprep.mubr.f32.mxu0 %v8234_v0  ;;  %v10571_v47 = vand.u32 4294901760, %v10562_v38  ;;  %v10572_v2 = vld [vmem:[#allocation105_spill] sm:$0xff]  ;;  %v10574_v50 = vld [vmem:[#allocation36_spill] sm:$0xff] }
 0x222   : > { %v2423_v36 = vpop.f32.mrf.mxu0  ;;  %v2730_v17 = vpop.f32.mrf.mxu1  ;;  %5617 = vmatprep.mubr.f32.mxu1 %v10569_v29  ;;  %5744 = vmatprep.subr.mxu1 %v7693_v15 }
 0x223   : > { %5745 = vmatpush3.msra.mxu1 %v7693_v15  ;;  %5666 = vmatprep.subr.mxu0 %v10570_v21  ;;  %v10576_v17 = vld [vmem:[#allocation14_spill] sm:$0xff] }
 0x224   : > { %v2428_v42 = vpop.f32.mrf.mxu0  ;;  %v2735_v59 = vpop.f32.mrf.mxu1  ;;  %5544 = vmatmul.mubr.f32.gmra.mxu0 %v8258_v16  ;;  %5618 = vmatmul.mubr.f32.gmra.mxu1 %v10571_v47 }
 0x225   : > { %v2429_v1 = vadd.f32 %v2428_v42, %v10572_v2  ;;  %v8692_v58 = vadd.f32 %v2735_v59, %v2415_v24  ;;  %5546 = vmatprep.mubr.f32.mxu0 %v8268_v14  ;;  %5620 = vmatprep.mubr.f32.mxu1 %v10573_v3  ;;  %v10575_v24 = vand.u32 4294901760, %v8226_v28  ;;  %v10578_v59 = vld [vmem:[#allocation53_spill] sm:$0xff]  ;;  %v10580_v2 = vld [vmem:[#allocation107_spill] sm:$0xff] }
 0x226   : > { %v2430_v20 = vpop.f32.mrf.mxu0  ;;  %v2737_v15 = vpop.f32.mrf.mxu1  ;;  %5667 = vmatpush3.msra.mxu0 %v10570_v21  ;;  %5746 = vmatprep.subr.mxu1 %v7723_v9  ;;  %v10577_v21 = vand.u32 4294901760, %v8234_v0 }
 0x227   : > { %5747 = vmatpush3.msra.mxu1 %v7723_v9  ;;  %5668 = vmatprep.subr.mxu0 %v10574_v50  ;;  %v10581_v20 = vand.u32 4294901760, %v8268_v14 }
 0x228   : > { %v2435_v38 = vpop.f32.mrf.mxu0  ;;  %v2742_v36 = vpop.f32.mrf.mxu1  ;;  %5547 = vmatmul.mubr.f32.gmra.mxu0 %v8284_v30  ;;  %5621 = vmatmul.mubr.f32.gmra.mxu1 %v10575_v24 }
 0x229   : > { %v2436_v56 = vadd.f32 %v2435_v38, %v10576_v17  ;;  %v8705_v29 = vadd.f32 %v2742_v36, %v2422_v31  ;;  %5549 = vmatprep.mubr.f32.mxu0 %v8296_v4  ;;  %5623 = vmatprep.mubr.f32.mxu1 %v10577_v21  ;;  %v10579_v31 = vand.u32 4294901760, %v8258_v16  ;;  %v10584_v36 = vld [vmem:[#allocation10_spill] sm:$0xff]  ;;  %v10585_v17 = vld [vmem:[#allocation139_spill] sm:$0xff]  ;;  %v10586_v21 = vand.u32 4294901760, %v8296_v4 }
 0x22a   : > { %v2437_v42 = vpop.f32.mrf.mxu0  ;;  %v2744_v9 = vpop.f32.mrf.mxu1  ;;  %5669 = vmatpush3.msra.mxu0 %v10574_v50  ;;  %5748 = vmatprep.subr.mxu1 %v7751_v61  ;;  %v10582_v50 = vld [vmem:[#allocation45_spill] sm:$0xff] }
 0x22b   : > { %5749 = vmatpush3.msra.mxu1 %v7751_v61  ;;  %5670 = vmatprep.subr.mxu0 %v10578_v59  ;;  %v10587_v9 = vld [vmem:[#allocation44_spill] sm:$0xff] }
 0x22c   : > { %v2442_v28 = vpop.f32.mrf.mxu0  ;;  %v2749_v47 = vpop.f32.mrf.mxu1  ;;  %5550 = vmatmul.mubr.f32.gmra.mxu0 %v8301_v13  ;;  %5624 = vmatmul.mubr.f32.gmra.mxu1 %v10579_v31  ;;  %v10591_v31 = vld [vmem:[#allocation110_spill] sm:$0xff] }
 0x22d   : > { %v2443_v0 = vadd.f32 %v2442_v28, %v10580_v2  ;;  %v8718_v3 = vadd.f32 %v2749_v47, %v2429_v1  ;;  %5552 = vmatprep.mubr.f32.mxu0 %v8313_v57  ;;  %5626 = vmatprep.mubr.f32.mxu1 %v10581_v20  ;;  %v10583_v1 = vand.u32 4294901760, %v8284_v30  ;;  %v10589_v47 = vld [vmem:[#allocation143_spill] sm:$0xff] }
 0x22e   : > { %v2444_v15 = vpop.f32.mrf.mxu0  ;;  %v2751_v61 = vpop.f32.mrf.mxu1  ;;  %5671 = vmatpush3.msra.mxu0 %v10578_v59  ;;  %5750 = vmatprep.subr.mxu1 %v10508_v46  ;;  %v10588_v59 = vld [vmem:[#allocation46_spill] sm:$0xff]  ;;  %v10592_v20 = vld [vmem:[#allocation27_spill] sm:$0xff] }
 0x22f   : > { %5751 = vmatpush3.msra.mxu1 %v10508_v46  ;;  %5672 = vmatprep.subr.mxu0 %v10582_v50  ;;  %v10593_v15 = vand.u32 4294901760, %v8313_v57 }
 0x230   : > { %v2449_v16 = vpop.f32.mrf.mxu0  ;;  %v2756_v38 = vpop.f32.mrf.mxu1  ;;  %5553 = vmatmul.mubr.f32.gmra.mxu0 %v8329_v34  ;;  %5627 = vmatmul.mubr.f32.gmra.mxu1 %v10583_v1  ;;  %v10595_v1 = vld [vmem:[#allocation21_spill] sm:$0xff] }
 0x231   : > { %v2450_v14 = vadd.f32 %v2449_v16, %v10584_v36  ;;  %v8731_v24 = vadd.f32 %v2756_v38, %v2436_v56  ;;  %5555 = vmatprep.mubr.f32.mxu0 %v10585_v17  ;;  %5629 = vmatprep.mubr.f32.mxu1 %v10586_v21  ;;  %v10590_v56 = vand.u32 4294901760, %v8301_v13  ;;  %v10594_v16 = vld [vmem:[#allocation50_spill] sm:$0xff]  ;;  %v10597_v36 = vld [vmem:[#allocation16_spill] sm:$0xff] }
 0x232   : > { %v2451_v42 = vpop.f32.mrf.mxu0  ;;  %v2758_v46 = vpop.f32.mrf.mxu1  ;;  %5673 = vmatpush3.msra.mxu0 %v10582_v50  ;;  %5752 = vmatprep.subr.mxu1 %v10587_v9 }
 0x233   : > { %5753 = vmatpush3.msra.mxu1 %v10587_v9  ;;  %5674 = vmatprep.subr.mxu0 %v10588_v59  ;;  %v10598_v42 = vld [vmem:[#allocation151_spill] sm:$0xff]  ;;  %v10599_v46 = vand.u32 4294901760, %v10585_v17 }
 0x234   : > { %v2456_v30 = vpop.f32.mrf.mxu0  ;;  %v2763_v28 = vpop.f32.mrf.mxu1  ;;  %5556 = vmatmul.mubr.f32.gmra.mxu0 %v10589_v47  ;;  %5630 = vmatmul.mubr.f32.gmra.mxu1 %v10590_v56  ;;  %v10603_v56 = vld [vmem:[#allocation18_spill] sm:$0xff] }
 0x235   : > { %v2457_v4 = vadd.f32 %v2456_v30, %v10591_v31  ;;  %v8744_v2 = vadd.f32 %v2763_v28, %v2443_v0  ;;  %5558 = vmatprep.mubr.f32.mxu0 %v10592_v20  ;;  %5632 = vmatprep.mubr.f32.mxu1 %v10593_v15  ;;  %v10596_v0 = vand.u32 4294901760, %v8329_v34  ;;  %v10601_v28 = vld [vmem:[#allocation155_spill] sm:$0xff]  ;;  %v10604_v15 = vld [vmem:[#allocation40_spill] sm:$0xff] }
 0x236   : > { %v2458_v61 = vpop.f32.mrf.mxu0  ;;  %v2765_v50 = vpop.f32.mrf.mxu1  ;;  %5675 = vmatpush3.msra.mxu0 %v10588_v59  ;;  %5754 = vmatprep.subr.mxu1 %v10522_v23  ;;  %v10600_v59 = vld [vmem:[#allocation57_spill] sm:$0xff] }
 0x237   : > { %5755 = vmatpush3.msra.mxu1 %v10522_v23  ;;  %5676 = vmatprep.subr.mxu0 %v10594_v16  ;;  %v10605_v61 = vand.u32 4294901760, %v10592_v20 }
 0x238   : > { %v2463_v13 = vpop.f32.mrf.mxu0  ;;  %v2770_v38 = vpop.f32.mrf.mxu1  ;;  %5559 = vmatmul.mubr.f32.gmra.mxu0 %v10595_v1  ;;  %5633 = vmatmul.mubr.f32.gmra.mxu1 %v10596_v0  ;;  %v10609_v0 = vld [vmem:[#allocation15_spill] sm:$0xff] }
 0x239   : > { %v2464_v57 = vadd.f32 %v2463_v13, %v10597_v36  ;;  %v8757_v21 = vadd.f32 %v2770_v38, %v2450_v14  ;;  %5561 = vmatprep.mubr.f32.mxu0 %v10598_v42  ;;  %5635 = vmatprep.mubr.f32.mxu1 %v10599_v46  ;;  %v10602_v14 = vand.u32 4294901760, %v10589_v47  ;;  %v10607_v38 = vld [vmem:[#allocation42_spill] sm:$0xff]  ;;  %v10610_v46 = vand.u32 4294901760, %v10598_v42 }
 0x23a   : > { %v2465_v9 = vpop.f32.mrf.mxu0  ;;  %v2772_v23 = vpop.f32.mrf.mxu1  ;;  %5677 = vmatpush3.msra.mxu0 %v10594_v16  ;;  %5756 = vmatprep.subr.mxu1 %v10529_v27  ;;  %v10606_v16 = vld [vmem:[#allocation6_spill] sm:$0xff] }
 0x23b   : > { %5757 = vmatpush3.msra.mxu1 %v10529_v27  ;;  %5678 = vmatprep.subr.mxu0 %v10600_v59  ;;  %v10611_v23 = vld [vmem:[#allocation74_spill] sm:$0xff] }
 0x23c   : > { %v2470_v34 = vpop.f32.mrf.mxu0  ;;  %v2777_v30 = vpop.f32.mrf.mxu1  ;;  %5562 = vmatmul.mubr.f32.gmra.mxu0 %v10601_v28  ;;  %5636 = vmatmul.mubr.f32.gmra.mxu1 %v10602_v14 }
 0x23d   : > { %v2471_v17 = vadd.f32 %v2470_v34, %v10603_v56  ;;  %v8770_v31 = vadd.f32 %v2777_v30, %v2457_v4  ;;  %5564 = vmatprep.mubr.f32.mxu0 %v10604_v15  ;;  %5638 = vmatprep.mubr.f32.mxu1 %v10605_v61  ;;  %v10608_v4 = vand.u32 4294901760, %v10595_v1  ;;  %v10612_v34 = vld [vmem:[#allocation51_spill] sm:$0xff]  ;;  %v10614_v30 = vld [vmem:[#allocation125_spill] sm:$0xff]  ;;  %v10615_v56 = vand.u32 4294901760, %v10604_v15 }
 0x23e   : > { %v2472_v50 = vpop.f32.mrf.mxu0  ;;  %v2779_v27 = vpop.f32.mrf.mxu1  ;;  %5679 = vmatpush3.msra.mxu0 %v10600_v59  ;;  %5758 = vmatprep.subr.mxu1 %v10536_v39 }
 0x23f   : > { %5759 = vmatpush3.msra.mxu1 %v10536_v39  ;;  %5680 = vmatprep.subr.mxu0 %v10606_v16  ;;  %v10616_v50 = vld [vmem:[#allocation78_spill] sm:$0xff] }
 0x240   : > { %v2477_v47 = vpop.f32.mrf.mxu0  ;;  %v2784_v13 = vpop.f32.mrf.mxu1  ;;  %5565 = vmatmul.mubr.f32.gmra.mxu0 %v10607_v38  ;;  %5639 = vmatmul.mubr.f32.gmra.mxu1 %v10608_v4 }
 0x241   : > { %v2478_v20 = vadd.f32 %v2477_v47, %v10609_v0  ;;  %v8783_v36 = vadd.f32 %v2784_v13, %v2464_v57  ;;  %5567 = vmatprep.mubr.f32.mxu0 %v8459_v44  ;;  %5641 = vmatprep.mubr.f32.mxu1 %v10610_v46  ;;  %v10613_v57 = vand.u32 4294901760, %v10601_v28  ;;  %v10619_v13 = vand.u32 4294901760, %v8459_v44  ;;  %v10620_v0 = vld [vmem:[#allocation7_spill] sm:$0xff] }
 0x242   : > { %v2479_v9 = vpop.f32.mrf.mxu0  ;;  %v2786_v39 = vpop.f32.mrf.mxu1  ;;  %5681 = vmatpush3.msra.mxu0 %v10606_v16  ;;  %5760 = vmatprep.subr.mxu1 %v10541_v40  ;;  %v10618_v16 = vld [vmem:[#allocation127_spill] sm:$0xff] }
 0x243   : > { %5761 = vmatpush3.msra.mxu1 %v10541_v40  ;;  %5682 = vmatprep.subr.mxu0 %v10611_v23  ;;  %v10622_v9 = vld [vmem:[#allocation26_spill] sm:$0xff] }
 0x244   : > { %v2484_v1 = vpop.f32.mrf.mxu0  ;;  %v2791_v59 = vpop.f32.mrf.mxu1  ;;  %5568 = vmatmul.mubr.f32.gmra.mxu0 %v10612_v34  ;;  %5642 = vmatmul.mubr.f32.gmra.mxu1 %v10613_v57 }
 0x245   : > { %v2485_v42 = vadd.f32 %v2484_v1, %v10614_v30  ;;  %v8796_v14 = vadd.f32 %v2791_v59, %v2471_v17  ;;  %5570 = vmatprep.mubr.f32.mxu0 %v8480_v8  ;;  %5644 = vmatprep.mubr.f32.mxu1 %v10615_v56  ;;  %v10617_v17 = vand.u32 4294901760, %v10607_v38  ;;  %v10624_v59 = vld [vmem:[#allocation92_spill] sm:$0xff]  ;;  %v10625_v30 = vand.u32 4294901760, %v8510_v6 }
 0x246   : > { %v2486_v61 = vpop.f32.mrf.mxu0  ;;  %v2793_v40 = vpop.f32.mrf.mxu1  ;;  %5683 = vmatpush3.msra.mxu0 %v10611_v23  ;;  %5762 = vmatprep.subr.mxu1 %v10545_v19  ;;  %v10623_v23 = vand.u32 4294901760, %v8480_v8 }
 0x247   : > { %5763 = vmatpush3.msra.mxu1 %v10545_v19  ;;  %5684 = vmatprep.subr.mxu0 %v10616_v50  ;;  %v10627_v61 = vand.u32 4294901760, %v8517_v53 }
 0x248   : > { %v2491_v28 = vpop.f32.mrf.mxu0  ;;  %v2798_v27 = vpop.f32.mrf.mxu1  ;;  %5571 = vmatmul.mubr.f32.gmra.mxu0 %v8510_v6  ;;  %5645 = vmatmul.mubr.f32.gmra.mxu1 %v10617_v17  ;;  %v10630_v17 = vld [vmem:[#allocation30_spill] sm:$0xff] }
 0x249   : > { %v2492_v15 = vadd.f32 %v2491_v28, %v10618_v16  ;;  %v8809_v47 = vadd.f32 %v2798_v27, %v2478_v20  ;;  %5573 = vmatprep.mubr.f32.mxu0 %v8517_v53  ;;  %5647 = vmatprep.mubr.f32.mxu1 %v10619_v13  ;;  %v10621_v20 = vand.u32 4294901760, %v10612_v34  ;;  %v10629_v27 = vand.u32 4294901760, %v8543_v11 }
 0x24a   : > { %v2493_v4 = vpop.f32.mrf.mxu0  ;;  %v2800_v19 = vpop.f32.mrf.mxu1  ;;  %5685 = vmatpush3.msra.mxu0 %v10616_v50  ;;  %5764 = vmatprep.subr.mxu1 %v7924_v10  ;;  %v10628_v50 = vld [vmem:[#allocation97_spill] sm:$0xff] }
 0x24b   : > { %5765 = vmatpush3.msra.mxu1 %v7924_v10  ;;  %5686 = vmatprep.subr.mxu0 %v10620_v0  ;;  %v10632_v19 = vld [vmem:[#allocation8_spill] sm:$0xff] }
 0x24c   : > { %v2498_v38 = vpop.f32.mrf.mxu0  ;;  %v2805_v46 = vpop.f32.mrf.mxu1  ;;  %5574 = vmatmul.mubr.f32.gmra.mxu0 %v8543_v11  ;;  %5648 = vmatmul.mubr.f32.gmra.mxu1 %v10621_v20  ;;  %v10636_v20 = vld [vmem:[#allocation32_spill] sm:$0xff] }
 0x24d   : > { %v2499_v44 = vadd.f32 %v2498_v38, %v10622_v9  ;;  %v8822_v39 = vadd.f32 %v2805_v46, %v2485_v42  ;;  %5576 = vmatprep.mubr.f32.mxu0 %v8552_v63  ;;  %5650 = vmatprep.mubr.f32.mxu1 %v10623_v23  ;;  %v10626_v42 = vld [vmem:[#allocation135_spill] sm:$0xff]  ;;  %v10634_v38 = vand.u32 4294901760, %v8570_v52 }
 0x24e   : > { %v2500_v1 = vpop.f32.mrf.mxu0  ;;  %v2807_v10 = vpop.f32.mrf.mxu1  ;;  %5687 = vmatpush3.msra.mxu0 %v10620_v0  ;;  %5766 = vmatprep.subr.mxu1 %v7955_v32  ;;  %v10635_v46 = vld [vmem:[#allocation11_spill] sm:$0xff] }
 0x24f   : > { %5767 = vmatpush3.msra.mxu1 %v7955_v32  ;;  %5688 = vmatprep.subr.mxu0 %v10624_v59  ;;  %v10638_v10 = vld [vmem:[#allocation113_spill] sm:$0xff] }
 0x250   : > { %v2505_v34 = vpop.f32.mrf.mxu0  ;;  %v2812_v57 = vpop.f32.mrf.mxu1  ;;  %5577 = vmatmul.mubr.f32.gmra.mxu0 %v8570_v52  ;;  %5651 = vmatmul.mubr.f32.gmra.mxu1 %v10625_v30  ;;  %v10641_v30 = vld [vmem:[#allocation34_spill] sm:$0xff] }
 0x251   : > { %v2506_v8 = vadd.f32 %v2505_v34, %v10626_v42  ;;  %v8835_v56 = vadd.f32 %v2812_v57, %v2492_v15  ;;  %5579 = vmatprep.mubr.f32.mxu0 %v8580_v7  ;;  %5653 = vmatprep.mubr.f32.mxu1 %v10627_v61  ;;  %v10631_v15 = vand.u32 4294901760, %v8552_v63  ;;  %v10639_v34 = vand.u32 4294901760, %v8592_v49  ;;  %v10640_v57 = vld [vmem:[#allocation117_spill] sm:$0xff] }
 0x252   : > { %v2507_v40 = vpop.f32.mrf.mxu0  ;;  %v2814_v32 = vpop.f32.mrf.mxu1  ;;  %5689 = vmatpush3.msra.mxu0 %v10624_v59  ;;  %5768 = vmatprep.subr.mxu1 %v10551_v48 }
 0x253   : > { %5690 = vmatprep.subr.mxu0 %v10628_v50  ;;  %5769 = vmatpush3.msra.mxu1 %v10551_v48  ;;  %v10633_v48 = vld [vmem:[#allocation112_spill] sm:$0xff] }
 0x254   : > { %v2512_v6 = vpop.f32.mrf.mxu0  ;;  %v2819_v28 = vpop.f32.mrf.mxu1  ;;  %5580 = vmatmul.mubr.f32.gmra.mxu0 %v8592_v49  ;;  %5654 = vmatmul.mubr.f32.gmra.mxu1 %v10629_v27  ;;  %v10644_v49 = vld [vmem:[#allocation149_spill] sm:$0xff] }
 0x255   : > { %v2513_v53 = vadd.f32 %v2512_v6, %v10630_v17  ;;  %v8848_v16 = vadd.f32 %v2819_v28, %v2499_v44  ;;  %5691 = vmatpush3.msra.mxu0 %v10628_v50  ;;  %5656 = vmatprep.mubr.f32.mxu1 %v10631_v15  ;;  %v10637_v44 = vand.u32 4294901760, %v8580_v7  ;;  %v10642_v7 = vld [vmem:[#allocation20_spill] sm:$0xff]  ;;  %v10645_v28 = vld [vmem:[#allocation17_spill] sm:$0xff] }
 0x256   : > { %v2514_v13 = vpop.f32.mrf.mxu0  ;;  %v2821_v4 = vpop.f32.mrf.mxu1  ;;  %5692 = vmatprep.subr.mxu0 %v10632_v19  ;;  %5694 = vmatprep.mubr.f32.mxu0 %v10633_v48 }
 0x257   : > { %5693 = vmatpush3.msra.mxu0 %v10632_v19  ;;  %5770 = vmatprep.subr.mxu1 %v10555_v55  ;;  %v10646_v13 = vld [vmem:[#allocation24_spill] sm:$0xff]  ;;  %v10647_v4 = vld [vmem:[#allocation39_spill] sm:$0xff] }
 0x258   : > { %v2519_v11 = vpop.f32.mrf.mxu0  ;;  %v2826_v0 = vpop.f32.mrf.mxu1  ;;  %5657 = vmatmul.mubr.f32.gmra.mxu1 %v10634_v38  ;;  %5695 = vmatmul.mubr.f32.vlgmr.msra.gmra.mxu0 %v10635_v46 }
 0x259   : > { %v2520_v63 = vadd.f32 %v2519_v11, %v10636_v20  ;;  %v8861_v9 = vadd.f32 %v2826_v0, %v2506_v8  ;;  %5771 = vmatpush3.msra.mxu1 %v10555_v55  ;;  %5659 = vmatprep.mubr.f32.mxu1 %v10637_v44  ;;  %v10648_v11 = vld [vmem:[#allocation19_spill] sm:$0xff]  ;;  %v10650_v44 = vld [vmem:[#allocation49_spill] sm:$0xff] }
 0x25a   : > { %v2521_v23 = vpop.f32.mrf.mxu0  ;;  %v2828_v1 = vpop.f32.mrf.mxu1  ;;  %5697 = vmatprep.mubr.f32.mxu0 %v10638_v10  ;;  %5772 = vmatprep.subr.mxu1 %v10561_v25 }
 0x25b   : > { %5773 = vmatpush3.msra.mxu1 %v10561_v25  ;;  %v10643_v25 = vld [vmem:[#allocation123_spill] sm:$0xff] }
 0x25c   : > { %v2526_v52 = vpop.f32.mrf.mxu0  ;;  %v2833_v59 = vpop.f32.mrf.mxu1  ;;  %5660 = vmatmul.mubr.f32.gmra.mxu1 %v10639_v34  ;;  %5698 = vmatmul.mubr.f32.gmra.mxu0 %v10640_v57 }
 0x25d   : > { %v2527_v55 = vadd.f32 %v2526_v52, %v10641_v30  ;;  %v8873_v42 = vadd.f32 %v2833_v59, %v2513_v53  ;;  %5700 = vmatprep.mubr.f32.mxu0 %v10642_v7  ;;  %5774 = vmatprep.mubr.f32.mxu1 %v10633_v48  ;;  %v10652_v30 = vld [vmem:[#allocation133_spill] sm:$0xff] }
 0x25e   : > { %v2528_v8 = vpop.f32.mrf.mxu0  ;;  %v2835_v61 = vpop.f32.mrf.mxu1 }
 0x25f   : > { %v10654_v61 = vld [vmem:[#allocation28_spill] sm:$0xff] }
 0x260   : > { %v2533_v40 = vpop.f32.mrf.mxu0  ;;  %v2840_v32 = vpop.f32.mrf.mxu1  ;;  %5701 = vmatmul.mubr.f32.gmra.mxu0 %v10643_v25  ;;  %5775 = vmatmul.mubr.f32.vlgmr.msra.gmra.mxu1 %v10635_v46 }
 0x261   : > { %v2534_v50 = vadd.f32 %v2533_v40, %v10644_v49  ;;  %v8880_v6 = vadd.f32 %v2840_v32, %v2520_v63  ;;  %5703 = vmatprep.mubr.f32.mxu0 %v10645_v28  ;;  %5777 = vmatprep.mubr.f32.mxu1 %v10638_v10  ;;  %v10649_v63 = vld [vmem:[#allocation130_spill] sm:$0xff]  ;;  %v10651_v10 = vld [vmem:[#allocation132_spill] sm:$0xff] }
 0x262   : > { %v2535_v27 = vpop.f32.mrf.mxu0  ;;  %v2842_v17 = vpop.f32.mrf.mxu1 }
 0x264   : > { %v2540_v53 = vpop.f32.mrf.mxu0  ;;  %v2847_v15 = vpop.f32.mrf.mxu1  ;;  %5704 = vmatmul.mubr.f32.gmra.mxu0 %v10646_v13  ;;  %5778 = vmatmul.mubr.f32.gmra.mxu1 %v10640_v57 }
 0x265   : > { %v2541_v19 = vadd.f32 %v2540_v53, %v10647_v4  ;;  %v8887_v48 = vadd.f32 %v2847_v15, %v2527_v55  ;;  %5706 = vmatprep.mubr.f32.mxu0 %v10648_v11  ;;  %5780 = vmatprep.mubr.f32.mxu1 %v10642_v7  ;;  %v10653_v55 = vld [vmem:[#allocation55_spill] sm:$0xff]  ;;  %v10657_v53 = vld [vmem:[#allocation137_spill] sm:$0xff] }
 0x266   : > { %v2542_v0 = vpop.f32.mrf.mxu0  ;;  %v2849_v38 = vpop.f32.mrf.mxu1 }
 0x267   : > { %v10659_v0 = vld [vmem:[#allocation63_spill] sm:$0xff] }
 0x268   : > { %v2547_v46 = vpop.f32.mrf.mxu0  ;;  %v2854_v20 = vpop.f32.mrf.mxu1  ;;  %5707 = vmatmul.mubr.f32.gmra.mxu0 %v10649_v63  ;;  %5781 = vmatmul.mubr.f32.gmra.mxu1 %v10643_v25 }
 0x269   : > { %v2548_v23 = vadd.f32 %v2547_v46, %v10650_v44  ;;  %v8894_v1 = vadd.f32 %v2854_v20, %v2534_v50  ;;  %5709 = vmatprep.mubr.f32.mxu0 %v10651_v10  ;;  %5783 = vmatprep.mubr.f32.mxu1 %v10645_v28  ;;  %v10655_v50 = vld [vmem:[#allocation23_spill] sm:$0xff]  ;;  %v10656_v28 = vld [vmem:[#allocation58_spill] sm:$0xff]  ;;  %v10660_v20 = vld [vmem:[#allocation141_spill] sm:$0xff] }
 0x26a   : > { %v2549_v52 = vpop.f32.mrf.mxu0  ;;  %v2856_v59 = vpop.f32.mrf.mxu1 }
 0x26b   : > { %v10661_v52 = vld [vmem:[#allocation145_spill] sm:$0xff] }
 0x26c   : > { %v2554_v34 = vpop.f32.mrf.mxu0  ;;  %v2861_v57 = vpop.f32.mrf.mxu1  ;;  %5710 = vmatmul.mubr.f32.gmra.mxu0 %v10652_v30  ;;  %5784 = vmatmul.mubr.f32.gmra.mxu1 %v10646_v13 }
 0x26d   : > { %v2555_v7 = vadd.f32 %v2554_v34, %v10653_v55  ;;  %v8901_v8 = vadd.f32 %v2861_v57, %v2541_v19  ;;  %5712 = vmatprep.mubr.f32.mxu0 %v10654_v61  ;;  %5786 = vmatprep.mubr.f32.mxu1 %v10648_v11  ;;  %v10658_v11 = vld [vmem:[#allocation25_spill] sm:$0xff]  ;;  %v10662_v57 = vld [vmem:[#allocation146_spill] sm:$0xff] }
 0x26e   : > { %v2556_v40 = vpop.f32.mrf.mxu0  ;;  %v2863_v32 = vpop.f32.mrf.mxu1 }
 0x26f   : > { %v10663_v40 = vld [vmem:[#allocation148_spill] sm:$0xff] }
 0x270   : > { %v2561_v25 = vpop.f32.mrf.mxu0  ;;  %v2868_v49 = vpop.f32.mrf.mxu1  ;;  %5713 = vmatmul.mubr.f32.gmra.mxu0 %v10655_v50  ;;  %5787 = vmatmul.mubr.f32.gmra.mxu1 %v10649_v63 }
 0x271   : > { %v2562_v27 = vadd.f32 %v2561_v25, %v10656_v28  ;;  %v8908_v17 = vadd.f32 %v2868_v49, %v2548_v23  ;;  %5715 = vmatprep.mubr.f32.mxu0 %v10657_v53  ;;  %5789 = vmatprep.mubr.f32.mxu1 %v10651_v10 }
 0x272   : > { %v2563_v15 = vpop.f32.mrf.mxu0  ;;  %v2870_v13 = vpop.f32.mrf.mxu1 }
 0x274   : > { %v2568_v4 = vpop.f32.mrf.mxu0  ;;  %v2875_v19 = vpop.f32.mrf.mxu1  ;;  %5716 = vmatmul.mubr.f32.gmra.mxu0 %v10658_v11  ;;  %5790 = vmatmul.mubr.f32.gmra.mxu1 %v10652_v30 }
 0x275   : > { %v2569_v38 = vadd.f32 %v2568_v4, %v10659_v0  ;;  %v8915_v46 = vadd.f32 %v2875_v19, %v2555_v7  ;;  %5718 = vmatprep.mubr.f32.mxu0 %v10660_v20  ;;  %5792 = vmatprep.mubr.f32.mxu1 %v10654_v61 }
 0x276   : > { %v2570_v63 = vpop.f32.mrf.mxu0  ;;  %v2877_v44 = vpop.f32.mrf.mxu1 }
 0x278   : > { %v2575_v23 = vpop.f32.mrf.mxu0  ;;  %v2882_v10 = vpop.f32.mrf.mxu1  ;;  %5719 = vmatmul.mubr.f32.gmra.mxu0 %v10661_v52  ;;  %5793 = vmatmul.mubr.f32.gmra.mxu1 %v10655_v50 }
 0x279   : > { %v2576_v59 = vadd.f32 %v2575_v23, %v8575_v35  ;;  %v8922_v34 = vadd.f32 %v2882_v10, %v2562_v27  ;;  %5721 = vmatprep.mubr.f32.mxu0 %v10662_v57  ;;  %5795 = vmatprep.mubr.f32.mxu1 %v10657_v53  ;;  %v10664_v27 = vld [vmem:[#allocation153_spill] sm:$0xff] }
 0x27a   : > { %v2577_v30 = vpop.f32.mrf.mxu0  ;;  %v2884_v55 = vpop.f32.mrf.mxu1 }
 0x27b   : > { %v10665_v30 = vld [vmem:[#allocation60_spill] sm:$0xff] }
 0x27c   : > { %v2582_v7 = vpop.f32.mrf.mxu0  ;;  %v2889_v61 = vpop.f32.mrf.mxu1  ;;  %5722 = vmatmul.mubr.f32.gmra.mxu0 %v10663_v40  ;;  %5796 = vmatmul.mubr.f32.gmra.mxu1 %v10658_v11 }
 0x27d   : > { %v2583_v32 = vadd.f32 %v2582_v7, %v8595_v33  ;;  %v8929_v25 = vadd.f32 %v2889_v61, %v2569_v38  ;;  %5724 = vmatprep.mubr.f32.mxu0 %v8409_v54  ;;  %5798 = vmatprep.mubr.f32.mxu1 %v10660_v20  ;;  %v10666_v61 = vld [vmem:[#allocation62_spill] sm:$0xff] }
 0x27e   : > { %v2584_v35 = vpop.f32.mrf.mxu0  ;;  %v2891_v49 = vpop.f32.mrf.mxu1 }
 0x280   : > { %v2589_v50 = vpop.f32.mrf.mxu0  ;;  %v2896_v28 = vpop.f32.mrf.mxu1  ;;  %5725 = vmatmul.mubr.f32.gmra.mxu0 %v10664_v27  ;;  %5799 = vmatmul.mubr.f32.gmra.mxu1 %v10661_v52 }
 0x281   : > { %v2590_v53 = vadd.f32 %v2589_v50, %v8612_v26  ;;  %v8936_v15 = vadd.f32 %v2896_v28, %v2576_v59  ;;  %5727 = vmatprep.mubr.f32.mxu0 %v8430_v62  ;;  %5801 = vmatprep.mubr.f32.mxu1 %v10662_v57  ;;  %v10669_v28 = vld [vmem:[#allocation65_spill] sm:$0xff] }
 0x282   : > { %v2591_v33 = vpop.f32.mrf.mxu0  ;;  %v2898_v13 = vpop.f32.mrf.mxu1 }
 0x284   : > { %v2596_v4 = vpop.f32.mrf.mxu0  ;;  %v2903_v19 = vpop.f32.mrf.mxu1  ;;  %5728 = vmatmul.mubr.f32.gmra.mxu0 %v8449_v37  ;;  %5802 = vmatmul.mubr.f32.gmra.mxu1 %v10663_v40  ;;  %v10667_v40 = vld [vmem:[#allocation67_spill] sm:$0xff] }
 0x285   : > { %v2597_v11 = vadd.f32 %v2596_v4, %v8627_v41  ;;  %v8943_v0 = vadd.f32 %v2903_v19, %v2583_v32  ;;  %5730 = vmatprep.mubr.f32.mxu0 %v8451_v22  ;;  %5804 = vmatprep.mubr.f32.mxu1 %v8409_v54 }
 0x286   : > { %v2598_v26 = vpop.f32.mrf.mxu0  ;;  %v2905_v38 = vpop.f32.mrf.mxu1 }
 0x288   : > { %v2603_v20 = vpop.f32.mrf.mxu0  ;;  %v2910_v63 = vpop.f32.mrf.mxu1  ;;  %5731 = vmatmul.mubr.f32.gmra.mxu0 %v8482_v45  ;;  %5805 = vmatmul.mubr.f32.gmra.mxu1 %v10664_v27 }
 0x289   : > { %v2604_v44 = vadd.f32 %v2603_v20, %v8636_v18  ;;  %v8950_v23 = vadd.f32 %v2910_v63, %v2590_v53  ;;  %5733 = vmatprep.mubr.f32.mxu0 %v8489_v5  ;;  %5807 = vmatprep.mubr.f32.mxu1 %v8430_v62 }
 0x28a   : > { %v2605_v41 = vpop.f32.mrf.mxu0  ;;  %v2912_v10 = vpop.f32.mrf.mxu1 }
 0x28c   : > { %v2610_v52 = vpop.f32.mrf.mxu0  ;;  %v2917_v54 = vpop.f32.mrf.mxu1  ;;  %5734 = vmatmul.mubr.f32.gmra.mxu0 %v8519_v51  ;;  %5808 = vmatmul.mubr.f32.gmra.mxu1 %v8449_v37  ;;  %v10668_v37 = vld [vmem:[#allocation64_spill] sm:$0xff] }
 0x28d   : > { %v2611_v59 = vadd.f32 %v2610_v52, %v8645_v12  ;;  %v8957_v57 = vadd.f32 %v2917_v54, %v2597_v11  ;;  %5736 = vmatprep.mubr.f32.mxu0 %v10665_v30  ;;  %5810 = vmatprep.mubr.f32.mxu1 %v8451_v22 }
 0x28e   : > { %v2612_v18 = vpop.f32.mrf.mxu0  ;;  %v2919_v55 = vpop.f32.mrf.mxu1 }
 0x290   : > { %v2617_v7 = vpop.f32.mrf.mxu0  ;;  %v2924_v62 = vpop.f32.mrf.mxu1  ;;  %5737 = vmatmul.mubr.f32.gmra.mxu0 %v10666_v61  ;;  %5811 = vmatmul.mubr.f32.gmra.mxu1 %v8482_v45 }
 0x291   : > { %v2618_v32 = vadd.f32 %v2617_v7, %v10667_v40  ;;  %v8964_v35 = vadd.f32 %v2924_v62, %v2604_v44  ;;  %5739 = vmatprep.mubr.f32.mxu0 %v10668_v37  ;;  %5813 = vmatprep.mubr.f32.mxu1 %v8489_v5 }
 0x292   : > { %v2619_v12 = vpop.f32.mrf.mxu0  ;;  %v2926_v49 = vpop.f32.mrf.mxu1 }
 0x294   : > { %v2624_v50 = vpop.f32.mrf.mxu0  ;;  %v2931_v22 = vpop.f32.mrf.mxu1  ;;  %5740 = vmatmul.mubr.f32.gmra.mxu0 %v10669_v28  ;;  %5814 = vmatmul.mubr.f32.gmra.mxu1 %v8519_v51 }
 0x295   : > { %v2625_v27 = vadd.f32 %v2624_v50, %v8666_v43  ;;  %v8971_v53 = vadd.f32 %v2931_v22, %v2611_v59  ;;  %5816 = vmatprep.mubr.f32.mxu1 %v10665_v30 }
 0x296   : > { %v2626_v45 = vpop.f32.mrf.mxu0  ;;  %v2933_v33 = vpop.f32.mrf.mxu1 }
 0x298   : > { %v2938_v13 = vpop.f32.mrf.mxu1  ;;  %v5376_v4 = vpop.f32.mrf.mxu0  ;;  %5817 = vmatmul.mubr.f32.gmra.mxu1 %v10666_v61 }
 0x299   : > { %v8975_v5 = vadd.f32 %v2938_v13, %v2618_v32  ;;  %v3047_v19 = vadd.f32 %v5376_v4, %v8692_v58  ;;  %5819 = vmatprep.mubr.f32.mxu1 %v10668_v37 }
 0x29a   : > { %v2940_v11 = vpop.f32.mrf.mxu1  ;;  %v3036_v51 = vpop.f32.mrf.mxu0 }
 0x29b   : > { %v3037_v43 = vadd.f32 %v3036_v51, %v8679_v60 }
 0x29c   : > { %v2945_v26 = vpop.f32.mrf.mxu1  ;;  %v5379_v38 = vpop.f32.mrf.mxu0  ;;  %5820 = vmatmul.mubr.f32.gmra.mxu1 %v10669_v28 }
 0x29d   : > { %v8981_v20 = vadd.f32 %v2945_v26, %v2625_v27  ;;  %v3067_v63 = vadd.f32 %v5379_v38, %v8718_v3 }
 0x29e   : > { %v2947_v44 = vpop.f32.mrf.mxu1  ;;  %v3056_v41 = vpop.f32.mrf.mxu0 }
 0x29f   : > { %v3057_v10 = vadd.f32 %v3056_v41, %v8705_v29 }
 0x2a0   : > { %v5382_v58 = vpop.f32.mrf.mxu0  ;;  %v5456_v52 = vpop.f32.mrf.mxu1 }
 0x2a1   : > { %v3087_v54 = vadd.f32 %v5382_v58, %v8744_v2  ;;  %v8986_v59 = vadd.f32 %v5456_v52, %v3047_v19 }
 0x2a2   : > { %v3076_v30 = vpop.f32.mrf.mxu0  ;;  %v3497_v60 = vpop.f32.mrf.mxu1 }
 0x2a3   : > { %v3077_v18 = vadd.f32 %v3076_v30, %v8731_v24  ;;  %v8990_v55 = vadd.f32 %v3497_v60, %v3037_v43 }
 0x2a4   : > { %v5385_v7 = vpop.f32.mrf.mxu0  ;;  %v5459_v62 = vpop.f32.mrf.mxu1 }
 0x2a5   : > { %v3107_v3 = vadd.f32 %v5385_v7, %v8770_v31  ;;  %v8993_v61 = vadd.f32 %v5459_v62, %v3067_v63 }
 0x2a6   : > { %v3096_v29 = vpop.f32.mrf.mxu0  ;;  %v3509_v40 = vpop.f32.mrf.mxu1 }
 0x2a7   : > { %v3097_v32 = vadd.f32 %v3096_v29, %v8757_v21  ;;  %v8996_v2 = vadd.f32 %v3509_v40, %v3057_v10 }
 0x2a8   : > { %v5388_v37 = vpop.f32.mrf.mxu0  ;;  %v5462_v12 = vpop.f32.mrf.mxu1 }
 0x2a9   : > { %v3127_v49 = vadd.f32 %v5388_v37, %v8796_v14  ;;  %v8999_v50 = vadd.f32 %v5462_v12, %v3087_v54 }
 0x2aa   : > { %v3116_v24 = vpop.f32.mrf.mxu0  ;;  %v3521_v22 = vpop.f32.mrf.mxu1 }
 0x2ab   : > { %v3117_v28 = vadd.f32 %v3116_v24, %v8783_v36  ;;  %v9002_v27 = vadd.f32 %v3521_v22, %v3077_v18 }
 0x2ac   : > { %v5391_v31 = vpop.f32.mrf.mxu0  ;;  %v5465_v45 = vpop.f32.mrf.mxu1 }
 0x2ad   : > { %v3147_v33 = vadd.f32 %v5391_v31, %v8822_v39  ;;  %v9005_v13 = vadd.f32 %v5465_v45, %v3107_v3 }
 0x2ae   : > { %v3136_v21 = vpop.f32.mrf.mxu0  ;;  %v3533_v4 = vpop.f32.mrf.mxu1 }
 0x2af   : > { %v3137_v19 = vadd.f32 %v3136_v21, %v8809_v47  ;;  %v9008_v11 = vadd.f32 %v3533_v4, %v3097_v32 }
 0x2b0   : > { %v5394_v14 = vpop.f32.mrf.mxu0  ;;  %v5468_v51 = vpop.f32.mrf.mxu1 }
 0x2b1   : > { %v3167_v43 = vadd.f32 %v5394_v14, %v8848_v16  ;;  %v9011_v26 = vadd.f32 %v5468_v51, %v3127_v49 }
 0x2b2   : > { %v3156_v36 = vpop.f32.mrf.mxu0  ;;  %v3545_v38 = vpop.f32.mrf.mxu1 }
 0x2b3   : > { %v3157_v63 = vadd.f32 %v3156_v36, %v8835_v56  ;;  %v9014_v44 = vadd.f32 %v3545_v38, %v3117_v28 }
 0x2b4   : > { %v5397_v39 = vpop.f32.mrf.mxu0  ;;  %v5471_v41 = vpop.f32.mrf.mxu1 }
 0x2b5   : > { %v3187_v10 = vadd.f32 %v5397_v39, %v8873_v42  ;;  %v9017_v58 = vadd.f32 %v5471_v41, %v3147_v33 }
 0x2b6   : > { %v3176_v47 = vpop.f32.mrf.mxu0  ;;  %v3557_v52 = vpop.f32.mrf.mxu1 }
 0x2b7   : > { %v3177_v54 = vadd.f32 %v3176_v47, %v8861_v9  ;;  %v9020_v30 = vadd.f32 %v3557_v52, %v3137_v19 }
 0x2b8   : > { %v5400_v16 = vpop.f32.mrf.mxu0  ;;  %v5474_v60 = vpop.f32.mrf.mxu1 }
 0x2b9   : > { %v3207_v18 = vadd.f32 %v5400_v16, %v8887_v48  ;;  %v9023_v7 = vadd.f32 %v5474_v60, %v3167_v43 }
 0x2ba   : > { %v3196_v56 = vpop.f32.mrf.mxu0  ;;  %v3569_v62 = vpop.f32.mrf.mxu1 }
 0x2bb   : > { %v3197_v3 = vadd.f32 %v3196_v56, %v8880_v6  ;;  %v9026_v29 = vadd.f32 %v3569_v62, %v3157_v63 }
 0x2bc   : > { %v5403_v42 = vpop.f32.mrf.mxu0  ;;  %v5477_v40 = vpop.f32.mrf.mxu1 }
 0x2bd   : > { %v3227_v32 = vadd.f32 %v5403_v42, %v8901_v8  ;;  %v9029_v37 = vadd.f32 %v5477_v40, %v3187_v10 }
 0x2be   : > { %v3216_v9 = vpop.f32.mrf.mxu0  ;;  %v3581_v12 = vpop.f32.mrf.mxu1 }
 0x2bf   : > { %v3217_v49 = vadd.f32 %v3216_v9, %v8894_v1  ;;  %v9032_v24 = vadd.f32 %v3581_v12, %v3177_v54 }
 0x2c0   : > { %v5406_v48 = vpop.f32.mrf.mxu0  ;;  %v5480_v22 = vpop.f32.mrf.mxu1 }
 0x2c1   : > { %v3247_v28 = vadd.f32 %v5406_v48, %v8915_v46  ;;  %v9035_v31 = vadd.f32 %v5480_v22, %v3207_v18 }
 0x2c2   : > { %v3236_v6 = vpop.f32.mrf.mxu0  ;;  %v3593_v45 = vpop.f32.mrf.mxu1 }
 0x2c3   : > { %v3237_v33 = vadd.f32 %v3236_v6, %v8908_v17  ;;  %v9038_v21 = vadd.f32 %v3593_v45, %v3197_v3 }
 0x2c4   : > { %v5409_v8 = vpop.f32.mrf.mxu0  ;;  %v5483_v4 = vpop.f32.mrf.mxu1 }
 0x2c5   : > { %10670 = vst [vmem:[#allocation69_spill] sm:$0xff] %v9038_v21  ;;  %v3267_v19 = vadd.f32 %v5409_v8, %v8929_v25  ;;  %v9041_v14 = vadd.f32 %v5483_v4, %v3227_v32 }
 0x2c6   : > { %v3256_v1 = vpop.f32.mrf.mxu0  ;;  %v3605_v51 = vpop.f32.mrf.mxu1 }
 0x2c7   : > { %10671 = vst [vmem:[#allocation70_spill] sm:$0xff] %v9041_v14  ;;  %v3257_v43 = vadd.f32 %v3256_v1, %v8922_v34  ;;  %v9044_v36 = vadd.f32 %v3605_v51, %v3217_v49 }
 0x2c8   : > { %v5412_v46 = vpop.f32.mrf.mxu0  ;;  %v5486_v38 = vpop.f32.mrf.mxu1 }
 0x2c9   : > { %10672 = vst [vmem:[#allocation72_spill] sm:$0xff] %v9044_v36  ;;  %v3287_v63 = vadd.f32 %v5412_v46, %v8943_v0  ;;  %v9047_v39 = vadd.f32 %v5486_v38, %v3247_v28 }
 0x2ca   : > { %v3276_v17 = vpop.f32.mrf.mxu0  ;;  %v3617_v41 = vpop.f32.mrf.mxu1 }
 0x2cb   : > { %10673 = vst [vmem:[#allocation75_spill] sm:$0xff] %v9047_v39  ;;  %v3277_v10 = vadd.f32 %v3276_v17, %v8936_v15  ;;  %v9050_v47 = vadd.f32 %v3617_v41, %v3237_v33 }
 0x2cc   : > { %v5415_v25 = vpop.f32.mrf.mxu0  ;;  %v5489_v52 = vpop.f32.mrf.mxu1 }
 0x2cd   : > { %10674 = vst [vmem:[#allocation77_spill] sm:$0xff] %v9050_v47  ;;  %v3307_v54 = vadd.f32 %v5415_v25, %v8957_v57  ;;  %v9053_v16 = vadd.f32 %v5489_v52, %v3267_v19 }
 0x2ce   : > { %v3296_v34 = vpop.f32.mrf.mxu0  ;;  %v3629_v60 = vpop.f32.mrf.mxu1 }
 0x2cf   : > { %10675 = vst [vmem:[#allocation79_spill] sm:$0xff] %v9053_v16  ;;  %v3297_v18 = vadd.f32 %v3296_v34, %v8950_v23  ;;  %v9056_v56 = vadd.f32 %v3629_v60, %v3257_v43 }
 0x2d0   : > { %v5418_v0 = vpop.f32.mrf.mxu0  ;;  %v5492_v62 = vpop.f32.mrf.mxu1 }
 0x2d1   : > { %10676 = vst [vmem:[#allocation81_spill] sm:$0xff] %v9056_v56  ;;  %v3327_v3 = vadd.f32 %v5418_v0, %v8971_v53  ;;  %v9059_v42 = vadd.f32 %v5492_v62, %v3287_v63 }
 0x2d2   : > { %v3316_v15 = vpop.f32.mrf.mxu0  ;;  %v3641_v40 = vpop.f32.mrf.mxu1 }
 0x2d3   : > { %10677 = vst [vmem:[#allocation82_spill] sm:$0xff] %v9059_v42  ;;  %v3317_v32 = vadd.f32 %v3316_v15, %v8964_v35  ;;  %v9062_v9 = vadd.f32 %v3641_v40, %v3277_v10 }
 0x2d4   : > { %v5421_v57 = vpop.f32.mrf.mxu0  ;;  %v5495_v12 = vpop.f32.mrf.mxu1 }
 0x2d5   : > { %10678 = vst [vmem:[#allocation84_spill] sm:$0xff] %v9062_v9  ;;  %v3347_v49 = vadd.f32 %v5421_v57, %v8981_v20  ;;  %v9065_v48 = vadd.f32 %v5495_v12, %v3307_v54 }
 0x2d6   : > { %v3336_v23 = vpop.f32.mrf.mxu0  ;;  %v3653_v22 = vpop.f32.mrf.mxu1 }
 0x2d7   : > { %10679 = vst [vmem:[#allocation86_spill] sm:$0xff] %v9065_v48  ;;  %v3337_v28 = vadd.f32 %v3336_v23, %v8975_v5  ;;  %v9068_v6 = vadd.f32 %v3653_v22, %v3297_v18 }
 0x2d8   : > { %v5498_v53 = vpop.f32.mrf.mxu1  ;;  %v9070_v45 = vpop.f32.mrf.mxu0 }
 0x2d9   : > { %10680 = vst [vmem:[#allocation88_spill] sm:$0xff] %v9068_v6  ;;  %v9072_v33 = vadd.f32 %v5498_v53, %v3327_v3 }
 0x2da   : > { %v3665_v35 = vpop.f32.mrf.mxu1  ;;  %v9074_v8 = vpop.f32.mrf.mxu0 }
 0x2db   : > { %10681 = vst [vmem:[#allocation89_spill] sm:$0xff] %v9072_v33  ;;  %v9076_v4 = vadd.f32 %v3665_v35, %v3317_v32 }
 0x2dc   : > { %v5501_v19 = vpop.f32.mrf.mxu1  ;;  %v9078_v20 = vpop.f32.mrf.mxu0 }
 0x2dd   : > { %10682 = vst [vmem:[#allocation91_spill] sm:$0xff] %v9076_v4  ;;  %v9080_v1 = vadd.f32 %v5501_v19, %v3347_v49 }
 0x2de   : > { %v3677_v51 = vpop.f32.mrf.mxu1  ;;  %v9082_v43 = vpop.f32.mrf.mxu0 }
 0x2df   : > { %10683 = vst [vmem:[#allocation94_spill] sm:$0xff] %v9080_v1  ;;  %v9084_v5 = vadd.f32 %v3677_v51, %v3337_v28 }
 0x2e0   : > { %v9086_v46 = vpop.f32.mrf.mxu0  ;;  %v9088_v38 = vpop.f32.mrf.mxu1 }
 0x2e1   : > { %10684 = vst [vmem:[#allocation96_spill] sm:$0xff] %v9084_v5 }
 0x2e2   : > { %v9090_v63 = vpop.f32.mrf.mxu0  ;;  %v9092_v17 = vpop.f32.mrf.mxu1 }
 0x2e4   : > { %v9094_v41 = vpop.f32.mrf.mxu0  ;;  %v9096_v10 = vpop.f32.mrf.mxu1 }
 0x2e6   : > { %v9098_v25 = vpop.f32.mrf.mxu0  ;;  %v9100_v52 = vpop.f32.mrf.mxu1 }
 0x2e8   : > { %v9102_v54 = vpop.f32.mrf.mxu0  ;;  %v9104_v34 = vpop.f32.mrf.mxu1 }
 0x2ea   : > { %v9106_v60 = vpop.f32.mrf.mxu0  ;;  %v9108_v18 = vpop.f32.mrf.mxu1 }
 0x2ec   : > { %v9110_v0 = vpop.f32.mrf.mxu0  ;;  %v9112_v62 = vpop.f32.mrf.mxu1 }
 0x2ee   : > { %v9114_v3 = vpop.f32.mrf.mxu0  ;;  %v9116_v15 = vpop.f32.mrf.mxu1 }
 0x2f0   : > { %v9118_v40 = vpop.f32.mrf.mxu0  ;;  %v9120_v32 = vpop.f32.mrf.mxu1 }
 0x2f2   : > { %v9122_v57 = vpop.f32.mrf.mxu0  ;;  %v9124_v12 = vpop.f32.mrf.mxu1 }
 0x2f4   : > { %v9126_v49 = vpop.f32.mrf.mxu0  ;;  %v9128_v23 = vpop.f32.mrf.mxu1 }
 0x2f6   : > { %v9130_v22 = vpop.f32.mrf.mxu0  ;;  %v9132_v28 = vpop.f32.mrf.mxu1 }
 0x2f8   : > { %v9134_v53 = vpop.f32.mrf.mxu0  ;;  %v9136_v35 = vpop.f32.mrf.mxu1 }
 0x2fa   : > { %v9138_v19 = vpop.f32.mrf.mxu0  ;;  %v9140_v51 = vpop.f32.mrf.mxu1 }
 0x2fb   : > { %10685 = vst [vmem:[#allocation98_spill] sm:$0xff] %v9138_v19 }
 0x2fc   : > { %v9142_v5 = vpop.f32.mrf.mxu0  ;;  %v9144_v1 = vpop.f32.mrf.mxu1 }
 0x2fd   : > { %10686 = vst [vmem:[#allocation100_spill] sm:$0xff] %v9142_v5 }
 0x2fe   : > { %v9146_v4 = vpop.f32.mrf.mxu0  ;;  %v9148_v33 = vpop.f32.mrf.mxu1 }
 0x2ff   : > { %10687 = vst [vmem:[#allocation102_spill] sm:$0xff] %v9146_v4 }
 0x300   : > { %v9150_v6 = vpop.f32.mrf.mxu0  ;;  %v9152_v48 = vpop.f32.mrf.mxu1 }
 0x301   : > { %10688 = vst [vmem:[#allocation104_spill] sm:$0xff] %v9150_v6  ;;  %10689 = vst [vmem:[#allocation106_spill] sm:$0xff] %v9152_v48 }
 0x302   : > { %v9154_v9 = vpop.f32.mrf.mxu0  ;;  %v9156_v42 = vpop.f32.mrf.mxu1 }
 0x303   : > { %10690 = vst [vmem:[#allocation108_spill] sm:$0xff] %v9154_v9  ;;  %10691 = vst [vmem:[#allocation109_spill] sm:$0xff] %v9156_v42 }
 0x304   : > { %v9158_v56 = vpop.f32.mrf.mxu0  ;;  %v9160_v16 = vpop.f32.mrf.mxu1 }
 0x305   : > { %10692 = vst [vmem:[#allocation111_spill] sm:$0xff] %v9158_v56  ;;  %10693 = vst [vmem:[#allocation114_spill] sm:$0xff] %v9160_v16 }
 0x306   : > { %v9162_v47 = vpop.f32.mrf.mxu0  ;;  %v9164_v39 = vpop.f32.mrf.mxu1 }
 0x307   : > { %10694 = vst [vmem:[#allocation116_spill] sm:$0xff] %v9162_v47  ;;  %10695 = vst [vmem:[#allocation118_spill] sm:$0xff] %v9164_v39 }
 0x308   : > { %v9166_v36 = vpop.f32.mrf.mxu0  ;;  %v9168_v4 = vpop.f32.mrf.mxu1 }
 0x309   : > { %10696 = vst [vmem:[#allocation120_spill] sm:$0xff] %v9166_v36  ;;  %10697 = vst [vmem:[#allocation122_spill] sm:$0xff] %v9168_v4 }
 0x30a   : > { %v9170_v5 = vpop.f32.mrf.mxu0  ;;  %v9172_v6 = vpop.f32.mrf.mxu1 }
 0x30b   : > { %10698 = vst [vmem:[#allocation124_spill] sm:$0xff] %v9170_v5  ;;  %10699 = vst [vmem:[#allocation126_spill] sm:$0xff] %v9172_v6 }
 0x30c   : > { %v9174_v14 = vpop.f32.mrf.mxu0  ;;  %v9176_v9 = vpop.f32.mrf.mxu1 }
 0x30d   : > { %10700 = vst [vmem:[#allocation128_spill] sm:$0xff] %v9174_v14  ;;  %10701 = vst [vmem:[#allocation129_spill] sm:$0xff] %v9176_v9 }
 0x30e   : > { %v9178_v42 = vpop.f32.mrf.mxu0  ;;  %v9180_v56 = vpop.f32.mrf.mxu1 }
 0x30f   : > { %10702 = vst [vmem:[#allocation131_spill] sm:$0xff] %v9178_v42  ;;  %10703 = vst [vmem:[#allocation134_spill] sm:$0xff] %v9180_v56 }
 0x310   : > { %v9182_v16 = vpop.f32.mrf.mxu0  ;;  %v9184_v47 = vpop.f32.mrf.mxu1 }
 0x311   : > { %10704 = vst [vmem:[#allocation136_spill] sm:$0xff] %v9182_v16  ;;  %10705 = vst [vmem:[#allocation138_spill] sm:$0xff] %v9184_v47  ;;  %v3795_v47 = vadd.f32 %v9070_v45, %v8986_v59 }
 0x312   : > { %v9186_v36 = vpop.f32.mrf.mxu0  ;;  %v9188_v4 = vpop.f32.mrf.mxu1 }
 0x313   : > { %10706 = vst [vmem:[#allocation140_spill] sm:$0xff] %v9186_v36  ;;  %10707 = vst [vmem:[#allocation142_spill] sm:$0xff] %v9188_v4 }
 0x314   : > { %v9190_v5 = vpop.f32.mrf.mxu0  ;;  %v9192_v6 = vpop.f32.mrf.mxu1 }
 0x315   : > { %10708 = vst [vmem:[#allocation144_spill] sm:$0xff] %v9190_v5  ;;  %10709 = vst [vmem:[#allocation147_spill] sm:$0xff] %v9192_v6  ;;  %v3788_v5 = vadd.f32 %v9074_v8, %v8990_v55  ;;  %v4102_v6 = vadd.f32 %v9088_v38, %v3795_v47 }
 0x316   : > { %v9194_v14 = vpop.f32.mrf.mxu0  ;;  %v9196_v9 = vpop.f32.mrf.mxu1 }
 0x317   : > { %10710 = vst [vmem:[#allocation150_spill] sm:$0xff] %v9194_v14  ;;  %10711 = vst [vmem:[#allocation152_spill] sm:$0xff] %v9196_v9  ;;  %v4094_v9 = vadd.f32 %v9092_v17, %v3788_v5 }
 0x318   : > { %v9198_v42 = vpop.f32.mrf.mxu1  ;;  %v5696_v56 = vpop.f32.mrf.mxu0 }
 0x319   : > { %10712 = vst [vmem:[#allocation154_spill] sm:$0xff] %v9198_v42  ;;  %v4467_v48 = vadd.f32 %v5696_v56, %v4102_v6 }
 0x31a   : > { %v9200_v39 = vpop.f32.mrf.mxu1  ;;  %v4460_v16 = vpop.f32.mrf.mxu0 }
 0x31b   : > { %10713 = vst [vmem:[#allocation156_spill] sm:$0xff] %v9200_v39  ;;  %v3809_v39 = vadd.f32 %v9078_v20, %v8993_v61  ;;  %v4461_v8 = vadd.f32 %v4460_v16, %v4094_v9 }
 0x31c   : > { %v9204_v36 = vpop.f32.mrf.mxu1  ;;  %v5699_v4 = vpop.f32.mrf.mxu0 }
 0x31d   : > { %10714 = vst [vmem:[#allocation157_spill] sm:$0xff] %v9204_v36  ;;  %v3802_v36 = vadd.f32 %v9082_v43, %v8996_v2  ;;  %v4118_v55 = vadd.f32 %v9096_v10, %v3809_v39  ;;  %v3816_v39 = vadd.f32 %v9090_v63, %v9002_v27  ;;  %v3830_v27 = vadd.f32 %v9098_v25, %v9008_v11 }
 0x31e   : > { %v9211_v14 = vpop.f32.mrf.mxu1  ;;  %v4472_v42 = vpop.f32.mrf.mxu0  ;;  %v3844_v11 = vadd.f32 %v9106_v60, %v9014_v44  ;;  %v3858_v44 = vadd.f32 %v9114_v3, %v9020_v30  ;;  %v3872_v30 = vadd.f32 %v9122_v57, %v9026_v29  ;;  %v3886_v29 = vadd.f32 %v9130_v22, %v9032_v24  ;;  %v10716_v24 = vld [vmem:[#allocation69_spill] sm:$0xff]  ;;  %v10717_v22 = vld [vmem:[#allocation98_spill] sm:$0xff] }
 0x31f   : > { %10715 = vst [vmem:[#allocation158_spill] sm:$0xff] %v9211_v14  ;;  %v3823_v14 = vadd.f32 %v9086_v46, %v8999_v50  ;;  %v4110_v21 = vadd.f32 %v9100_v52, %v3802_v36  ;;  %v4479_v61 = vadd.f32 %v5699_v4, %v4118_v55  ;;  %v3837_v4 = vadd.f32 %v9094_v41, %v9005_v13 }
 0x320   : > { %v5702_v59 = vpop.f32.mrf.mxu0  ;;  %v5776_v45 = vpop.f32.mrf.mxu1  ;;  %v4126_v20 = vadd.f32 %v9108_v18, %v3816_v39  ;;  %v3851_v13 = vadd.f32 %v9102_v54, %v9011_v26  ;;  %v4142_v41 = vadd.f32 %v9116_v15, %v3830_v27  ;;  %v3865_v26 = vadd.f32 %v9110_v0, %v9017_v58 }
 0x321   : > { %v4740_v47 = vadd.f32 %v5776_v45, %v4467_v48  ;;  %v4134_v16 = vadd.f32 %v9104_v34, %v3823_v14  ;;  %v4473_v9 = vadd.f32 %v4472_v42, %v4110_v21  ;;  %v4150_v21 = vadd.f32 %v9112_v62, %v3837_v4 }
 0x322   : > { %v4484_v38 = vpop.f32.mrf.mxu0  ;;  %v4733_v19 = vpop.f32.mrf.mxu1  ;;  %v4166_v25 = vadd.f32 %v9120_v32, %v3851_v13  ;;  %v4158_v54 = vadd.f32 %v9124_v12, %v3844_v11  ;;  %v4182_v60 = vadd.f32 %v9128_v23, %v3865_v26  ;;  %v3879_v58 = vadd.f32 %v9118_v40, %v9023_v7 }
 0x323   : > { %4924 = vst [vmem:[%s9222_s12 + $0x8] sm:$0xff] %v4740_v47  ;;  %v4734_v56 = vadd.f32 %v4733_v19, %v4461_v8  ;;  %v4491_v43 = vadd.f32 %v5702_v59, %v4134_v16  ;;  %v4485_v14 = vadd.f32 %v4484_v38, %v4126_v20  ;;  %v4174_v0 = vadd.f32 %v9132_v28, %v3858_v44  ;;  %v10726_v44 = vld [vmem:[#allocation104_spill] sm:$0xff] }
 0x324   : > { %v5705_v2 = vpop.f32.mrf.mxu0  ;;  %v5779_v6 = vpop.f32.mrf.mxu1  ;;  %v4198_v3 = vadd.f32 %v9136_v35, %v3879_v58  ;;  %v3893_v7 = vadd.f32 %v9126_v49, %v9029_v37  ;;  %v4190_v40 = vadd.f32 %v9140_v51, %v3872_v30  ;;  %v3907_v37 = vadd.f32 %v9134_v53, %v9035_v31  ;;  %v10719_v31 = vld [vmem:[#allocation70_spill] sm:$0xff]  ;;  %v10720_v53 = vld [vmem:[#allocation100_spill] sm:$0xff] }
 0x325   : > { %4923 = vst [vmem:[%s9222_s12] sm:$0xff] %v4734_v56  ;;  %v4752_v50 = vadd.f32 %v5779_v6, %v4479_v61  ;;  %v4503_v52 = vadd.f32 %v5705_v2, %v4150_v21  ;;  %v4206_v49 = vadd.f32 %v9148_v33, %v3886_v29  ;;  %v3921_v33 = vadd.f32 %v10720_v53, %v10719_v31  ;;  %v10741_v31 = vld [vmem:[#allocation124_spill] sm:$0xff] }
 0x326   : > { %v4496_v36 = vpop.f32.mrf.mxu0  ;;  %v4745_v48 = vpop.f32.mrf.mxu1  ;;  %v4214_v57 = vadd.f32 %v9144_v1, %v3893_v7  ;;  %v3900_v1 = vadd.f32 %v10717_v22, %v10716_v24  ;;  %v10732_v7 = vld [vmem:[#allocation111_spill] sm:$0xff]  ;;  %v10738_v24 = vld [vmem:[#allocation120_spill] sm:$0xff] }
 0x327   : > { %4926 = vst [vmem:[%s9222_s12 + $0x18] sm:$0xff] %v4752_v50  ;;  %v4746_v5 = vadd.f32 %v4745_v48, %v4473_v9  ;;  %v4497_v62 = vadd.f32 %v4496_v36, %v4142_v41 }
 0x328   : > { %v5708_v46 = vpop.f32.mrf.mxu0  ;;  %v5782_v17 = vpop.f32.mrf.mxu1 }
 0x329   : > { %4925 = vst [vmem:[%s9222_s12 + $0x10] sm:$0xff] %v4746_v5  ;;  %v4764_v42 = vadd.f32 %v5782_v17, %v4491_v43  ;;  %v4515_v15 = vadd.f32 %v5708_v46, %v4166_v25 }
 0x32a   : > { %v4508_v63 = vpop.f32.mrf.mxu0  ;;  %v4757_v10 = vpop.f32.mrf.mxu1 }
 0x32b   : > { %4928 = vst [vmem:[%s9222_s12 + $0x28] sm:$0xff] %v4764_v42  ;;  %v4758_v34 = vadd.f32 %v4757_v10, %v4485_v14  ;;  %v4509_v32 = vadd.f32 %v4508_v63, %v4158_v54  ;;  %v10718_v14 = vld [vmem:[#allocation106_spill] sm:$0xff] }
 0x32c   : > { %v5711_v18 = vpop.f32.mrf.mxu0  ;;  %v5785_v19 = vpop.f32.mrf.mxu1  ;;  %v4230_v42 = vadd.f32 %v10718_v14, %v3907_v37 }
 0x32d   : > { %4927 = vst [vmem:[%s9222_s12 + $0x20] sm:$0xff] %v4758_v34  ;;  %v4776_v59 = vadd.f32 %v5785_v19, %v4503_v52  ;;  %v4527_v12 = vadd.f32 %v5711_v18, %v4182_v60  ;;  %v10721_v52 = vld [vmem:[#allocation109_spill] sm:$0xff] }
 0x32e   : > { %v4520_v45 = vpop.f32.mrf.mxu0  ;;  %v4769_v55 = vpop.f32.mrf.mxu1  ;;  %v4222_v34 = vadd.f32 %v10721_v52, %v3900_v1  ;;  %v10739_v1 = vld [vmem:[#allocation134_spill] sm:$0xff] }
 0x32f   : > { %4930 = vst [vmem:[%s9222_s12 + $0x38] sm:$0xff] %v4776_v59  ;;  %v4770_v8 = vadd.f32 %v4769_v55, %v4497_v62  ;;  %v4521_v23 = vadd.f32 %v4520_v45, %v4174_v0  ;;  %v10722_v62 = vld [vmem:[#allocation72_spill] sm:$0xff]  ;;  %v10723_v59 = vld [vmem:[#allocation102_spill] sm:$0xff] }
 0x330   : > { %v5714_v47 = vpop.f32.mrf.mxu0  ;;  %v5788_v38 = vpop.f32.mrf.mxu1  ;;  %v3914_v45 = vadd.f32 %v10723_v59, %v10722_v62  ;;  %v10724_v55 = vld [vmem:[#allocation114_spill] sm:$0xff]  ;;  %v10744_v62 = vld [vmem:[#allocation128_spill] sm:$0xff] }
 0x331   : > { %4929 = vst [vmem:[%s9222_s12 + $0x30] sm:$0xff] %v4770_v8  ;;  %v4788_v61 = vadd.f32 %v5788_v38, %v4515_v15  ;;  %v4539_v28 = vadd.f32 %v5714_v47, %v4198_v3  ;;  %v4246_v26 = vadd.f32 %v10724_v55, %v3921_v33  ;;  %v10725_v38 = vld [vmem:[#allocation75_spill] sm:$0xff]  ;;  %v10742_v33 = vld [vmem:[#allocation138_spill] sm:$0xff] }
 0x332   : > { %v4532_v56 = vpop.f32.mrf.mxu0  ;;  %v4781_v2 = vpop.f32.mrf.mxu1  ;;  %v3935_v60 = vadd.f32 %v10726_v44, %v10725_v38  ;;  %v10747_v38 = vld [vmem:[#allocation131_spill] sm:$0xff] }
 0x333   : > { %4932 = vst [vmem:[%s9222_s12 + $0x48] sm:$0xff] %v4788_v61  ;;  %v4782_v6 = vadd.f32 %v4781_v2, %v4509_v32  ;;  %v4533_v35 = vadd.f32 %v4532_v56, %v4190_v40  ;;  %v10727_v32 = vld [vmem:[#allocation118_spill] sm:$0xff] }
 0x334   : > { %v5717_v39 = vpop.f32.mrf.mxu0  ;;  %v5791_v16 = vpop.f32.mrf.mxu1  ;;  %v4238_v61 = vadd.f32 %v10727_v32, %v3914_v45  ;;  %v10745_v45 = vld [vmem:[#allocation142_spill] sm:$0xff] }
 0x335   : > { %4931 = vst [vmem:[%s9222_s12 + $0x40] sm:$0xff] %v4782_v6  ;;  %v4800_v9 = vadd.f32 %v5791_v16, %v4527_v12  ;;  %v4551_v51 = vadd.f32 %v5717_v39, %v4214_v57  ;;  %v10728_v12 = vld [vmem:[#allocation77_spill] sm:$0xff]  ;;  %v10729_v6 = vld [vmem:[#allocation108_spill] sm:$0xff]  ;;  %v10730_v16 = vld [vmem:[#allocation122_spill] sm:$0xff] }
 0x336   : > { %v4544_v50 = vpop.f32.mrf.mxu0  ;;  %v4793_v36 = vpop.f32.mrf.mxu1  ;;  %v3928_v39 = vadd.f32 %v10729_v6, %v10728_v12  ;;  %v4262_v30 = vadd.f32 %v10730_v16, %v3935_v60  ;;  %v10748_v60 = vld [vmem:[#allocation147_spill] sm:$0xff]  ;;  %v10750_v12 = vld [vmem:[#allocation136_spill] sm:$0xff] }
 0x337   : > { %4934 = vst [vmem:[%s9222_s12 + $0x58] sm:$0xff] %v4800_v9  ;;  %v4794_v48 = vadd.f32 %v4793_v36, %v4521_v23  ;;  %v4545_v63 = vadd.f32 %v4544_v50, %v4206_v49  ;;  %v10731_v36 = vld [vmem:[#allocation79_spill] sm:$0xff] }
 0x338   : > { %v5720_v4 = vpop.f32.mrf.mxu0  ;;  %v5794_v20 = vpop.f32.mrf.mxu1  ;;  %v3949_v40 = vadd.f32 %v10732_v7, %v10731_v36  ;;  %v10754_v7 = vld [vmem:[#allocation154_spill] sm:$0xff] }
 0x339   : > { %4933 = vst [vmem:[%s9222_s12 + $0x50] sm:$0xff] %v4794_v48  ;;  %v4812_v43 = vadd.f32 %v5794_v20, %v4539_v28  ;;  %v4563_v18 = vadd.f32 %v5720_v4, %v4230_v42  ;;  %v10733_v28 = vld [vmem:[#allocation126_spill] sm:$0xff] }
 0x33a   : > { %v4556_v5 = vpop.f32.mrf.mxu0  ;;  %v4805_v46 = vpop.f32.mrf.mxu1  ;;  %v4254_v48 = vadd.f32 %v10733_v28, %v3928_v39  ;;  %v10751_v39 = vld [vmem:[#allocation152_spill] sm:$0xff] }
 0x33b   : > { %4936 = vst [vmem:[%s9222_s12 + $0x68] sm:$0xff] %v4812_v43  ;;  %v4806_v17 = vadd.f32 %v4805_v46, %v4533_v35  ;;  %v4557_v54 = vadd.f32 %v4556_v5, %v4222_v34  ;;  %v10734_v35 = vld [vmem:[#allocation81_spill] sm:$0xff]  ;;  %v10735_v43 = vld [vmem:[#allocation116_spill] sm:$0xff] }
 0x33c   : > { %v5723_v27 = vpop.f32.mrf.mxu0  ;;  %v5797_v21 = vpop.f32.mrf.mxu1  ;;  %v3942_v5 = vadd.f32 %v10735_v43, %v10734_v35  ;;  %v10736_v46 = vld [vmem:[#allocation129_spill] sm:$0xff]  ;;  %v10757_v43 = vld [vmem:[#allocation156_spill] sm:$0xff] }
 0x33d   : > { %4935 = vst [vmem:[%s9222_s12 + $0x60] sm:$0xff] %v4806_v17  ;;  %v4824_v10 = vadd.f32 %v5797_v21, %v4551_v51  ;;  %v4575_v56 = vadd.f32 %v5723_v27, %v4246_v26  ;;  %v4278_v37 = vadd.f32 %v10736_v46, %v3949_v40  ;;  %v10737_v21 = vld [vmem:[#allocation82_spill] sm:$0xff] }
 0x33e   : > { %v4568_v13 = vpop.f32.mrf.mxu0  ;;  %v4817_v41 = vpop.f32.mrf.mxu1  ;;  %v3963_v22 = vadd.f32 %v10738_v24, %v10737_v21  ;;  %v4270_v14 = vadd.f32 %v10739_v1, %v3942_v5  ;;  %v10760_v21 = vld [vmem:[#allocation157_spill] sm:$0xff] }
 0x33f   : > { %4938 = vst [vmem:[%s9222_s12 + $0x78] sm:$0xff] %v4824_v10  ;;  %v4818_v19 = vadd.f32 %v4817_v41, %v4545_v63  ;;  %v4569_v3 = vadd.f32 %v4568_v13, %v4238_v61  ;;  %v10740_v41 = vld [vmem:[#allocation84_spill] sm:$0xff] }
 0x340   : > { %v5726_v11 = vpop.f32.mrf.mxu0  ;;  %v5800_v25 = vpop.f32.mrf.mxu1  ;;  %v3956_v53 = vadd.f32 %v10741_v31, %v10740_v41  ;;  %v4294_v52 = vadd.f32 %v10742_v33, %v3963_v22 }
 0x341   : > { %4937 = vst [vmem:[%s9222_s12 + $0x70] sm:$0xff] %v4818_v19  ;;  %v4836_v15 = vadd.f32 %v5800_v25, %v4563_v18  ;;  %v4587_v4 = vadd.f32 %v5726_v11, %v4262_v30  ;;  %v10743_v25 = vld [vmem:[#allocation86_spill] sm:$0xff] }
 0x342   : > { %v4580_v8 = vpop.f32.mrf.mxu0  ;;  %v4829_v47 = vpop.f32.mrf.mxu1  ;;  %v3977_v59 = vadd.f32 %v10744_v62, %v10743_v25  ;;  %v4286_v55 = vadd.f32 %v10745_v45, %v3956_v53 }
 0x343   : > { %4940 = vst [vmem:[%s9222_s12 + $0x88] sm:$0xff] %v4836_v15  ;;  %v4830_v2 = vadd.f32 %v4829_v47, %v4557_v54  ;;  %v4581_v49 = vadd.f32 %v4580_v8, %v4254_v48  ;;  %v10746_v47 = vld [vmem:[#allocation88_spill] sm:$0xff] }
 0x344   : > { %v5729_v58 = vpop.f32.mrf.mxu0  ;;  %v5803_v0 = vpop.f32.mrf.mxu1  ;;  %v3970_v44 = vadd.f32 %v10747_v38, %v10746_v47  ;;  %v4310_v32 = vadd.f32 %v10748_v60, %v3977_v59 }
 0x345   : > { %4939 = vst [vmem:[%s9222_s12 + $0x80] sm:$0xff] %v4830_v2  ;;  %v4848_v23 = vadd.f32 %v5803_v0, %v4575_v56  ;;  %v4599_v42 = vadd.f32 %v5729_v58, %v4278_v37  ;;  %v10749_v0 = vld [vmem:[#allocation89_spill] sm:$0xff] }
 0x346   : > { %v4592_v9 = vpop.f32.mrf.mxu0  ;;  %v4841_v50 = vpop.f32.mrf.mxu1  ;;  %v3991_v6 = vadd.f32 %v10750_v12, %v10749_v0  ;;  %v4302_v16 = vadd.f32 %v10751_v39, %v3970_v44 }
 0x347   : > { %4942 = vst [vmem:[%s9222_s12 + $0x98] sm:$0xff] %v4848_v23  ;;  %v4842_v20 = vadd.f32 %v4841_v50, %v4569_v3  ;;  %v4593_v34 = vadd.f32 %v4592_v9, %v4270_v14  ;;  %v10752_v9 = vld [vmem:[#allocation91_spill] sm:$0xff]  ;;  %v10753_v50 = vld [vmem:[#allocation140_spill] sm:$0xff] }
 0x348   : > { %v5732_v29 = vpop.f32.mrf.mxu0  ;;  %v5806_v57 = vpop.f32.mrf.mxu1  ;;  %v3984_v36 = vadd.f32 %v10753_v50, %v10752_v9  ;;  %v4326_v40 = vadd.f32 %v10754_v7, %v3991_v6 }
 0x349   : > { %4941 = vst [vmem:[%s9222_s12 + $0x90] sm:$0xff] %v4842_v20  ;;  %v4860_v51 = vadd.f32 %v5806_v57, %v4587_v4  ;;  %v4611_v26 = vadd.f32 %v5732_v29, %v4294_v52  ;;  %v10755_v29 = vld [vmem:[#allocation94_spill] sm:$0xff]  ;;  %v10756_v57 = vld [vmem:[#allocation144_spill] sm:$0xff] }
 0x34a   : > { %v4604_v17 = vpop.f32.mrf.mxu0  ;;  %v4853_v27 = vpop.f32.mrf.mxu1  ;;  %v4005_v35 = vadd.f32 %v10756_v57, %v10755_v29  ;;  %v4318_v5 = vadd.f32 %v10757_v43, %v3984_v36 }
 0x34b   : > { %4944 = vst [vmem:[%s9222_s12 + $0xa8] sm:$0xff] %v4860_v51  ;;  %v4854_v63 = vadd.f32 %v4853_v27, %v4581_v49  ;;  %v4605_v61 = vadd.f32 %v4604_v17, %v4286_v55  ;;  %v10758_v51 = vld [vmem:[#allocation96_spill] sm:$0xff]  ;;  %v10759_v17 = vld [vmem:[#allocation150_spill] sm:$0xff] }
 0x34c   : > { %v5735_v10 = vpop.f32.mrf.mxu0  ;;  %v5809_v13 = vpop.f32.mrf.mxu1  ;;  %v3998_v27 = vadd.f32 %v10759_v17, %v10758_v51  ;;  %v4342_v24 = vadd.f32 %v10760_v21, %v4005_v35 }
 0x34d   : > { %4943 = vst [vmem:[%s9222_s12 + $0xa0] sm:$0xff] %v4854_v63  ;;  %v4872_v18 = vadd.f32 %v5809_v13, %v4599_v42  ;;  %v4623_v30 = vadd.f32 %v5735_v10, %v4310_v32  ;;  %v10761_v63 = vld [vmem:[#allocation158_spill] sm:$0xff] }
 0x34e   : > { %v4616_v19 = vpop.f32.mrf.mxu0  ;;  %v4865_v11 = vpop.f32.mrf.mxu1  ;;  %v4334_v10 = vadd.f32 %v10761_v63, %v3998_v27 }
 0x34f   : > { %4946 = vst [vmem:[%s9222_s12 + $0xb8] sm:$0xff] %v4872_v18  ;;  %v4866_v54 = vadd.f32 %v4865_v11, %v4593_v34  ;;  %v4617_v28 = vadd.f32 %v4616_v19, %v4302_v16 }
 0x350   : > { %v5738_v15 = vpop.f32.mrf.mxu0  ;;  %v5812_v8 = vpop.f32.mrf.mxu1 }
 0x351   : > { %4945 = vst [vmem:[%s9222_s12 + $0xb0] sm:$0xff] %v4866_v54  ;;  %v4884_v56 = vadd.f32 %v5812_v8, %v4611_v26  ;;  %v4635_v46 = vadd.f32 %v5738_v15, %v4326_v40 }
 0x352   : > { %v4628_v2 = vpop.f32.mrf.mxu0  ;;  %v4877_v58 = vpop.f32.mrf.mxu1 }
 0x353   : > { %4948 = vst [vmem:[%s9222_s12 + $0xc8] sm:$0xff] %v4884_v56  ;;  %v4878_v3 = vadd.f32 %v4877_v58, %v4605_v61  ;;  %v4629_v22 = vadd.f32 %v4628_v2, %v4318_v5 }
 0x354   : > { %v5815_v23 = vpop.f32.mrf.mxu1  ;;  %v5741_v4 = vpop.f32.mrf.mxu0 }
 0x355   : > { %4947 = vst [vmem:[%s9222_s12 + $0xc0] sm:$0xff] %v4878_v3  ;;  %v4896_v48 = vadd.f32 %v5815_v23, %v4623_v30  ;;  %v4647_v13 = vadd.f32 %v5741_v4, %v4342_v24 }
 0x356   : > { %v4889_v20 = vpop.f32.mrf.mxu1  ;;  %v4640_v14 = vpop.f32.mrf.mxu0 }
 0x357   : > { %4950 = vst [vmem:[%s9222_s12 + $0xd8] sm:$0xff] %v4896_v48  ;;  %v4890_v37 = vadd.f32 %v4889_v20, %v4617_v28  ;;  %v4641_v53 = vadd.f32 %v4640_v14, %v4334_v10 }
 0x358   : > { %v5818_v49 = vpop.f32.mrf.mxu1 }
 0x359   : > { %4949 = vst [vmem:[%s9222_s12 + $0xd0] sm:$0xff] %v4890_v37  ;;  %v4908_v1 = vadd.f32 %v5818_v49, %v4635_v46 }
 0x35a   : > { %v4901_v42 = vpop.f32.mrf.mxu1 }
 0x35b   : > { %4952 = vst [vmem:[%s9222_s12 + $0xe8] sm:$0xff] %v4908_v1  ;;  %v4902_v41 = vadd.f32 %v4901_v42, %v4629_v22 }
 0x35c   : > { %v5821_v31 = vpop.f32.mrf.mxu1 }
 0x35d   : > { %4951 = vst [vmem:[%s9222_s12 + $0xe0] sm:$0xff] %v4902_v41  ;;  %v4920_v33 = vadd.f32 %v5821_v31, %v4647_v13  ;;  %4962 = sbr.rel (!%p5991_p5) target bundleno = 893 (0x37d), region = 36 }
 0x35e   : > { %v4913_v52 = vpop.f32.mrf.mxu1 }
 0x35f   : > { %4954 = vst [vmem:[%s9222_s12 + $0xf8] sm:$0xff] %v4920_v33  ;;  %v4914_v34 = vadd.f32 %v4913_v52, %v4641_v53 }
 0x361   : > { %4953 = vst [vmem:[%s9222_s12 + $0xf0] sm:$0xff] %v4914_v34 }
 0x362   : > { %s10767_s18 = smov (!%p4965_p11, %s4964_s18), 32 }
 0x363   : > { %s9345_s20 = sshll.u32 %s10767_s18, 7 }
 0x364   : > { %s4969_s21 = ssub.s32 4096, %s9345_s20 }
 0x365   : > { %4970 = vsyncadd %s9340_s13, %s4969_s21  ;;  %p5047_p12 = scmp.ne.s32.totalorder %s9345_s20, 0  ;;  %s5053_s27 = sshll.u32 %s5974_s2, 12 }
 0x366   : > { %s9354_s29 = scalar_lea.hbm %s9403_s3, %s5053_s27  ;;  %s4975_s25 = sshll.u32 %s9222_s12, 4  ;;  %s9357_s25 = int_to_ptr.vmem [resolvable:$true] %s4975_s25 }
 0x367   : > { %s5864_s30 = scalar_lea.vmem %s9357_s25, %s9345_s20  ;;  %s5927_s4 = smov [#allocation3]  }
 0x368   : > { %p5865_p13 = scmp.ne.s32.totalorder %s9357_s25, %s5864_s30  ;;  %s5868_s5 = sshll.u32 %s5927_s4, 4  ;;  %s5869_s5 = int_to_ptr.vmem [resolvable:$false] %s5868_s5 }
 0x369   : > { %s5870_s2 = scalar_lea.vmem %s5869_s5, 8192  ;;  %p5871_p2 = scmp.lt.s32.totalorder %s9357_s25, %s5869_s5 }
 0x36a   : > { %p5866_p0 = pnand %p5865_p13, %p5047_p12  ;;  %p5872_p3 = scmp.lt.s32.totalorder %s5870_s2, %s5864_s30 }
 0x36c   : > { %p5867_p1 = pneg %p5866_p0  ;;  %p5873_p4 = por %p5872_p3, %p5871_p2 }
 0x36e   : > { %p5874_p5 = pnand %p5873_p4, %p5867_p1 }
 0x370   : > { %5877 = shalt.err (!%p5874_p5)
}
 0x371   : > { %s5878_s6 = scalar_lea.hbm %s9354_s29, %s9345_s20  ;;  %s5882_s9 = scalar_lea.hbm %s9403_s3, 16000 }
 0x372   : > { %p5879_p7 = scmp.ne.s32.totalorder %s9354_s29, %s5878_s6  ;;  %p5883_p10 = scmp.lt.s32.totalorder %s9354_s29, %s9403_s3 }
 0x373   : > { %p5884_p11 = scmp.lt.s32.totalorder %s5882_s9, %s5878_s6 }
 0x374   : > { %p5880_p8 = pnand %p5879_p7, %p5047_p12 }
 0x375   : > { %p5885_p13 = por %p5884_p11, %p5883_p10 }
 0x376   : > { %p5881_p9 = pneg %p5880_p8 }
 0x378   : > { %p5886_p0 = pnand %p5885_p13, %p5881_p9 }
 0x37a   : > { %5889 = shalt.err (!%p5886_p0)
}
 0x37b   : > { %s5928_s11 = smov 128   ;;  %s5929_s12 = smov 8  }
 0x37c   : > { %4981 = dma.vmem_to_hbm [thread:$0]  (%p5047_p12), %s9357_s25, %s9345_s20, %s9354_s29, %s9340_s13, %s5928_s11, %s5928_s11, %s5929_s12  }
 0x37d PF: > { %p5828_p1 = scmp.ge.s32.totalorder %s5924_s17, 2  ;;  %s4990_s18 = sand.u32 1, %s5912_s14  }
 0x37e   : > { %s4991_s21 = scalar_lea.sflag [#allocation4], %s4990_s18 }
 0x37f   : > { %p5825_p2 = pnand %p5828_p1, %p5995_p6 }
 0x381   : > { %p5826_p3 = pneg %p5825_p2 }
 0x383   : > { %5907 = dma.done.wait (%p5826_p3), %s4991_s21, 4096  }
 0x384   : > { %5909 = vsyncadd (%p5826_p3), %s4991_s21, 4294963200  ;;  %p14_p4 = scmp.ge.s32.totalorder %s5978_s19, 6   ;;  %s10762_s14 = smov %s5916_s15 }
 0x385   : > { %s10763_s15 = smov %s5920_s16  ;;  %s10764_s16 = smov %s5989_s22 }
 0x386   : > { %s10765_s17 = smov %s5978_s19  ;;  %16 = sbr.rel (!%p14_p4) target bundleno = 5 (0x5), region = 67 }
 0x38b   :  { %4996 = vsyncpa [#allocation4], 1 }
 0x38c   :  { %4998 = vsyncpa [#allocation4 + $0x1], 1 }

</bundles_post_ra>
